<compile_context>
chip_gen: v5e
topology: v5e:2x2
jax: 0.10.0
libtpu: 0.0.40
codegen_flags: <defaults>
</compile_context>

<pallas_src>
import functools
import math

import jax
import jax.numpy as jnp
from jax import lax
from jax.experimental import pallas as pl
from jax.experimental.pallas import tpu as pltpu


# -----------------------------------------------------------------------------
# In-kernel helpers (only ever traced inside Pallas kernel bodies)
# -----------------------------------------------------------------------------

def _ln(x, g, b, eps=1e-6):
    # Annotated-transformer LayerNorm: g * (x - mean) / (std + eps) + b, unbiased std
    # (matches the reference torch module, intentionally NOT nn.LayerNorm).
    h = x.shape[-1]
    mu = jnp.mean(x, axis=-1, keepdims=True)
    var = jnp.sum((x - mu) * (x - mu), axis=-1, keepdims=True) / (h - 1)
    inv = pl.reciprocal(jnp.sqrt(var) + eps, approx=True)
    return g * (x - mu) * inv + b


def _mha(q, k, v, mask, w_o, *, num_heads, scale):
    """Multi-head attention on (Sq,H)/(Sk,H) with the output projection fused in.

    concat_h(softmax(q_h k_h^T) v_h) @ W_o  ==  sum_h softmax(q_h k_h^T) v_h @ W_o[h*Dh:(h+1)*Dh]
    so no in-kernel concatenate / transpose is needed.
    """
    sq = q.shape[0]
    h_out = w_o.shape[1]
    dh = q.shape[-1] // num_heads
    acc = jnp.zeros((sq, h_out), jnp.float32)
    for hd in range(num_heads):
        lo = hd * dh
        qh = q[:, lo:lo + dh]
        kh = k[:, lo:lo + dh]
        vh = v[:, lo:lo + dh]
        # scores = qh @ kh^T (contract head dim directly, no explicit transpose)
        s = lax.dot_general(qh, kh, (((1,), (1,)), ((), ())),
                            preferred_element_type=jnp.float32) * scale
        s = jnp.where(mask > 0.0, s, jnp.float32(-1e9))
        s = s - jnp.max(s, axis=-1, keepdims=True)
        p = jnp.exp(s)
        p = p * pl.reciprocal(jnp.sum(p, axis=-1, keepdims=True), approx=True)
        oh = jnp.dot(p, vh, preferred_element_type=jnp.float32)
        acc = acc + jnp.dot(oh, w_o[lo:lo + dh, :], preferred_element_type=jnp.float32)
    return acc


# -----------------------------------------------------------------------------
# Pallas kernels
# -----------------------------------------------------------------------------

def _encoder_layer_kernel(x_ref, m_ref,
                          ln1g_ref, ln1b_ref, wqkv_ref, bqkv_ref, wo_ref, bo_ref,
                          ln2g_ref, ln2b_ref, w1_ref, b1_ref, w2_ref, b2_ref,
                          o_ref, *, num_heads, scale):
    x = x_ref[0]                       # (S, H)
    m = m_ref[0]                       # (1, S) or (S, S); broadcasts against scores
    hdim = x.shape[-1]

    # -- self-attention sublayer: x + MHA(LN(x)) --
    h = _ln(x, ln1g_ref[...], ln1b_ref[...])
    qkv = jnp.dot(h, wqkv_ref[...], preferred_element_type=jnp.float32) + bqkv_ref[...]
    a = _mha(qkv[:, :hdim], qkv[:, hdim:2 * hdim], qkv[:, 2 * hdim:], m, wo_ref[...],
             num_heads=num_heads, scale=scale)
    x = x + a + bo_ref[...]

    # -- feed-forward sublayer: x + W2(relu(W1(LN(x)))) --
    h = _ln(x, ln2g_ref[...], ln2b_ref[...])
    f = jnp.maximum(jnp.dot(h, w1_ref[...], preferred_element_type=jnp.float32)
                    + b1_ref[...], 0.0)
    x = x + jnp.dot(f, w2_ref[...], preferred_element_type=jnp.float32) + b2_ref[...]
    o_ref[0] = x


def _decoder_layer_kernel(x_ref, mem_ref, tm_ref, sm_ref,
                          ln1g_ref, ln1b_ref, wqkv_ref, bqkv_ref, wo1_ref, bo1_ref,
                          ln2g_ref, ln2b_ref, wq2_ref, bq2_ref, wkv2_ref, bkv2_ref,
                          wo2_ref, bo2_ref,
                          ln3g_ref, ln3b_ref, w1_ref, b1_ref, w2_ref, b2_ref,
                          o_ref, *, num_heads, scale):
    x = x_ref[0]                       # (St, H)
    mem = mem_ref[0]                   # (Ss, H) encoder output
    tm = tm_ref[0]                     # (St, St) causal mask
    sm = sm_ref[0]                     # (1, Ss) padding mask
    hdim = x.shape[-1]

    # -- masked self-attention --
    h = _ln(x, ln1g_ref[...], ln1b_ref[...])
    qkv = jnp.dot(h, wqkv_ref[...], preferred_element_type=jnp.float32) + bqkv_ref[...]
    a = _mha(qkv[:, :hdim], qkv[:, hdim:2 * hdim], qkv[:, 2 * hdim:], tm, wo1_ref[...],
             num_heads=num_heads, scale=scale)
    x = x + a + bo1_ref[...]

    # -- cross-attention over encoder output --
    h = _ln(x, ln2g_ref[...], ln2b_ref[...])
    q = jnp.dot(h, wq2_ref[...], preferred_element_type=jnp.float32) + bq2_ref[...]
    kv = jnp.dot(mem, wkv2_ref[...], preferred_element_type=jnp.float32) + bkv2_ref[...]
    a = _mha(q, kv[:, :hdim], kv[:, hdim:], sm, wo2_ref[...],
             num_heads=num_heads, scale=scale)
    x = x + a + bo2_ref[...]

    # -- feed-forward --
    h = _ln(x, ln3g_ref[...], ln3b_ref[...])
    f = jnp.maximum(jnp.dot(h, w1_ref[...], preferred_element_type=jnp.float32)
                    + b1_ref[...], 0.0)
    x = x + jnp.dot(f, w2_ref[...], preferred_element_type=jnp.float32) + b2_ref[...]
    o_ref[0] = x


def _decoder_head_kernel(x_ref, lng_ref, lnb_ref, wcls_ref, bcls_ref, wbox_ref, bbox_ref,
                         cls_ref, box_ref):
    # decoder final LayerNorm + class head (log_softmax) + box head (sigmoid), fused.
    h = _ln(x_ref[0], lng_ref[...], lnb_ref[...])
    logits = jnp.dot(h, wcls_ref[...], preferred_element_type=jnp.float32) + bcls_ref[...]
    z = logits - jnp.max(logits, axis=-1, keepdims=True)
    cls_ref[0] = z - jnp.log(jnp.sum(jnp.exp(z), axis=-1, keepdims=True))
    box = jnp.dot(h, wbox_ref[...], preferred_element_type=jnp.float32) + bbox_ref[...]
    box_ref[0] = 1.0 / (1.0 + jnp.exp(-box))


def _layernorm_kernel(x_ref, g_ref, b_ref, o_ref):
    o_ref[...] = _ln(x_ref[...], g_ref[...], b_ref[...])


def _linear_kernel(x_ref, w_ref, b_ref, o_ref):
    o_ref[...] = (jnp.dot(x_ref[...], w_ref[...], preferred_element_type=jnp.float32)
                  + b_ref[...])


# -----------------------------------------------------------------------------
# pallas_call wrappers
# -----------------------------------------------------------------------------

def _wspec(arr):
    """Full-array block, same block every grid step (weights stay VMEM-resident)."""
    zeros = (0,) * arr.ndim
    return pl.BlockSpec(arr.shape, lambda *_: zeros)


def encoder_layer(x, mask, lp, num_heads):
    B, S, H = x.shape
    scale = 1.0 / math.sqrt(H // num_heads)
    weights = (lp["ln1_g"], lp["ln1_b"], lp["w_qkv"], lp["b_qkv"], lp["w_o"], lp["b_o"],
               lp["ln2_g"], lp["ln2_b"], lp["w1"], lp["b1"], lp["w2"], lp["b2"])
    return pl.pallas_call(
        functools.partial(_encoder_layer_kernel, num_heads=num_heads, scale=scale),
        out_shape=jax.ShapeDtypeStruct((B, S, H), jnp.float32),
        grid=(B,),
        in_specs=[pl.BlockSpec((1, S, H), lambda b: (b, 0, 0)),
                  pl.BlockSpec((1,) + mask.shape[1:], lambda b: (b, 0, 0))]
                 + [_wspec(w) for w in weights],
        out_specs=pl.BlockSpec((1, S, H), lambda b: (b, 0, 0)),
        compiler_params=pltpu.CompilerParams(dimension_semantics=("parallel",)),
    )(x, mask, *weights)


def decoder_layer(x, mem, trg_mask, src_mask, lp, num_heads):
    B, St, H = x.shape
    Ss = mem.shape[1]
    scale = 1.0 / math.sqrt(H // num_heads)
    weights = (lp["ln1_g"], lp["ln1_b"], lp["w_qkv"], lp["b_qkv"], lp["w_o1"], lp["b_o1"],
               lp["ln2_g"], lp["ln2_b"], lp["w_q2"], lp["b_q2"], lp["w_kv2"], lp["b_kv2"],
               lp["w_o2"], lp["b_o2"],
               lp["ln3_g"], lp["ln3_b"], lp["w1"], lp["b1"], lp["w2"], lp["b2"])
    return pl.pallas_call(
        functools.partial(_decoder_layer_kernel, num_heads=num_heads, scale=scale),
        out_shape=jax.ShapeDtypeStruct((B, St, H), jnp.float32),
        grid=(B,),
        in_specs=[pl.BlockSpec((1, St, H), lambda b: (b, 0, 0)),
                  pl.BlockSpec((1, Ss, H), lambda b: (b, 0, 0)),
                  pl.BlockSpec((1,) + trg_mask.shape[1:], lambda b: (b, 0, 0)),
                  pl.BlockSpec((1,) + src_mask.shape[1:], lambda b: (b, 0, 0))]
                 + [_wspec(w) for w in weights],
        out_specs=pl.BlockSpec((1, St, H), lambda b: (b, 0, 0)),
        compiler_params=pltpu.CompilerParams(dimension_semantics=("parallel",)),
    )(x, mem, trg_mask, src_mask, *weights)


def decoder_head(x, hp):
    B, St, H = x.shape
    CLS = hp["w_cls"].shape[1]
    BOX = hp["w_box"].shape[1]
    weights = (hp["ln_g"], hp["ln_b"], hp["w_cls"], hp["b_cls"], hp["w_box"], hp["b_box"])
    return pl.pallas_call(
        _decoder_head_kernel,
        out_shape=(jax.ShapeDtypeStruct((B, St, CLS), jnp.float32),
                   jax.ShapeDtypeStruct((B, St, BOX), jnp.float32)),
        grid=(B,),
        in_specs=[pl.BlockSpec((1, St, H), lambda b: (b, 0, 0))]
                 + [_wspec(w) for w in weights],
        out_specs=(pl.BlockSpec((1, St, CLS), lambda b: (b, 0, 0)),
                   pl.BlockSpec((1, St, BOX), lambda b: (b, 0, 0))),
        compiler_params=pltpu.CompilerParams(dimension_semantics=("parallel",)),
    )(x, *weights)


def pallas_layernorm(x2d, g, b):
    M, H = x2d.shape
    return pl.pallas_call(
        _layernorm_kernel,
        out_shape=jax.ShapeDtypeStruct((M, H), jnp.float32),
        grid=(1,),
        in_specs=[pl.BlockSpec((M, H), lambda i: (0, 0)),
                  pl.BlockSpec((1, H), lambda i: (0, 0)),
                  pl.BlockSpec((1, H), lambda i: (0, 0))],
        out_specs=pl.BlockSpec((M, H), lambda i: (0, 0)),
    )(x2d, g, b)


def pallas_linear(x2d, w, b):
    M, K = x2d.shape
    N = w.shape[1]
    return pl.pallas_call(
        _linear_kernel,
        out_shape=jax.ShapeDtypeStruct((M, N), jnp.float32),
        grid=(1,),
        in_specs=[pl.BlockSpec((M, K), lambda i: (0, 0)),
                  pl.BlockSpec((K, N), lambda i: (0, 0)),
                  pl.BlockSpec((1, N), lambda i: (0, 0))],
        out_specs=pl.BlockSpec((M, N), lambda i: (0, 0)),
    )(x2d, w, b)


# -----------------------------------------------------------------------------
# Forward pass (embedding gathers are JAX glue; everything else is Pallas)
# -----------------------------------------------------------------------------

def encode(params, input_token, input_ids, segment_label, token_type, src_mask, num_heads):
    emb = params["enc_emb"]
    x = (emb["token"][input_token]
         + emb["ids"][input_ids]
         + emb["segment"][segment_label]
         + emb["type"][token_type])
    m = src_mask.astype(jnp.float32)
    for lp in params["enc_layers"]:
        x = encoder_layer(x, m, lp, num_heads)
    B, S, H = x.shape
    x = pallas_layernorm(x.reshape(-1, H), params["enc_final_g"], params["enc_final_b"])
    return x.reshape(B, S, H)


def decode(params, output_cls, output_box, template, enc_out, src_mask, trg_mask, num_heads):
    emb = params["dec_emb"]
    B, St = output_cls.shape
    H = enc_out.shape[-1]
    box_e = pallas_linear(output_box.reshape(-1, output_box.shape[-1]),
                          emb["box_w"], emb["box_b"]).reshape(B, St, H)
    # TODO(synk): exact BboxRegDecoder embedding recipe (template handling / scaling)
    # reconstructed from the paper; treating template as class-token ids.
    x = emb["cls"][output_cls] + box_e + emb["template"][template] + emb["pos"][None, :St, :]

    sm = src_mask.astype(jnp.float32)
    tm = trg_mask.astype(jnp.float32)
    for lp in params["dec_layers"]:
        x = decoder_layer(x, enc_out, tm, sm, lp, num_heads)
    return decoder_head(x, params["head"])


def rel2reg_layout_forward(params, input_token, input_ids, segment_label, token_type,
                           src_mask, output_cls, output_box, trg_mask,
                           trg_input_template, *, num_heads):
    enc_out = encode(params, input_token, input_ids, segment_label, token_type,
                     src_mask, num_heads)
    return decode(params, output_cls, output_box, trg_input_template, enc_out,
                  src_mask, trg_mask, num_heads)


# -----------------------------------------------------------------------------
# Deterministic parameter construction (fused QKV / KV weights)
# -----------------------------------------------------------------------------

class _KeyGen:
    def __init__(self, key):
        self._key = key

    def __call__(self):
        self._key, sub = jax.random.split(self._key)
        return sub


def init_params(key, *, vocab_size, cls_size, box_size, hidden, num_layers,
                max_out_len, id_size=64, seg_size=4, type_size=4):
    kg = _KeyGen(key)
    ff = hidden * 4

    def emb(n):
        return 0.02 * jax.random.normal(kg(), (n, hidden), jnp.float32)

    def w(fan_in, fan_out):
        return 0.02 * jax.random.normal(kg(), (fan_in, fan_out), jnp.float32)

    def zeros(n):
        return jnp.zeros((1, n), jnp.float32)

    def ones(n):
        return jnp.ones((1, n), jnp.float32)

    def enc_layer():
        return {
            "ln1_g": ones(hidden), "ln1_b": zeros(hidden),
            "w_qkv": w(hidden, 3 * hidden), "b_qkv": zeros(3 * hidden),
            "w_o": w(hidden, hidden), "b_o": zeros(hidden),
            "ln2_g": ones(hidden), "ln2_b": zeros(hidden),
            "w1": w(hidden, ff), "b1": zeros(ff),
            "w2": w(ff, hidden), "b2": zeros(hidden),
        }

    def dec_layer():
        return {
            "ln1_g": ones(hidden), "ln1_b": zeros(hidden),
            "w_qkv": w(hidden, 3 * hidden), "b_qkv": zeros(3 * hidden),
            "w_o1": w(hidden, hidden), "b_o1": zeros(hidden),
            "ln2_g": ones(hidden), "ln2_b": zeros(hidden),
            "w_q2": w(hidden, hidden), "b_q2": zeros(hidden),
            "w_kv2": w(hidden, 2 * hidden), "b_kv2": zeros(2 * hidden),
            "w_o2": w(hidden, hidden), "b_o2": zeros(hidden),
            "ln3_g": ones(hidden), "ln3_b": zeros(hidden),
            "w1": w(hidden, ff), "b1": zeros(ff),
            "w2": w(ff, hidden), "b2": zeros(hidden),
        }

    return {
        "enc_emb": {"token": emb(vocab_size), "ids": emb(id_size),
                    "segment": emb(seg_size), "type": emb(type_size)},
        "enc_layers": [enc_layer() for _ in range(num_layers)],
        "enc_final_g": ones(hidden), "enc_final_b": zeros(hidden),
        "dec_emb": {"cls": emb(cls_size), "template": emb(cls_size),
                    "pos": emb(max_out_len),
                    "box_w": w(box_size, hidden), "box_b": zeros(hidden)},
        "dec_layers": [dec_layer() for _ in range(num_layers)],
        "head": {"ln_g": ones(hidden), "ln_b": zeros(hidden),
                 "w_cls": w(hidden, cls_size), "b_cls": zeros(cls_size),
                 "w_box": w(hidden, box_size), "b_box": zeros(box_size)},
    }


# -----------------------------------------------------------------------------
# Main
# -----------------------------------------------------------------------------

if __name__ == "__main__":
    # Small config consistent with the module's defaults.
    VOCAB, CLS, BOX = 204, 154, 4
    HIDDEN, LAYERS, HEADS = 32, 2, 4
    MAX_OUT_LEN = 16
    B, S_SRC, S_TRG = 2, 8, 8

    root = jax.random.PRNGKey(0)
    k_param, k_in = jax.random.split(root)
    params = init_params(k_param, vocab_size=VOCAB, cls_size=CLS, box_size=BOX,
                         hidden=HIDDEN, num_layers=LAYERS, max_out_len=MAX_OUT_LEN)

    ks = jax.random.split(k_in, 8)
    input_token = jax.random.randint(ks[0], (B, S_SRC), 3, VOCAB, dtype=jnp.int32)
    input_ids = jax.random.randint(ks[1], (B, S_SRC), 0, 64, dtype=jnp.int32)
    segment_label = jax.random.randint(ks[2], (B, S_SRC), 0, 4, dtype=jnp.int32)
    token_type = jax.random.randint(ks[3], (B, S_SRC), 0, 4, dtype=jnp.int32)

    # src padding mask (B, 1, S_src): last two positions of batch 1 are padding.
    src_mask = jnp.ones((B, 1, S_SRC), jnp.float32).at[1, 0, -2:].set(0.0)

    output_cls = jax.random.randint(ks[4], (B, S_TRG), 3, CLS, dtype=jnp.int32)
    output_box = jax.random.uniform(ks[5], (B, S_TRG, BOX), jnp.float32)
    trg_input_template = jax.random.randint(ks[6], (B, S_TRG), 3, CLS, dtype=jnp.int32)

    # causal target mask (B, S_trg, S_trg)
    causal = jnp.tril(jnp.ones((S_TRG, S_TRG), jnp.float32))
    trg_mask = jnp.broadcast_to(causal[None], (B, S_TRG, S_TRG))

    fwd = jax.jit(functools.partial(rel2reg_layout_forward, num_heads=HEADS))
    cls_log_probs, box_pred = fwd(params, input_token, input_ids, segment_label,
                                  token_type, src_mask, output_cls, output_box,
                                  trg_mask, trg_input_template)
    jax.block_until_ready((cls_log_probs, box_pred))

    assert cls_log_probs.shape == (B, S_TRG, CLS)
    assert box_pred.shape == (B, S_TRG, BOX)
    assert bool(jnp.all(jnp.isfinite(cls_log_probs))) and bool(jnp.all(jnp.isfinite(box_pred)))
    print("KERNEL_OK")
</pallas_src>

<mosaic_0001>
module attributes {stable_mosaic.version = 11 : i64} {
  func.func @_layernorm_kernel(%arg0: i32, %arg1: memref<16x32xf32, #tpu.memory_space<vmem>>, %arg2: memref<1x32xf32, #tpu.memory_space<vmem>>, %arg3: memref<1x32xf32, #tpu.memory_space<vmem>>, %arg4: memref<16x32xf32, #tpu.memory_space<vmem>>) attributes {dimension_semantics = [#tpu.dimension_semantics<arbitrary>], iteration_bounds = array<i64: 1>, scalar_prefetch = 0 : i64, scratch_operands = 0 : i64, tpu.core_type = #tpu.core_type<tc>, window_params = [{pipeline_mode = #tpu.pipeline_mode<synchronous>, transform_indices = @transform_0, window_bounds = array<i64: 16, 32>}, {pipeline_mode = #tpu.pipeline_mode<synchronous>, transform_indices = @transform_1, window_bounds = array<i64: 1, 32>}, {pipeline_mode = #tpu.pipeline_mode<synchronous>, transform_indices = @transform_2, window_bounds = array<i64: 1, 32>}, {pipeline_mode = #tpu.pipeline_mode<synchronous>, transform_indices = @transform_3, window_bounds = array<i64: 16, 32>}]} {
    %c0 = arith.constant 0 : index
    %c0_0 = arith.constant 0 : index
    %0 = vector.load %arg1[%c0, %c0_0] : memref<16x32xf32, #tpu.memory_space<vmem>>, vector<16x32xf32>
    %c0_1 = arith.constant 0 : index
    %c0_2 = arith.constant 0 : index
    %1 = vector.load %arg2[%c0_1, %c0_2] : memref<1x32xf32, #tpu.memory_space<vmem>>, vector<1x32xf32>
    %c0_3 = arith.constant 0 : index
    %c0_4 = arith.constant 0 : index
    %2 = vector.load %arg3[%c0_3, %c0_4] : memref<1x32xf32, #tpu.memory_space<vmem>>, vector<1x32xf32>
    %cst = arith.constant dense<0.000000e+00> : vector<16xf32>
    %3 = vector.multi_reduction <add>, %0, %cst [1] : vector<16x32xf32> to vector<16xf32>
    %4 = vector.shape_cast %3 : vector<16xf32> to vector<16x1xf32>
    %cst_5 = arith.constant 3.200000e+01 : f32
    %5 = vector.broadcast %cst_5 : f32 to vector<16x1xf32>
    %6 = arith.divf %4, %5 : vector<16x1xf32>
    %7 = vector.broadcast %6 : vector<16x1xf32> to vector<16x32xf32>
    %8 = arith.subf %0, %7 : vector<16x32xf32>
    %9 = vector.broadcast %6 : vector<16x1xf32> to vector<16x32xf32>
    %10 = arith.subf %0, %9 : vector<16x32xf32>
    %11 = arith.mulf %8, %10 : vector<16x32xf32>
    %cst_6 = arith.constant dense<0.000000e+00> : vector<16xf32>
    %12 = vector.multi_reduction <add>, %11, %cst_6 [1] : vector<16x32xf32> to vector<16xf32>
    %13 = vector.shape_cast %12 : vector<16xf32> to vector<16x1xf32>
    %cst_7 = arith.constant 3.100000e+01 : f32
    %14 = vector.broadcast %cst_7 : f32 to vector<16x1xf32>
    %15 = arith.divf %13, %14 : vector<16x1xf32>
    %16 = math.sqrt %15 : vector<16x1xf32>
    %cst_8 = arith.constant 9.99999997E-7 : f32
    %17 = vector.broadcast %cst_8 : f32 to vector<16x1xf32>
    %18 = arith.addf %16, %17 : vector<16x1xf32>
    %19 = tpu.reciprocal %18 {approx = true} : vector<16x1xf32> -> vector<16x1xf32>
    %20 = vector.broadcast %6 : vector<16x1xf32> to vector<16x32xf32>
    %21 = arith.subf %0, %20 : vector<16x32xf32>
    %22 = vector.broadcast %1 : vector<1x32xf32> to vector<16x32xf32>
    %23 = arith.mulf %22, %21 : vector<16x32xf32>
    %24 = vector.broadcast %19 : vector<16x1xf32> to vector<16x32xf32>
    %25 = arith.mulf %23, %24 : vector<16x32xf32>
    %26 = vector.broadcast %2 : vector<1x32xf32> to vector<16x32xf32>
    %27 = arith.addf %25, %26 : vector<16x32xf32>
    %c0_9 = arith.constant 0 : index
    %c0_10 = arith.constant 0 : index
    %28 = vector.load %arg4[%c0_9, %c0_10] : memref<16x32xf32, #tpu.memory_space<vmem>>, vector<16x32xf32>
    tpu.vector_store %arg4[%c0_9, %c0_10], %27 {strides = array<i32>} : memref<16x32xf32, #tpu.memory_space<vmem>>, vector<16x32xf32>,
    return
  }
  func.func @transform_0(%arg0: i32) -> (i32, i32) {
    %c0_i32 = arith.constant 0 : i32
    %c0_i32_0 = arith.constant 0 : i32
    %c0_i32_1 = arith.constant 0 : i32
    return %c0_i32, %c0_i32_0 : i32, i32
  }
  func.func @transform_1(%arg0: i32) -> (i32, i32) {
    %c0_i32 = arith.constant 0 : i32
    %c0_i32_0 = arith.constant 0 : i32
    %c0_i32_1 = arith.constant 0 : i32
    return %c0_i32, %c0_i32_0 : i32, i32
  }
  func.func @transform_2(%arg0: i32) -> (i32, i32) {
    %c0_i32 = arith.constant 0 : i32
    %c0_i32_0 = arith.constant 0 : i32
    %c0_i32_1 = arith.constant 0 : i32
    return %c0_i32, %c0_i32_0 : i32, i32
  }
  func.func @transform_3(%arg0: i32) -> (i32, i32) {
    %c0_i32 = arith.constant 0 : i32
    %c0_i32_0 = arith.constant 0 : i32
    %c0_i32_1 = arith.constant 0 : i32
    return %c0_i32, %c0_i32_0 : i32, i32
  }
}

module attributes {stable_mosaic.version = 11 : i64} {
  func.func @_encoder_layer_kernel(%arg0: i32, %arg1: memref<1x8x32xf32, #tpu.memory_space<vmem>>, %arg2: memref<1x1x8xf32, #tpu.memory_space<vmem>>, %arg3: memref<1x32xf32, #tpu.memory_space<vmem>>, %arg4: memref<1x32xf32, #tpu.memory_space<vmem>>, %arg5: memref<32x96xf32, #tpu.memory_space<vmem>>, %arg6: memref<1x96xf32, #tpu.memory_space<vmem>>, %arg7: memref<32x32xf32, #tpu.memory_space<vmem>>, %arg8: memref<1x32xf32, #tpu.memory_space<vmem>>, %arg9: memref<1x32xf32, #tpu.memory_space<vmem>>, %arg10: memref<1x32xf32, #tpu.memory_space<vmem>>, %arg11: memref<32x128xf32, #tpu.memory_space<vmem>>, %arg12: memref<1x128xf32, #tpu.memory_space<vmem>>, %arg13: memref<128x32xf32, #tpu.memory_space<vmem>>, %arg14: memref<1x32xf32, #tpu.memory_space<vmem>>, %arg15: memref<1x8x32xf32, #tpu.memory_space<vmem>>) attributes {dimension_semantics = [#tpu.dimension_semantics<parallel>], iteration_bounds = array<i64: 2>, scalar_prefetch = 0 : i64, scratch_operands = 0 : i64, tpu.core_type = #tpu.core_type<tc>, window_params = [{transform_indices = @transform_0, window_bounds = array<i64: 1, 8, 32>}, {transform_indices = @transform_1, window_bounds = array<i64: 1, 1, 8>}, {pipeline_mode = #tpu.pipeline_mode<synchronous>, transform_indices = @transform_2, window_bounds = array<i64: 1, 32>}, {pipeline_mode = #tpu.pipeline_mode<synchronous>, transform_indices = @transform_3, window_bounds = array<i64: 1, 32>}, {pipeline_mode = #tpu.pipeline_mode<synchronous>, transform_indices = @transform_4, window_bounds = array<i64: 32, 96>}, {pipeline_mode = #tpu.pipeline_mode<synchronous>, transform_indices = @transform_5, window_bounds = array<i64: 1, 96>}, {pipeline_mode = #tpu.pipeline_mode<synchronous>, transform_indices = @transform_6, window_bounds = array<i64: 32, 32>}, {pipeline_mode = #tpu.pipeline_mode<synchronous>, transform_indices = @transform_7, window_bounds = array<i64: 1, 32>}, {pipeline_mode = #tpu.pipeline_mode<synchronous>, transform_indices = @transform_8, window_bounds = array<i64: 1, 32>}, {pipeline_mode = #tpu.pipeline_mode<synchronous>, transform_indices = @transform_9, window_bounds = array<i64: 1, 32>}, {pipeline_mode = #tpu.pipeline_mode<synchronous>, transform_indices = @transform_10, window_bounds = array<i64: 32, 128>}, {pipeline_mode = #tpu.pipeline_mode<synchronous>, transform_indices = @transform_11, window_bounds = array<i64: 1, 128>}, {pipeline_mode = #tpu.pipeline_mode<synchronous>, transform_indices = @transform_12, window_bounds = array<i64: 128, 32>}, {pipeline_mode = #tpu.pipeline_mode<synchronous>, transform_indices = @transform_13, window_bounds = array<i64: 1, 32>}, {transform_indices = @transform_14, window_bounds = array<i64: 1, 8, 32>}]} {
    %c0 = arith.constant 0 : index
    %c0_0 = arith.constant 0 : index
    %c0_1 = arith.constant 0 : index
    %0 = vector.load %arg1[%c0, %c0_0, %c0_1] : memref<1x8x32xf32, #tpu.memory_space<vmem>>, vector<1x8x32xf32>
    %1 = vector.shape_cast %0 : vector<1x8x32xf32> to vector<8x32xf32>
    %c0_2 = arith.constant 0 : index
    %c0_3 = arith.constant 0 : index
    %c0_4 = arith.constant 0 : index
    %2 = vector.load %arg2[%c0_2, %c0_3, %c0_4] : memref<1x1x8xf32, #tpu.memory_space<vmem>>, vector<1x1x8xf32>
    %3 = vector.shape_cast %2 : vector<1x1x8xf32> to vector<1x8xf32>
    %c0_5 = arith.constant 0 : index
    %c0_6 = arith.constant 0 : index
    %4 = vector.load %arg3[%c0_5, %c0_6] : memref<1x32xf32, #tpu.memory_space<vmem>>, vector<1x32xf32>
    %c0_7 = arith.constant 0 : index
    %c0_8 = arith.constant 0 : index
    %5 = vector.load %arg4[%c0_7, %c0_8] : memref<1x32xf32, #tpu.memory_space<vmem>>, vector<1x32xf32>
    %cst = arith.constant dense<0.000000e+00> : vector<8xf32>
    %6 = vector.multi_reduction <add>, %1, %cst [1] : vector<8x32xf32> to vector<8xf32>
    %7 = vector.shape_cast %6 : vector<8xf32> to vector<8x1xf32>
    %cst_9 = arith.constant 3.200000e+01 : f32
    %8 = vector.broadcast %cst_9 : f32 to vector<8x1xf32>
    %9 = arith.divf %7, %8 : vector<8x1xf32>
    %10 = vector.broadcast %9 : vector<8x1xf32> to vector<8x32xf32>
    %11 = arith.subf %1, %10 : vector<8x32xf32>
    %12 = vector.broadcast %9 : vector<8x1xf32> to vector<8x32xf32>
    %13 = arith.subf %1, %12 : vector<8x32xf32>
    %14 = arith.mulf %11, %13 : vector<8x32xf32>
    %cst_10 = arith.constant dense<0.000000e+00> : vector<8xf32>
    %15 = vector.multi_reduction <add>, %14, %cst_10 [1] : vector<8x32xf32> to vector<8xf32>
    %16 = vector.shape_cast %15 : vector<8xf32> to vector<8x1xf32>
    %cst_11 = arith.constant 3.100000e+01 : f32
    %17 = vector.broadcast %cst_11 : f32 to vector<8x1xf32>
    %18 = arith.divf %16, %17 : vector<8x1xf32>
    %19 = math.sqrt %18 : vector<8x1xf32>
    %cst_12 = arith.constant 9.99999997E-7 : f32
    %20 = vector.broadcast %cst_12 : f32 to vector<8x1xf32>
    %21 = arith.addf %19, %20 : vector<8x1xf32>
    %22 = tpu.reciprocal %21 {approx = true} : vector<8x1xf32> -> vector<8x1xf32>
    %23 = vector.broadcast %9 : vector<8x1xf32> to vector<8x32xf32>
    %24 = arith.subf %1, %23 : vector<8x32xf32>
    %25 = vector.broadcast %4 : vector<1x32xf32> to vector<8x32xf32>
    %26 = arith.mulf %25, %24 : vector<8x32xf32>
    %27 = vector.broadcast %22 : vector<8x1xf32> to vector<8x32xf32>
    %28 = arith.mulf %26, %27 : vector<8x32xf32>
    %29 = vector.broadcast %5 : vector<1x32xf32> to vector<8x32xf32>
    %30 = arith.addf %28, %29 : vector<8x32xf32>
    %c0_13 = arith.constant 0 : index
    %c0_14 = arith.constant 0 : index
    %31 = vector.load %arg5[%c0_13, %c0_14] : memref<32x96xf32, #tpu.memory_space<vmem>>, vector<32x96xf32>
    %cst_15 = arith.constant dense<0.000000e+00> : vector<8x96xf32>
    %32 = tpu.matmul %30, %31, %cst_15 {dimension_numbers = #tpu.dot_dimension_numbers<[1], [0], [0], [1], [0, 0, 1, 1], [], []>} : vector<8x32xf32>, vector<32x96xf32>, vector<8x96xf32> -> vector<8x96xf32>
    %c0_16 = arith.constant 0 : index
    %c0_17 = arith.constant 0 : index
    %33 = vector.load %arg6[%c0_16, %c0_17] : memref<1x96xf32, #tpu.memory_space<vmem>>, vector<1x96xf32>
    %34 = vector.broadcast %33 : vector<1x96xf32> to vector<8x96xf32>
    %35 = arith.addf %32, %34 : vector<8x96xf32>
    %36 = vector.extract_strided_slice %35 {offsets = [0, 0], sizes = [8, 32], strides = [1, 1]} : vector<8x96xf32> to vector<8x32xf32>
    %37 = vector.extract_strided_slice %35 {offsets = [0, 32], sizes = [8, 32], strides = [1, 1]} : vector<8x96xf32> to vector<8x32xf32>
    %38 = vector.extract_strided_slice %35 {offsets = [0, 64], sizes = [8, 32], strides = [1, 1]} : vector<8x96xf32> to vector<8x32xf32>
    %c0_18 = arith.constant 0 : index
    %c0_19 = arith.constant 0 : index
    %39 = vector.load %arg7[%c0_18, %c0_19] : memref<32x32xf32, #tpu.memory_space<vmem>>, vector<32x32xf32>
    %cst_20 = arith.constant 0.000000e+00 : f32
    %40 = vector.broadcast %cst_20 : f32 to vector<8x32xf32>
    %41 = vector.extract_strided_slice %36 {offsets = [0, 0], sizes = [8, 8], strides = [1, 1]} : vector<8x32xf32> to vector<8x8xf32>
    %42 = vector.extract_strided_slice %37 {offsets = [0, 0], sizes = [8, 8], strides = [1, 1]} : vector<8x32xf32> to vector<8x8xf32>
    %43 = vector.extract_strided_slice %38 {offsets = [0, 0], sizes = [8, 8], strides = [1, 1]} : vector<8x32xf32> to vector<8x8xf32>
    %cst_21 = arith.constant dense<0.000000e+00> : vector<8x8xf32>
    %44 = tpu.matmul %41, %42, %cst_21 {dimension_numbers = #tpu.dot_dimension_numbers<[1], [1], [0], [0], [0, 0, 1, 0], [], []>} : vector<8x8xf32>, vector<8x8xf32>, vector<8x8xf32> -> vector<8x8xf32>
    %cst_22 = arith.constant 0.353553385 : f32
    %45 = vector.broadcast %cst_22 : f32 to vector<8x8xf32>
    %46 = arith.mulf %44, %45 : vector<8x8xf32>
    %cst_23 = arith.constant 0.000000e+00 : f32
    %47 = vector.broadcast %cst_23 : f32 to vector<1x8xf32>
    %48 = arith.cmpf ogt, %3, %47 : vector<1x8xf32>
    %cst_24 = arith.constant -1.000000e+09 : f32
    %49 = vector.shape_cast %48 : vector<1x8xi1> to vector<1x8xi1>
    %50 = vector.broadcast %49 : vector<1x8xi1> to vector<8x8xi1>
    %51 = vector.broadcast %cst_24 : f32 to vector<8x8xf32>
    %52 = arith.select %50, %46, %51 : vector<8x8xi1>, vector<8x8xf32>
    %cst_25 = arith.constant dense<0xFF800000> : vector<8xf32>
    %53 = vector.multi_reduction <maximumf>, %52, %cst_25 [1] : vector<8x8xf32> to vector<8xf32>
    %54 = vector.shape_cast %53 : vector<8xf32> to vector<8x1xf32>
    %55 = vector.broadcast %54 : vector<8x1xf32> to vector<8x8xf32>
    %56 = arith.subf %52, %55 : vector<8x8xf32>
    %57 = math.exp %56 : vector<8x8xf32>
    %cst_26 = arith.constant dense<0.000000e+00> : vector<8xf32>
    %58 = vector.multi_reduction <add>, %57, %cst_26 [1] : vector<8x8xf32> to vector<8xf32>
    %59 = vector.shape_cast %58 : vector<8xf32> to vector<8x1xf32>
    %60 = tpu.reciprocal %59 {approx = true} : vector<8x1xf32> -> vector<8x1xf32>
    %61 = vector.broadcast %60 : vector<8x1xf32> to vector<8x8xf32>
    %62 = arith.mulf %57, %61 : vector<8x8xf32>
    %cst_27 = arith.constant dense<0.000000e+00> : vector<8x8xf32>
    %63 = tpu.matmul %62, %43, %cst_27 {dimension_numbers = #tpu.dot_dimension_numbers<[1], [0], [0], [1], [0, 0, 1, 1], [], []>} : vector<8x8xf32>, vector<8x8xf32>, vector<8x8xf32> -> vector<8x8xf32>
    %64 = vector.extract_strided_slice %39 {offsets = [0, 0], sizes = [8, 32], strides = [1, 1]} : vector<32x32xf32> to vector<8x32xf32>
    %cst_28 = arith.constant dense<0.000000e+00> : vector<8x32xf32>
    %65 = tpu.matmul %63, %64, %cst_28 {dimension_numbers = #tpu.dot_dimension_numbers<[1], [0], [0], [1], [0, 0, 1, 1], [], []>} : vector<8x8xf32>, vector<8x32xf32>, vector<8x32xf32> -> vector<8x32xf32>
    %66 = arith.addf %40, %65 : vector<8x32xf32>
    %67 = vector.extract_strided_slice %36 {offsets = [0, 8], sizes = [8, 8], strides = [1, 1]} : vector<8x32xf32> to vector<8x8xf32>
    %68 = vector.extract_strided_slice %37 {offsets = [0, 8], sizes = [8, 8], strides = [1, 1]} : vector<8x32xf32> to vector<8x8xf32>
    %69 = vector.extract_strided_slice %38 {offsets = [0, 8], sizes = [8, 8], strides = [1, 1]} : vector<8x32xf32> to vector<8x8xf32>
    %cst_29 = arith.constant dense<0.000000e+00> : vector<8x8xf32>
    %70 = tpu.matmul %67, %68, %cst_29 {dimension_numbers = #tpu.dot_dimension_numbers<[1], [1], [0], [0], [0, 0, 1, 0], [], []>} : vector<8x8xf32>, vector<8x8xf32>, vector<8x8xf32> -> vector<8x8xf32>
    %cst_30 = arith.constant 0.353553385 : f32
    %71 = vector.broadcast %cst_30 : f32 to vector<8x8xf32>
    %72 = arith.mulf %70, %71 : vector<8x8xf32>
    %cst_31 = arith.constant 0.000000e+00 : f32
    %73 = vector.broadcast %cst_31 : f32 to vector<1x8xf32>
    %74 = arith.cmpf ogt, %3, %73 : vector<1x8xf32>
    %cst_32 = arith.constant -1.000000e+09 : f32
    %75 = vector.shape_cast %74 : vector<1x8xi1> to vector<1x8xi1>
    %76 = vector.broadcast %75 : vector<1x8xi1> to vector<8x8xi1>
    %77 = vector.broadcast %cst_32 : f32 to vector<8x8xf32>
    %78 = arith.select %76, %72, %77 : vector<8x8xi1>, vector<8x8xf32>
    %cst_33 = arith.constant dense<0xFF800000> : vector<8xf32>
    %79 = vector.multi_reduction <maximumf>, %78, %cst_33 [1] : vector<8x8xf32> to vector<8xf32>
    %80 = vector.shape_cast %79 : vector<8xf32> to vector<8x1xf32>
    %81 = vector.broadcast %80 : vector<8x1xf32> to vector<8x8xf32>
    %82 = arith.subf %78, %81 : vector<8x8xf32>
    %83 = math.exp %82 : vector<8x8xf32>
    %cst_34 = arith.constant dense<0.000000e+00> : vector<8xf32>
    %84 = vector.multi_reduction <add>, %83, %cst_34 [1] : vector<8x8xf32> to vector<8xf32>
    %85 = vector.shape_cast %84 : vector<8xf32> to vector<8x1xf32>
    %86 = tpu.reciprocal %85 {approx = true} : vector<8x1xf32> -> vector<8x1xf32>
    %87 = vector.broadcast %86 : vector<8x1xf32> to vector<8x8xf32>
    %88 = arith.mulf %83, %87 : vector<8x8xf32>
    %cst_35 = arith.constant dense<0.000000e+00> : vector<8x8xf32>
    %89 = tpu.matmul %88, %69, %cst_35 {dimension_numbers = #tpu.dot_dimension_numbers<[1], [0], [0], [1], [0, 0, 1, 1], [], []>} : vector<8x8xf32>, vector<8x8xf32>, vector<8x8xf32> -> vector<8x8xf32>
    %90 = vector.extract_strided_slice %39 {offsets = [8, 0], sizes = [8, 32], strides = [1, 1]} : vector<32x32xf32> to vector<8x32xf32>
    %cst_36 = arith.constant dense<0.000000e+00> : vector<8x32xf32>
    %91 = tpu.matmul %89, %90, %cst_36 {dimension_numbers = #tpu.dot_dimension_numbers<[1], [0], [0], [1], [0, 0, 1, 1], [], []>} : vector<8x8xf32>, vector<8x32xf32>, vector<8x32xf32> -> vector<8x32xf32>
    %92 = arith.addf %66, %91 : vector<8x32xf32>
    %93 = vector.extract_strided_slice %36 {offsets = [0, 16], sizes = [8, 8], strides = [1, 1]} : vector<8x32xf32> to vector<8x8xf32>
    %94 = vector.extract_strided_slice %37 {offsets = [0, 16], sizes = [8, 8], strides = [1, 1]} : vector<8x32xf32> to vector<8x8xf32>
    %95 = vector.extract_strided_slice %38 {offsets = [0, 16], sizes = [8, 8], strides = [1, 1]} : vector<8x32xf32> to vector<8x8xf32>
    %cst_37 = arith.constant dense<0.000000e+00> : vector<8x8xf32>
    %96 = tpu.matmul %93, %94, %cst_37 {dimension_numbers = #tpu.dot_dimension_numbers<[1], [1], [0], [0], [0, 0, 1, 0], [], []>} : vector<8x8xf32>, vector<8x8xf32>, vector<8x8xf32> -> vector<8x8xf32>
    %cst_38 = arith.constant 0.353553385 : f32
    %97 = vector.broadcast %cst_38 : f32 to vector<8x8xf32>
    %98 = arith.mulf %96, %97 : vector<8x8xf32>
    %cst_39 = arith.constant 0.000000e+00 : f32
    %99 = vector.broadcast %cst_39 : f32 to vector<1x8xf32>
    %100 = arith.cmpf ogt, %3, %99 : vector<1x8xf32>
    %cst_40 = arith.constant -1.000000e+09 : f32
    %101 = vector.shape_cast %100 : vector<1x8xi1> to vector<1x8xi1>
    %102 = vector.broadcast %101 : vector<1x8xi1> to vector<8x8xi1>
    %103 = vector.broadcast %cst_40 : f32 to vector<8x8xf32>
    %104 = arith.select %102, %98, %103 : vector<8x8xi1>, vector<8x8xf32>
    %cst_41 = arith.constant dense<0xFF800000> : vector<8xf32>
    %105 = vector.multi_reduction <maximumf>, %104, %cst_41 [1] : vector<8x8xf32> to vector<8xf32>
    %106 = vector.shape_cast %105 : vector<8xf32> to vector<8x1xf32>
    %107 = vector.broadcast %106 : vector<8x1xf32> to vector<8x8xf32>
    %108 = arith.subf %104, %107 : vector<8x8xf32>
    %109 = math.exp %108 : vector<8x8xf32>
    %cst_42 = arith.constant dense<0.000000e+00> : vector<8xf32>
    %110 = vector.multi_reduction <add>, %109, %cst_42 [1] : vector<8x8xf32> to vector<8xf32>
    %111 = vector.shape_cast %110 : vector<8xf32> to vector<8x1xf32>
    %112 = tpu.reciprocal %111 {approx = true} : vector<8x1xf32> -> vector<8x1xf32>
    %113 = vector.broadcast %112 : vector<8x1xf32> to vector<8x8xf32>
    %114 = arith.mulf %109, %113 : vector<8x8xf32>
    %cst_43 = arith.constant dense<0.000000e+00> : vector<8x8xf32>
    %115 = tpu.matmul %114, %95, %cst_43 {dimension_numbers = #tpu.dot_dimension_numbers<[1], [0], [0], [1], [0, 0, 1, 1], [], []>} : vector<8x8xf32>, vector<8x8xf32>, vector<8x8xf32> -> vector<8x8xf32>
    %116 = vector.extract_strided_slice %39 {offsets = [16, 0], sizes = [8, 32], strides = [1, 1]} : vector<32x32xf32> to vector<8x32xf32>
    %cst_44 = arith.constant dense<0.000000e+00> : vector<8x32xf32>
    %117 = tpu.matmul %115, %116, %cst_44 {dimension_numbers = #tpu.dot_dimension_numbers<[1], [0], [0], [1], [0, 0, 1, 1], [], []>} : vector<8x8xf32>, vector<8x32xf32>, vector<8x32xf32> -> vector<8x32xf32>
    %118 = arith.addf %92, %117 : vector<8x32xf32>
    %119 = vector.extract_strided_slice %36 {offsets = [0, 24], sizes = [8, 8], strides = [1, 1]} : vector<8x32xf32> to vector<8x8xf32>
    %120 = vector.extract_strided_slice %37 {offsets = [0, 24], sizes = [8, 8], strides = [1, 1]} : vector<8x32xf32> to vector<8x8xf32>
    %121 = vector.extract_strided_slice %38 {offsets = [0, 24], sizes = [8, 8], strides = [1, 1]} : vector<8x32xf32> to vector<8x8xf32>
    %cst_45 = arith.constant dense<0.000000e+00> : vector<8x8xf32>
    %122 = tpu.matmul %119, %120, %cst_45 {dimension_numbers = #tpu.dot_dimension_numbers<[1], [1], [0], [0], [0, 0, 1, 0], [], []>} : vector<8x8xf32>, vector<8x8xf32>, vector<8x8xf32> -> vector<8x8xf32>
    %cst_46 = arith.constant 0.353553385 : f32
    %123 = vector.broadcast %cst_46 : f32 to vector<8x8xf32>
    %124 = arith.mulf %122, %123 : vector<8x8xf32>
    %cst_47 = arith.constant 0.000000e+00 : f32
    %125 = vector.broadcast %cst_47 : f32 to vector<1x8xf32>
    %126 = arith.cmpf ogt, %3, %125 : vector<1x8xf32>
    %cst_48 = arith.constant -1.000000e+09 : f32
    %127 = vector.shape_cast %126 : vector<1x8xi1> to vector<1x8xi1>
    %128 = vector.broadcast %127 : vector<1x8xi1> to vector<8x8xi1>
    %129 = vector.broadcast %cst_48 : f32 to vector<8x8xf32>
    %130 = arith.select %128, %124, %129 : vector<8x8xi1>, vector<8x8xf32>
    %cst_49 = arith.constant dense<0xFF800000> : vector<8xf32>
    %131 = vector.multi_reduction <maximumf>, %130, %cst_49 [1] : vector<8x8xf32> to vector<8xf32>
    %132 = vector.shape_cast %131 : vector<8xf32> to vector<8x1xf32>
    %133 = vector.broadcast %132 : vector<8x1xf32> to vector<8x8xf32>
    %134 = arith.subf %130, %133 : vector<8x8xf32>
    %135 = math.exp %134 : vector<8x8xf32>
    %cst_50 = arith.constant dense<0.000000e+00> : vector<8xf32>
    %136 = vector.multi_reduction <add>, %135, %cst_50 [1] : vector<8x8xf32> to vector<8xf32>
    %137 = vector.shape_cast %136 : vector<8xf32> to vector<8x1xf32>
    %138 = tpu.reciprocal %137 {approx = true} : vector<8x1xf32> -> vector<8x1xf32>
    %139 = vector.broadcast %138 : vector<8x1xf32> to vector<8x8xf32>
    %140 = arith.mulf %135, %139 : vector<8x8xf32>
    %cst_51 = arith.constant dense<0.000000e+00> : vector<8x8xf32>
    %141 = tpu.matmul %140, %121, %cst_51 {dimension_numbers = #tpu.dot_dimension_numbers<[1], [0], [0], [1], [0, 0, 1, 1], [], []>} : vector<8x8xf32>, vector<8x8xf32>, vector<8x8xf32> -> vector<8x8xf32>
    %142 = vector.extract_strided_slice %39 {offsets = [24, 0], sizes = [8, 32], strides = [1, 1]} : vector<32x32xf32> to vector<8x32xf32>
    %cst_52 = arith.constant dense<0.000000e+00> : vector<8x32xf32>
    %143 = tpu.matmul %141, %142, %cst_52 {dimension_numbers = #tpu.dot_dimension_numbers<[1], [0], [0], [1], [0, 0, 1, 1], [], []>} : vector<8x8xf32>, vector<8x32xf32>, vector<8x32xf32> -> vector<8x32xf32>
    %144 = arith.addf %118, %143 : vector<8x32xf32>
    %145 = arith.addf %1, %144 : vector<8x32xf32>
    %c0_53 = arith.constant 0 : index
    %c0_54 = arith.constant 0 : index
    %146 = vector.load %arg8[%c0_53, %c0_54] : memref<1x32xf32, #tpu.memory_space<vmem>>, vector<1x32xf32>
    %147 = vector.broadcast %146 : vector<1x32xf32> to vector<8x32xf32>
    %148 = arith.addf %145, %147 : vector<8x32xf32>
    %c0_55 = arith.constant 0 : index
    %c0_56 = arith.constant 0 : index
    %149 = vector.load %arg9[%c0_55, %c0_56] : memref<1x32xf32, #tpu.memory_space<vmem>>, vector<1x32xf32>
    %c0_57 = arith.constant 0 : index
    %c0_58 = arith.constant 0 : index
    %150 = vector.load %arg10[%c0_57, %c0_58] : memref<1x32xf32, #tpu.memory_space<vmem>>, vector<1x32xf32>
    %cst_59 = arith.constant dense<0.000000e+00> : vector<8xf32>
    %151 = vector.multi_reduction <add>, %148, %cst_59 [1] : vector<8x32xf32> to vector<8xf32>
    %152 = vector.shape_cast %151 : vector<8xf32> to vector<8x1xf32>
    %cst_60 = arith.constant 3.200000e+01 : f32
    %153 = vector.broadcast %cst_60 : f32 to vector<8x1xf32>
    %154 = arith.divf %152, %153 : vector<8x1xf32>
    %155 = vector.broadcast %154 : vector<8x1xf32> to vector<8x32xf32>
    %156 = arith.subf %148, %155 : vector<8x32xf32>
    %157 = vector.broadcast %154 : vector<8x1xf32> to vector<8x32xf32>
    %158 = arith.subf %148, %157 : vector<8x32xf32>
    %159 = arith.mulf %156, %158 : vector<8x32xf32>
    %cst_61 = arith.constant dense<0.000000e+00> : vector<8xf32>
    %160 = vector.multi_reduction <add>, %159, %cst_61 [1] : vector<8x32xf32> to vector<8xf32>
    %161 = vector.shape_cast %160 : vector<8xf32> to vector<8x1xf32>
    %cst_62 = arith.constant 3.100000e+01 : f32
    %162 = vector.broadcast %cst_62 : f32 to vector<8x1xf32>
    %163 = arith.divf %161, %162 : vector<8x1xf32>
    %164 = math.sqrt %163 : vector<8x1xf32>
    %cst_63 = arith.constant 9.99999997E-7 : f32
    %165 = vector.broadcast %cst_63 : f32 to vector<8x1xf32>
    %166 = arith.addf %164, %165 : vector<8x1xf32>
    %167 = tpu.reciprocal %166 {approx = true} : vector<8x1xf32> -> vector<8x1xf32>
    %168 = vector.broadcast %154 : vector<8x1xf32> to vector<8x32xf32>
    %169 = arith.subf %148, %168 : vector<8x32xf32>
    %170 = vector.broadcast %149 : vector<1x32xf32> to vector<8x32xf32>
    %171 = arith.mulf %170, %169 : vector<8x32xf32>
    %172 = vector.broadcast %167 : vector<8x1xf32> to vector<8x32xf32>
    %173 = arith.mulf %171, %172 : vector<8x32xf32>
    %174 = vector.broadcast %150 : vector<1x32xf32> to vector<8x32xf32>
    %175 = arith.addf %173, %174 : vector<8x32xf32>
    %c0_64 = arith.constant 0 : index
    %c0_65 = arith.constant 0 : index
    %176 = vector.load %arg11[%c0_64, %c0_65] : memref<32x128xf32, #tpu.memory_space<vmem>>, vector<32x128xf32>
    %cst_66 = arith.constant dense<0.000000e+00> : vector<8x128xf32>
    %177 = tpu.matmul %175, %176, %cst_66 {dimension_numbers = #tpu.dot_dimension_numbers<[1], [0], [0], [1], [0, 0, 1, 1], [], []>} : vector<8x32xf32>, vector<32x128xf32>, vector<8x128xf32> -> vector<8x128xf32>
    %c0_67 = arith.constant 0 : index
    %c0_68 = arith.constant 0 : index
    %178 = vector.load %arg12[%c0_67, %c0_68] : memref<1x128xf32, #tpu.memory_space<vmem>>, vector<1x128xf32>
    %179 = vector.broadcast %178 : vector<1x128xf32> to vector<8x128xf32>
    %180 = arith.addf %177, %179 : vector<8x128xf32>
    %cst_69 = arith.constant 0.000000e+00 : f32
    %181 = vector.broadcast %cst_69 : f32 to vector<8x128xf32>
    %182 = arith.maximumf %180, %181 : vector<8x128xf32>
    %c0_70 = arith.constant 0 : index
    %c0_71 = arith.constant 0 : index
    %183 = vector.load %arg13[%c0_70, %c0_71] : memref<128x32xf32, #tpu.memory_space<vmem>>, vector<128x32xf32>
    %cst_72 = arith.constant dense<0.000000e+00> : vector<8x32xf32>
    %184 = tpu.matmul %182, %183, %cst_72 {dimension_numbers = #tpu.dot_dimension_numbers<[1], [0], [0], [1], [0, 0, 1, 1], [], []>} : vector<8x128xf32>, vector<128x32xf32>, vector<8x32xf32> -> vector<8x32xf32>
    %185 = arith.addf %148, %184 : vector<8x32xf32>
    %c0_73 = arith.constant 0 : index
    %c0_74 = arith.constant 0 : index
    %186 = vector.load %arg14[%c0_73, %c0_74] : memref<1x32xf32, #tpu.memory_space<vmem>>, vector<1x32xf32>
    %187 = vector.broadcast %186 : vector<1x32xf32> to vector<8x32xf32>
    %188 = arith.addf %185, %187 : vector<8x32xf32>
    %c0_75 = arith.constant 0 : index
    %c0_76 = arith.constant 0 : index
    %c0_77 = arith.constant 0 : index
    %189 = vector.load %arg15[%c0_75, %c0_76, %c0_77] : memref<1x8x32xf32, #tpu.memory_space<vmem>>, vector<1x8x32xf32>
    %190 = vector.shape_cast %189 : vector<1x8x32xf32> to vector<8x32xf32>
    %191 = vector.shape_cast %188 : vector<8x32xf32> to vector<1x8x32xf32>
    tpu.vector_store %arg15[%c0_75, %c0_76, %c0_77], %191 {strides = array<i32>} : memref<1x8x32xf32, #tpu.memory_space<vmem>>, vector<1x8x32xf32>,
    return
  }
  func.func @transform_0(%arg0: i32) -> (i32, i32, i32) {
    %c0_i32 = arith.constant 0 : i32
    %c0_i32_0 = arith.constant 0 : i32
    %c0_i32_1 = arith.constant 0 : i32
    return %arg0, %c0_i32, %c0_i32_0 : i32, i32, i32
  }
  func.func @transform_1(%arg0: i32) -> (i32, i32, i32) {
    %c0_i32 = arith.constant 0 : i32
    %c0_i32_0 = arith.constant 0 : i32
    %c0_i32_1 = arith.constant 0 : i32
    return %arg0, %c0_i32, %c0_i32_0 : i32, i32, i32
  }
  func.func @transform_2(%arg0: i32) -> (i32, i32) {
    %c0_i32 = arith.constant 0 : i32
    %c0_i32_0 = arith.constant 0 : i32
    %c0_i32_1 = arith.constant 0 : i32
    return %c0_i32, %c0_i32_0 : i32, i32
  }
  func.func @transform_3(%arg0: i32) -> (i32, i32) {
    %c0_i32 = arith.constant 0 : i32
    %c0_i32_0 = arith.constant 0 : i32
    %c0_i32_1 = arith.constant 0 : i32
    return %c0_i32, %c0_i32_0 : i32, i32
  }
  func.func @transform_4(%arg0: i32) -> (i32, i32) {
    %c0_i32 = arith.constant 0 : i32
    %c0_i32_0 = arith.constant 0 : i32
    %c0_i32_1 = arith.constant 0 : i32
    return %c0_i32, %c0_i32_0 : i32, i32
  }
  func.func @transform_5(%arg0: i32) -> (i32, i32) {
    %c0_i32 = arith.constant 0 : i32
    %c0_i32_0 = arith.constant 0 : i32
    %c0_i32_1 = arith.constant 0 : i32
    return %c0_i32, %c0_i32_0 : i32, i32
  }
  func.func @transform_6(%arg0: i32) -> (i32, i32) {
    %c0_i32 = arith.constant 0 : i32
    %c0_i32_0 = arith.constant 0 : i32
    %c0_i32_1 = arith.constant 0 : i32
    return %c0_i32, %c0_i32_0 : i32, i32
  }
  func.func @transform_7(%arg0: i32) -> (i32, i32) {
    %c0_i32 = arith.constant 0 : i32
    %c0_i32_0 = arith.constant 0 : i32
    %c0_i32_1 = arith.constant 0 : i32
    return %c0_i32, %c0_i32_0 : i32, i32
  }
  func.func @transform_8(%arg0: i32) -> (i32, i32) {
    %c0_i32 = arith.constant 0 : i32
    %c0_i32_0 = arith.constant 0 : i32
    %c0_i32_1 = arith.constant 0 : i32
    return %c0_i32, %c0_i32_0 : i32, i32
  }
  func.func @transform_9(%arg0: i32) -> (i32, i32) {
    %c0_i32 = arith.constant 0 : i32
    %c0_i32_0 = arith.constant 0 : i32
    %c0_i32_1 = arith.constant 0 : i32
    return %c0_i32, %c0_i32_0 : i32, i32
  }
  func.func @transform_10(%arg0: i32) -> (i32, i32) {
    %c0_i32 = arith.constant 0 : i32
    %c0_i32_0 = arith.constant 0 : i32
    %c0_i32_1 = arith.constant 0 : i32
    return %c0_i32, %c0_i32_0 : i32, i32
  }
  func.func @transform_11(%arg0: i32) -> (i32, i32) {
    %c0_i32 = arith.constant 0 : i32
    %c0_i32_0 = arith.constant 0 : i32
    %c0_i32_1 = arith.constant 0 : i32
    return %c0_i32, %c0_i32_0 : i32, i32
  }
  func.func @transform_12(%arg0: i32) -> (i32, i32) {
    %c0_i32 = arith.constant 0 : i32
    %c0_i32_0 = arith.constant 0 : i32
    %c0_i32_1 = arith.constant 0 : i32
    return %c0_i32, %c0_i32_0 : i32, i32
  }
  func.func @transform_13(%arg0: i32) -> (i32, i32) {
    %c0_i32 = arith.constant 0 : i32
    %c0_i32_0 = arith.constant 0 : i32
    %c0_i32_1 = arith.constant 0 : i32
    return %c0_i32, %c0_i32_0 : i32, i32
  }
  func.func @transform_14(%arg0: i32) -> (i32, i32, i32) {
    %c0_i32 = arith.constant 0 : i32
    %c0_i32_0 = arith.constant 0 : i32
    %c0_i32_1 = arith.constant 0 : i32
    return %arg0, %c0_i32, %c0_i32_0 : i32, i32, i32
  }
}

module attributes {stable_mosaic.version = 11 : i64} {
  func.func @_linear_kernel(%arg0: i32, %arg1: memref<16x4xf32, #tpu.memory_space<vmem>>, %arg2: memref<4x32xf32, #tpu.memory_space<vmem>>, %arg3: memref<1x32xf32, #tpu.memory_space<vmem>>, %arg4: memref<16x32xf32, #tpu.memory_space<vmem>>) attributes {dimension_semantics = [#tpu.dimension_semantics<arbitrary>], iteration_bounds = array<i64: 1>, scalar_prefetch = 0 : i64, scratch_operands = 0 : i64, tpu.core_type = #tpu.core_type<tc>, window_params = [{pipeline_mode = #tpu.pipeline_mode<synchronous>, transform_indices = @transform_0, window_bounds = array<i64: 16, 4>}, {pipeline_mode = #tpu.pipeline_mode<synchronous>, transform_indices = @transform_1, window_bounds = array<i64: 4, 32>}, {pipeline_mode = #tpu.pipeline_mode<synchronous>, transform_indices = @transform_2, window_bounds = array<i64: 1, 32>}, {pipeline_mode = #tpu.pipeline_mode<synchronous>, transform_indices = @transform_3, window_bounds = array<i64: 16, 32>}]} {
    %c0 = arith.constant 0 : index
    %c0_0 = arith.constant 0 : index
    %0 = vector.load %arg1[%c0, %c0_0] : memref<16x4xf32, #tpu.memory_space<vmem>>, vector<16x4xf32>
    %c0_1 = arith.constant 0 : index
    %c0_2 = arith.constant 0 : index
    %1 = vector.load %arg2[%c0_1, %c0_2] : memref<4x32xf32, #tpu.memory_space<vmem>>, vector<4x32xf32>
    %cst = arith.constant dense<0.000000e+00> : vector<16x32xf32>
    %2 = tpu.matmul %0, %1, %cst {dimension_numbers = #tpu.dot_dimension_numbers<[1], [0], [0], [1], [0, 0, 1, 1], [], []>} : vector<16x4xf32>, vector<4x32xf32>, vector<16x32xf32> -> vector<16x32xf32>
    %c0_3 = arith.constant 0 : index
    %c0_4 = arith.constant 0 : index
    %3 = vector.load %arg3[%c0_3, %c0_4] : memref<1x32xf32, #tpu.memory_space<vmem>>, vector<1x32xf32>
    %4 = vector.broadcast %3 : vector<1x32xf32> to vector<16x32xf32>
    %5 = arith.addf %2, %4 : vector<16x32xf32>
    %c0_5 = arith.constant 0 : index
    %c0_6 = arith.constant 0 : index
    %6 = vector.load %arg4[%c0_5, %c0_6] : memref<16x32xf32, #tpu.memory_space<vmem>>, vector<16x32xf32>
    tpu.vector_store %arg4[%c0_5, %c0_6], %5 {strides = array<i32>} : memref<16x32xf32, #tpu.memory_space<vmem>>, vector<16x32xf32>,
    return
  }
  func.func @transform_0(%arg0: i32) -> (i32, i32) {
    %c0_i32 = arith.constant 0 : i32
    %c0_i32_0 = arith.constant 0 : i32
    %c0_i32_1 = arith.constant 0 : i32
    return %c0_i32, %c0_i32_0 : i32, i32
  }
  func.func @transform_1(%arg0: i32) -> (i32, i32) {
    %c0_i32 = arith.constant 0 : i32
    %c0_i32_0 = arith.constant 0 : i32
    %c0_i32_1 = arith.constant 0 : i32
    return %c0_i32, %c0_i32_0 : i32, i32
  }
  func.func @transform_2(%arg0: i32) -> (i32, i32) {
    %c0_i32 = arith.constant 0 : i32
    %c0_i32_0 = arith.constant 0 : i32
    %c0_i32_1 = arith.constant 0 : i32
    return %c0_i32, %c0_i32_0 : i32, i32
  }
  func.func @transform_3(%arg0: i32) -> (i32, i32) {
    %c0_i32 = arith.constant 0 : i32
    %c0_i32_0 = arith.constant 0 : i32
    %c0_i32_1 = arith.constant 0 : i32
    return %c0_i32, %c0_i32_0 : i32, i32
  }
}

module attributes {stable_mosaic.version = 11 : i64} {
  func.func @_decoder_layer_kernel(%arg0: i32, %arg1: memref<1x8x32xf32, #tpu.memory_space<vmem>>, %arg2: memref<1x8x32xf32, #tpu.memory_space<vmem>>, %arg3: memref<1x8x8xf32, #tpu.memory_space<vmem>>, %arg4: memref<1x1x8xf32, #tpu.memory_space<vmem>>, %arg5: memref<1x32xf32, #tpu.memory_space<vmem>>, %arg6: memref<1x32xf32, #tpu.memory_space<vmem>>, %arg7: memref<32x96xf32, #tpu.memory_space<vmem>>, %arg8: memref<1x96xf32, #tpu.memory_space<vmem>>, %arg9: memref<32x32xf32, #tpu.memory_space<vmem>>, %arg10: memref<1x32xf32, #tpu.memory_space<vmem>>, %arg11: memref<1x32xf32, #tpu.memory_space<vmem>>, %arg12: memref<1x32xf32, #tpu.memory_space<vmem>>, %arg13: memref<32x32xf32, #tpu.memory_space<vmem>>, %arg14: memref<1x32xf32, #tpu.memory_space<vmem>>, %arg15: memref<32x64xf32, #tpu.memory_space<vmem>>, %arg16: memref<1x64xf32, #tpu.memory_space<vmem>>, %arg17: memref<32x32xf32, #tpu.memory_space<vmem>>, %arg18: memref<1x32xf32, #tpu.memory_space<vmem>>, %arg19: memref<1x32xf32, #tpu.memory_space<vmem>>, %arg20: memref<1x32xf32, #tpu.memory_space<vmem>>, %arg21: memref<32x128xf32, #tpu.memory_space<vmem>>, %arg22: memref<1x128xf32, #tpu.memory_space<vmem>>, %arg23: memref<128x32xf32, #tpu.memory_space<vmem>>, %arg24: memref<1x32xf32, #tpu.memory_space<vmem>>, %arg25: memref<1x8x32xf32, #tpu.memory_space<vmem>>) attributes {dimension_semantics = [#tpu.dimension_semantics<parallel>], iteration_bounds = array<i64: 2>, scalar_prefetch = 0 : i64, scratch_operands = 0 : i64, tpu.core_type = #tpu.core_type<tc>, window_params = [{transform_indices = @transform_0, window_bounds = array<i64: 1, 8, 32>}, {transform_indices = @transform_1, window_bounds = array<i64: 1, 8, 32>}, {transform_indices = @transform_2, window_bounds = array<i64: 1, 8, 8>}, {transform_indices = @transform_3, window_bounds = array<i64: 1, 1, 8>}, {pipeline_mode = #tpu.pipeline_mode<synchronous>, transform_indices = @transform_4, window_bounds = array<i64: 1, 32>}, {pipeline_mode = #tpu.pipeline_mode<synchronous>, transform_indices = @transform_5, window_bounds = array<i64: 1, 32>}, {pipeline_mode = #tpu.pipeline_mode<synchronous>, transform_indices = @transform_6, window_bounds = array<i64: 32, 96>}, {pipeline_mode = #tpu.pipeline_mode<synchronous>, transform_indices = @transform_7, window_bounds = array<i64: 1, 96>}, {pipeline_mode = #tpu.pipeline_mode<synchronous>, transform_indices = @transform_8, window_bounds = array<i64: 32, 32>}, {pipeline_mode = #tpu.pipeline_mode<synchronous>, transform_indices = @transform_9, window_bounds = array<i64: 1, 32>}, {pipeline_mode = #tpu.pipeline_mode<synchronous>, transform_indices = @transform_10, window_bounds = array<i64: 1, 32>}, {pipeline_mode = #tpu.pipeline_mode<synchronous>, transform_indices = @transform_11, window_bounds = array<i64: 1, 32>}, {pipeline_mode = #tpu.pipeline_mode<synchronous>, transform_indices = @transform_12, window_bounds = array<i64: 32, 32>}, {pipeline_mode = #tpu.pipeline_mode<synchronous>, transform_indices = @transform_13, window_bounds = array<i64: 1, 32>}, {pipeline_mode = #tpu.pipeline_mode<synchronous>, transform_indices = @transform_14, window_bounds = array<i64: 32, 64>}, {pipeline_mode = #tpu.pipeline_mode<synchronous>, transform_indices = @transform_15, window_bounds = array<i64: 1, 64>}, {pipeline_mode = #tpu.pipeline_mode<synchronous>, transform_indices = @transform_16, window_bounds = array<i64: 32, 32>}, {pipeline_mode = #tpu.pipeline_mode<synchronous>, transform_indices = @transform_17, window_bounds = array<i64: 1, 32>}, {pipeline_mode = #tpu.pipeline_mode<synchronous>, transform_indices = @transform_18, window_bounds = array<i64: 1, 32>}, {pipeline_mode = #tpu.pipeline_mode<synchronous>, transform_indices = @transform_19, window_bounds = array<i64: 1, 32>}, {pipeline_mode = #tpu.pipeline_mode<synchronous>, transform_indices = @transform_20, window_bounds = array<i64: 32, 128>}, {pipeline_mode = #tpu.pipeline_mode<synchronous>, transform_indices = @transform_21, window_bounds = array<i64: 1, 128>}, {pipeline_mode = #tpu.pipeline_mode<synchronous>, transform_indices = @transform_22, window_bounds = array<i64: 128, 32>}, {pipeline_mode = #tpu.pipeline_mode<synchronous>, transform_indices = @transform_23, window_bounds = array<i64: 1, 32>}, {transform_indices = @transform_24, window_bounds = array<i64: 1, 8, 32>}]} {
    %c0 = arith.constant 0 : index
    %c0_0 = arith.constant 0 : index
    %c0_1 = arith.constant 0 : index
    %0 = vector.load %arg1[%c0, %c0_0, %c0_1] : memref<1x8x32xf32, #tpu.memory_space<vmem>>, vector<1x8x32xf32>
    %1 = vector.shape_cast %0 : vector<1x8x32xf32> to vector<8x32xf32>
    %c0_2 = arith.constant 0 : index
    %c0_3 = arith.constant 0 : index
    %c0_4 = arith.constant 0 : index
    %2 = vector.load %arg2[%c0_2, %c0_3, %c0_4] : memref<1x8x32xf32, #tpu.memory_space<vmem>>, vector<1x8x32xf32>
    %3 = vector.shape_cast %2 : vector<1x8x32xf32> to vector<8x32xf32>
    %c0_5 = arith.constant 0 : index
    %c0_6 = arith.constant 0 : index
    %c0_7 = arith.constant 0 : index
    %4 = vector.load %arg3[%c0_5, %c0_6, %c0_7] : memref<1x8x8xf32, #tpu.memory_space<vmem>>, vector<1x8x8xf32>
    %5 = vector.shape_cast %4 : vector<1x8x8xf32> to vector<8x8xf32>
    %c0_8 = arith.constant 0 : index
    %c0_9 = arith.constant 0 : index
    %c0_10 = arith.constant 0 : index
    %6 = vector.load %arg4[%c0_8, %c0_9, %c0_10] : memref<1x1x8xf32, #tpu.memory_space<vmem>>, vector<1x1x8xf32>
    %7 = vector.shape_cast %6 : vector<1x1x8xf32> to vector<1x8xf32>
    %c0_11 = arith.constant 0 : index
    %c0_12 = arith.constant 0 : index
    %8 = vector.load %arg5[%c0_11, %c0_12] : memref<1x32xf32, #tpu.memory_space<vmem>>, vector<1x32xf32>
    %c0_13 = arith.constant 0 : index
    %c0_14 = arith.constant 0 : index
    %9 = vector.load %arg6[%c0_13, %c0_14] : memref<1x32xf32, #tpu.memory_space<vmem>>, vector<1x32xf32>
    %cst = arith.constant dense<0.000000e+00> : vector<8xf32>
    %10 = vector.multi_reduction <add>, %1, %cst [1] : vector<8x32xf32> to vector<8xf32>
    %11 = vector.shape_cast %10 : vector<8xf32> to vector<8x1xf32>
    %cst_15 = arith.constant 3.200000e+01 : f32
    %12 = vector.broadcast %cst_15 : f32 to vector<8x1xf32>
    %13 = arith.divf %11, %12 : vector<8x1xf32>
    %14 = vector.broadcast %13 : vector<8x1xf32> to vector<8x32xf32>
    %15 = arith.subf %1, %14 : vector<8x32xf32>
    %16 = vector.broadcast %13 : vector<8x1xf32> to vector<8x32xf32>
    %17 = arith.subf %1, %16 : vector<8x32xf32>
    %18 = arith.mulf %15, %17 : vector<8x32xf32>
    %cst_16 = arith.constant dense<0.000000e+00> : vector<8xf32>
    %19 = vector.multi_reduction <add>, %18, %cst_16 [1] : vector<8x32xf32> to vector<8xf32>
    %20 = vector.shape_cast %19 : vector<8xf32> to vector<8x1xf32>
    %cst_17 = arith.constant 3.100000e+01 : f32
    %21 = vector.broadcast %cst_17 : f32 to vector<8x1xf32>
    %22 = arith.divf %20, %21 : vector<8x1xf32>
    %23 = math.sqrt %22 : vector<8x1xf32>
    %cst_18 = arith.constant 9.99999997E-7 : f32
    %24 = vector.broadcast %cst_18 : f32 to vector<8x1xf32>
    %25 = arith.addf %23, %24 : vector<8x1xf32>
    %26 = tpu.reciprocal %25 {approx = true} : vector<8x1xf32> -> vector<8x1xf32>
    %27 = vector.broadcast %13 : vector<8x1xf32> to vector<8x32xf32>
    %28 = arith.subf %1, %27 : vector<8x32xf32>
    %29 = vector.broadcast %8 : vector<1x32xf32> to vector<8x32xf32>
    %30 = arith.mulf %29, %28 : vector<8x32xf32>
    %31 = vector.broadcast %26 : vector<8x1xf32> to vector<8x32xf32>
    %32 = arith.mulf %30, %31 : vector<8x32xf32>
    %33 = vector.broadcast %9 : vector<1x32xf32> to vector<8x32xf32>
    %34 = arith.addf %32, %33 : vector<8x32xf32>
    %c0_19 = arith.constant 0 : index
    %c0_20 = arith.constant 0 : index
    %35 = vector.load %arg7[%c0_19, %c0_20] : memref<32x96xf32, #tpu.memory_space<vmem>>, vector<32x96xf32>
    %cst_21 = arith.constant dense<0.000000e+00> : vector<8x96xf32>
    %36 = tpu.matmul %34, %35, %cst_21 {dimension_numbers = #tpu.dot_dimension_numbers<[1], [0], [0], [1], [0, 0, 1, 1], [], []>} : vector<8x32xf32>, vector<32x96xf32>, vector<8x96xf32> -> vector<8x96xf32>
    %c0_22 = arith.constant 0 : index
    %c0_23 = arith.constant 0 : index
    %37 = vector.load %arg8[%c0_22, %c0_23] : memref<1x96xf32, #tpu.memory_space<vmem>>, vector<1x96xf32>
    %38 = vector.broadcast %37 : vector<1x96xf32> to vector<8x96xf32>
    %39 = arith.addf %36, %38 : vector<8x96xf32>
    %40 = vector.extract_strided_slice %39 {offsets = [0, 0], sizes = [8, 32], strides = [1, 1]} : vector<8x96xf32> to vector<8x32xf32>
    %41 = vector.extract_strided_slice %39 {offsets = [0, 32], sizes = [8, 32], strides = [1, 1]} : vector<8x96xf32> to vector<8x32xf32>
    %42 = vector.extract_strided_slice %39 {offsets = [0, 64], sizes = [8, 32], strides = [1, 1]} : vector<8x96xf32> to vector<8x32xf32>
    %c0_24 = arith.constant 0 : index
    %c0_25 = arith.constant 0 : index
    %43 = vector.load %arg9[%c0_24, %c0_25] : memref<32x32xf32, #tpu.memory_space<vmem>>, vector<32x32xf32>
    %cst_26 = arith.constant 0.000000e+00 : f32
    %44 = vector.broadcast %cst_26 : f32 to vector<8x32xf32>
    %45 = vector.extract_strided_slice %40 {offsets = [0, 0], sizes = [8, 8], strides = [1, 1]} : vector<8x32xf32> to vector<8x8xf32>
    %46 = vector.extract_strided_slice %41 {offsets = [0, 0], sizes = [8, 8], strides = [1, 1]} : vector<8x32xf32> to vector<8x8xf32>
    %47 = vector.extract_strided_slice %42 {offsets = [0, 0], sizes = [8, 8], strides = [1, 1]} : vector<8x32xf32> to vector<8x8xf32>
    %cst_27 = arith.constant dense<0.000000e+00> : vector<8x8xf32>
    %48 = tpu.matmul %45, %46, %cst_27 {dimension_numbers = #tpu.dot_dimension_numbers<[1], [1], [0], [0], [0, 0, 1, 0], [], []>} : vector<8x8xf32>, vector<8x8xf32>, vector<8x8xf32> -> vector<8x8xf32>
    %cst_28 = arith.constant 0.353553385 : f32
    %49 = vector.broadcast %cst_28 : f32 to vector<8x8xf32>
    %50 = arith.mulf %48, %49 : vector<8x8xf32>
    %cst_29 = arith.constant 0.000000e+00 : f32
    %51 = vector.broadcast %cst_29 : f32 to vector<8x8xf32>
    %52 = arith.cmpf ogt, %5, %51 : vector<8x8xf32>
    %cst_30 = arith.constant -1.000000e+09 : f32
    %53 = vector.broadcast %cst_30 : f32 to vector<8x8xf32>
    %54 = arith.select %52, %50, %53 : vector<8x8xi1>, vector<8x8xf32>
    %cst_31 = arith.constant dense<0xFF800000> : vector<8xf32>
    %55 = vector.multi_reduction <maximumf>, %54, %cst_31 [1] : vector<8x8xf32> to vector<8xf32>
    %56 = vector.shape_cast %55 : vector<8xf32> to vector<8x1xf32>
    %57 = vector.broadcast %56 : vector<8x1xf32> to vector<8x8xf32>
    %58 = arith.subf %54, %57 : vector<8x8xf32>
    %59 = math.exp %58 : vector<8x8xf32>
    %cst_32 = arith.constant dense<0.000000e+00> : vector<8xf32>
    %60 = vector.multi_reduction <add>, %59, %cst_32 [1] : vector<8x8xf32> to vector<8xf32>
    %61 = vector.shape_cast %60 : vector<8xf32> to vector<8x1xf32>
    %62 = tpu.reciprocal %61 {approx = true} : vector<8x1xf32> -> vector<8x1xf32>
    %63 = vector.broadcast %62 : vector<8x1xf32> to vector<8x8xf32>
    %64 = arith.mulf %59, %63 : vector<8x8xf32>
    %cst_33 = arith.constant dense<0.000000e+00> : vector<8x8xf32>
    %65 = tpu.matmul %64, %47, %cst_33 {dimension_numbers = #tpu.dot_dimension_numbers<[1], [0], [0], [1], [0, 0, 1, 1], [], []>} : vector<8x8xf32>, vector<8x8xf32>, vector<8x8xf32> -> vector<8x8xf32>
    %66 = vector.extract_strided_slice %43 {offsets = [0, 0], sizes = [8, 32], strides = [1, 1]} : vector<32x32xf32> to vector<8x32xf32>
    %cst_34 = arith.constant dense<0.000000e+00> : vector<8x32xf32>
    %67 = tpu.matmul %65, %66, %cst_34 {dimension_numbers = #tpu.dot_dimension_numbers<[1], [0], [0], [1], [0, 0, 1, 1], [], []>} : vector<8x8xf32>, vector<8x32xf32>, vector<8x32xf32> -> vector<8x32xf32>
    %68 = arith.addf %44, %67 : vector<8x32xf32>
    %69 = vector.extract_strided_slice %40 {offsets = [0, 8], sizes = [8, 8], strides = [1, 1]} : vector<8x32xf32> to vector<8x8xf32>
    %70 = vector.extract_strided_slice %41 {offsets = [0, 8], sizes = [8, 8], strides = [1, 1]} : vector<8x32xf32> to vector<8x8xf32>
    %71 = vector.extract_strided_slice %42 {offsets = [0, 8], sizes = [8, 8], strides = [1, 1]} : vector<8x32xf32> to vector<8x8xf32>
    %cst_35 = arith.constant dense<0.000000e+00> : vector<8x8xf32>
    %72 = tpu.matmul %69, %70, %cst_35 {dimension_numbers = #tpu.dot_dimension_numbers<[1], [1], [0], [0], [0, 0, 1, 0], [], []>} : vector<8x8xf32>, vector<8x8xf32>, vector<8x8xf32> -> vector<8x8xf32>
    %cst_36 = arith.constant 0.353553385 : f32
    %73 = vector.broadcast %cst_36 : f32 to vector<8x8xf32>
    %74 = arith.mulf %72, %73 : vector<8x8xf32>
    %cst_37 = arith.constant 0.000000e+00 : f32
    %75 = vector.broadcast %cst_37 : f32 to vector<8x8xf32>
    %76 = arith.cmpf ogt, %5, %75 : vector<8x8xf32>
    %cst_38 = arith.constant -1.000000e+09 : f32
    %77 = vector.broadcast %cst_38 : f32 to vector<8x8xf32>
    %78 = arith.select %76, %74, %77 : vector<8x8xi1>, vector<8x8xf32>
    %cst_39 = arith.constant dense<0xFF800000> : vector<8xf32>
    %79 = vector.multi_reduction <maximumf>, %78, %cst_39 [1] : vector<8x8xf32> to vector<8xf32>
    %80 = vector.shape_cast %79 : vector<8xf32> to vector<8x1xf32>
    %81 = vector.broadcast %80 : vector<8x1xf32> to vector<8x8xf32>
    %82 = arith.subf %78, %81 : vector<8x8xf32>
    %83 = math.exp %82 : vector<8x8xf32>
    %cst_40 = arith.constant dense<0.000000e+00> : vector<8xf32>
    %84 = vector.multi_reduction <add>, %83, %cst_40 [1] : vector<8x8xf32> to vector<8xf32>
    %85 = vector.shape_cast %84 : vector<8xf32> to vector<8x1xf32>
    %86 = tpu.reciprocal %85 {approx = true} : vector<8x1xf32> -> vector<8x1xf32>
    %87 = vector.broadcast %86 : vector<8x1xf32> to vector<8x8xf32>
    %88 = arith.mulf %83, %87 : vector<8x8xf32>
    %cst_41 = arith.constant dense<0.000000e+00> : vector<8x8xf32>
    %89 = tpu.matmul %88, %71, %cst_41 {dimension_numbers = #tpu.dot_dimension_numbers<[1], [0], [0], [1], [0, 0, 1, 1], [], []>} : vector<8x8xf32>, vector<8x8xf32>, vector<8x8xf32> -> vector<8x8xf32>
    %90 = vector.extract_strided_slice %43 {offsets = [8, 0], sizes = [8, 32], strides = [1, 1]} : vector<32x32xf32> to vector<8x32xf32>
    %cst_42 = arith.constant dense<0.000000e+00> : vector<8x32xf32>
    %91 = tpu.matmul %89, %90, %cst_42 {dimension_numbers = #tpu.dot_dimension_numbers<[1], [0], [0], [1], [0, 0, 1, 1], [], []>} : vector<8x8xf32>, vector<8x32xf32>, vector<8x32xf32> -> vector<8x32xf32>
    %92 = arith.addf %68, %91 : vector<8x32xf32>
    %93 = vector.extract_strided_slice %40 {offsets = [0, 16], sizes = [8, 8], strides = [1, 1]} : vector<8x32xf32> to vector<8x8xf32>
    %94 = vector.extract_strided_slice %41 {offsets = [0, 16], sizes = [8, 8], strides = [1, 1]} : vector<8x32xf32> to vector<8x8xf32>
    %95 = vector.extract_strided_slice %42 {offsets = [0, 16], sizes = [8, 8], strides = [1, 1]} : vector<8x32xf32> to vector<8x8xf32>
    %cst_43 = arith.constant dense<0.000000e+00> : vector<8x8xf32>
    %96 = tpu.matmul %93, %94, %cst_43 {dimension_numbers = #tpu.dot_dimension_numbers<[1], [1], [0], [0], [0, 0, 1, 0], [], []>} : vector<8x8xf32>, vector<8x8xf32>, vector<8x8xf32> -> vector<8x8xf32>
    %cst_44 = arith.constant 0.353553385 : f32
    %97 = vector.broadcast %cst_44 : f32 to vector<8x8xf32>
    %98 = arith.mulf %96, %97 : vector<8x8xf32>
    %cst_45 = arith.constant 0.000000e+00 : f32
    %99 = vector.broadcast %cst_45 : f32 to vector<8x8xf32>
    %100 = arith.cmpf ogt, %5, %99 : vector<8x8xf32>
    %cst_46 = arith.constant -1.000000e+09 : f32
    %101 = vector.broadcast %cst_46 : f32 to vector<8x8xf32>
    %102 = arith.select %100, %98, %101 : vector<8x8xi1>, vector<8x8xf32>
    %cst_47 = arith.constant dense<0xFF800000> : vector<8xf32>
    %103 = vector.multi_reduction <maximumf>, %102, %cst_47 [1] : vector<8x8xf32> to vector<8xf32>
    %104 = vector.shape_cast %103 : vector<8xf32> to vector<8x1xf32>
    %105 = vector.broadcast %104 : vector<8x1xf32> to vector<8x8xf32>
    %106 = arith.subf %102, %105 : vector<8x8xf32>
    %107 = math.exp %106 : vector<8x8xf32>
    %cst_48 = arith.constant dense<0.000000e+00> : vector<8xf32>
    %108 = vector.multi_reduction <add>, %107, %cst_48 [1] : vector<8x8xf32> to vector<8xf32>
    %109 = vector.shape_cast %108 : vector<8xf32> to vector<8x1xf32>
    %110 = tpu.reciprocal %109 {approx = true} : vector<8x1xf32> -> vector<8x1xf32>
    %111 = vector.broadcast %110 : vector<8x1xf32> to vector<8x8xf32>
    %112 = arith.mulf %107, %111 : vector<8x8xf32>
    %cst_49 = arith.constant dense<0.000000e+00> : vector<8x8xf32>
    %113 = tpu.matmul %112, %95, %cst_49 {dimension_numbers = #tpu.dot_dimension_numbers<[1], [0], [0], [1], [0, 0, 1, 1], [], []>} : vector<8x8xf32>, vector<8x8xf32>, vector<8x8xf32> -> vector<8x8xf32>
    %114 = vector.extract_strided_slice %43 {offsets = [16, 0], sizes = [8, 32], strides = [1, 1]} : vector<32x32xf32> to vector<8x32xf32>
    %cst_50 = arith.constant dense<0.000000e+00> : vector<8x32xf32>
    %115 = tpu.matmul %113, %114, %cst_50 {dimension_numbers = #tpu.dot_dimension_numbers<[1], [0], [0], [1], [0, 0, 1, 1], [], []>} : vector<8x8xf32>, vector<8x32xf32>, vector<8x32xf32> -> vector<8x32xf32>
    %116 = arith.addf %92, %115 : vector<8x32xf32>
    %117 = vector.extract_strided_slice %40 {offsets = [0, 24], sizes = [8, 8], strides = [1, 1]} : vector<8x32xf32> to vector<8x8xf32>
    %118 = vector.extract_strided_slice %41 {offsets = [0, 24], sizes = [8, 8], strides = [1, 1]} : vector<8x32xf32> to vector<8x8xf32>
    %119 = vector.extract_strided_slice %42 {offsets = [0, 24], sizes = [8, 8], strides = [1, 1]} : vector<8x32xf32> to vector<8x8xf32>
    %cst_51 = arith.constant dense<0.000000e+00> : vector<8x8xf32>
    %120 = tpu.matmul %117, %118, %cst_51 {dimension_numbers = #tpu.dot_dimension_numbers<[1], [1], [0], [0], [0, 0, 1, 0], [], []>} : vector<8x8xf32>, vector<8x8xf32>, vector<8x8xf32> -> vector<8x8xf32>
    %cst_52 = arith.constant 0.353553385 : f32
    %121 = vector.broadcast %cst_52 : f32 to vector<8x8xf32>
    %122 = arith.mulf %120, %121 : vector<8x8xf32>
    %cst_53 = arith.constant 0.000000e+00 : f32
    %123 = vector.broadcast %cst_53 : f32 to vector<8x8xf32>
    %124 = arith.cmpf ogt, %5, %123 : vector<8x8xf32>
    %cst_54 = arith.constant -1.000000e+09 : f32
    %125 = vector.broadcast %cst_54 : f32 to vector<8x8xf32>
    %126 = arith.select %124, %122, %125 : vector<8x8xi1>, vector<8x8xf32>
    %cst_55 = arith.constant dense<0xFF800000> : vector<8xf32>
    %127 = vector.multi_reduction <maximumf>, %126, %cst_55 [1] : vector<8x8xf32> to vector<8xf32>
    %128 = vector.shape_cast %127 : vector<8xf32> to vector<8x1xf32>
    %129 = vector.broadcast %128 : vector<8x1xf32> to vector<8x8xf32>
    %130 = arith.subf %126, %129 : vector<8x8xf32>
    %131 = math.exp %130 : vector<8x8xf32>
    %cst_56 = arith.constant dense<0.000000e+00> : vector<8xf32>
    %132 = vector.multi_reduction <add>, %131, %cst_56 [1] : vector<8x8xf32> to vector<8xf32>
    %133 = vector.shape_cast %132 : vector<8xf32> to vector<8x1xf32>
    %134 = tpu.reciprocal %133 {approx = true} : vector<8x1xf32> -> vector<8x1xf32>
    %135 = vector.broadcast %134 : vector<8x1xf32> to vector<8x8xf32>
    %136 = arith.mulf %131, %135 : vector<8x8xf32>
    %cst_57 = arith.constant dense<0.000000e+00> : vector<8x8xf32>
    %137 = tpu.matmul %136, %119, %cst_57 {dimension_numbers = #tpu.dot_dimension_numbers<[1], [0], [0], [1], [0, 0, 1, 1], [], []>} : vector<8x8xf32>, vector<8x8xf32>, vector<8x8xf32> -> vector<8x8xf32>
    %138 = vector.extract_strided_slice %43 {offsets = [24, 0], sizes = [8, 32], strides = [1, 1]} : vector<32x32xf32> to vector<8x32xf32>
    %cst_58 = arith.constant dense<0.000000e+00> : vector<8x32xf32>
    %139 = tpu.matmul %137, %138, %cst_58 {dimension_numbers = #tpu.dot_dimension_numbers<[1], [0], [0], [1], [0, 0, 1, 1], [], []>} : vector<8x8xf32>, vector<8x32xf32>, vector<8x32xf32> -> vector<8x32xf32>
    %140 = arith.addf %116, %139 : vector<8x32xf32>
    %141 = arith.addf %1, %140 : vector<8x32xf32>
    %c0_59 = arith.constant 0 : index
    %c0_60 = arith.constant 0 : index
    %142 = vector.load %arg10[%c0_59, %c0_60] : memref<1x32xf32, #tpu.memory_space<vmem>>, vector<1x32xf32>
    %143 = vector.broadcast %142 : vector<1x32xf32> to vector<8x32xf32>
    %144 = arith.addf %141, %143 : vector<8x32xf32>
    %c0_61 = arith.constant 0 : index
    %c0_62 = arith.constant 0 : index
    %145 = vector.load %arg11[%c0_61, %c0_62] : memref<1x32xf32, #tpu.memory_space<vmem>>, vector<1x32xf32>
    %c0_63 = arith.constant 0 : index
    %c0_64 = arith.constant 0 : index
    %146 = vector.load %arg12[%c0_63, %c0_64] : memref<1x32xf32, #tpu.memory_space<vmem>>, vector<1x32xf32>
    %cst_65 = arith.constant dense<0.000000e+00> : vector<8xf32>
    %147 = vector.multi_reduction <add>, %144, %cst_65 [1] : vector<8x32xf32> to vector<8xf32>
    %148 = vector.shape_cast %147 : vector<8xf32> to vector<8x1xf32>
    %cst_66 = arith.constant 3.200000e+01 : f32
    %149 = vector.broadcast %cst_66 : f32 to vector<8x1xf32>
    %150 = arith.divf %148, %149 : vector<8x1xf32>
    %151 = vector.broadcast %150 : vector<8x1xf32> to vector<8x32xf32>
    %152 = arith.subf %144, %151 : vector<8x32xf32>
    %153 = vector.broadcast %150 : vector<8x1xf32> to vector<8x32xf32>
    %154 = arith.subf %144, %153 : vector<8x32xf32>
    %155 = arith.mulf %152, %154 : vector<8x32xf32>
    %cst_67 = arith.constant dense<0.000000e+00> : vector<8xf32>
    %156 = vector.multi_reduction <add>, %155, %cst_67 [1] : vector<8x32xf32> to vector<8xf32>
    %157 = vector.shape_cast %156 : vector<8xf32> to vector<8x1xf32>
    %cst_68 = arith.constant 3.100000e+01 : f32
    %158 = vector.broadcast %cst_68 : f32 to vector<8x1xf32>
    %159 = arith.divf %157, %158 : vector<8x1xf32>
    %160 = math.sqrt %159 : vector<8x1xf32>
    %cst_69 = arith.constant 9.99999997E-7 : f32
    %161 = vector.broadcast %cst_69 : f32 to vector<8x1xf32>
    %162 = arith.addf %160, %161 : vector<8x1xf32>
    %163 = tpu.reciprocal %162 {approx = true} : vector<8x1xf32> -> vector<8x1xf32>
    %164 = vector.broadcast %150 : vector<8x1xf32> to vector<8x32xf32>
    %165 = arith.subf %144, %164 : vector<8x32xf32>
    %166 = vector.broadcast %145 : vector<1x32xf32> to vector<8x32xf32>
    %167 = arith.mulf %166, %165 : vector<8x32xf32>
    %168 = vector.broadcast %163 : vector<8x1xf32> to vector<8x32xf32>
    %169 = arith.mulf %167, %168 : vector<8x32xf32>
    %170 = vector.broadcast %146 : vector<1x32xf32> to vector<8x32xf32>
    %171 = arith.addf %169, %170 : vector<8x32xf32>
    %c0_70 = arith.constant 0 : index
    %c0_71 = arith.constant 0 : index
    %172 = vector.load %arg13[%c0_70, %c0_71] : memref<32x32xf32, #tpu.memory_space<vmem>>, vector<32x32xf32>
    %cst_72 = arith.constant dense<0.000000e+00> : vector<8x32xf32>
    %173 = tpu.matmul %171, %172, %cst_72 {dimension_numbers = #tpu.dot_dimension_numbers<[1], [0], [0], [1], [0, 0, 1, 1], [], []>} : vector<8x32xf32>, vector<32x32xf32>, vector<8x32xf32> -> vector<8x32xf32>
    %c0_73 = arith.constant 0 : index
    %c0_74 = arith.constant 0 : index
    %174 = vector.load %arg14[%c0_73, %c0_74] : memref<1x32xf32, #tpu.memory_space<vmem>>, vector<1x32xf32>
    %175 = vector.broadcast %174 : vector<1x32xf32> to vector<8x32xf32>
    %176 = arith.addf %173, %175 : vector<8x32xf32>
    %c0_75 = arith.constant 0 : index
    %c0_76 = arith.constant 0 : index
    %177 = vector.load %arg15[%c0_75, %c0_76] : memref<32x64xf32, #tpu.memory_space<vmem>>, vector<32x64xf32>
    %cst_77 = arith.constant dense<0.000000e+00> : vector<8x64xf32>
    %178 = tpu.matmul %3, %177, %cst_77 {dimension_numbers = #tpu.dot_dimension_numbers<[1], [0], [0], [1], [0, 0, 1, 1], [], []>} : vector<8x32xf32>, vector<32x64xf32>, vector<8x64xf32> -> vector<8x64xf32>
    %c0_78 = arith.constant 0 : index
    %c0_79 = arith.constant 0 : index
    %179 = vector.load %arg16[%c0_78, %c0_79] : memref<1x64xf32, #tpu.memory_space<vmem>>, vector<1x64xf32>
    %180 = vector.broadcast %179 : vector<1x64xf32> to vector<8x64xf32>
    %181 = arith.addf %178, %180 : vector<8x64xf32>
    %182 = vector.extract_strided_slice %181 {offsets = [0, 0], sizes = [8, 32], strides = [1, 1]} : vector<8x64xf32> to vector<8x32xf32>
    %183 = vector.extract_strided_slice %181 {offsets = [0, 32], sizes = [8, 32], strides = [1, 1]} : vector<8x64xf32> to vector<8x32xf32>
    %c0_80 = arith.constant 0 : index
    %c0_81 = arith.constant 0 : index
    %184 = vector.load %arg17[%c0_80, %c0_81] : memref<32x32xf32, #tpu.memory_space<vmem>>, vector<32x32xf32>
    %cst_82 = arith.constant 0.000000e+00 : f32
    %185 = vector.broadcast %cst_82 : f32 to vector<8x32xf32>
    %186 = vector.extract_strided_slice %176 {offsets = [0, 0], sizes = [8, 8], strides = [1, 1]} : vector<8x32xf32> to vector<8x8xf32>
    %187 = vector.extract_strided_slice %182 {offsets = [0, 0], sizes = [8, 8], strides = [1, 1]} : vector<8x32xf32> to vector<8x8xf32>
    %188 = vector.extract_strided_slice %183 {offsets = [0, 0], sizes = [8, 8], strides = [1, 1]} : vector<8x32xf32> to vector<8x8xf32>
    %cst_83 = arith.constant dense<0.000000e+00> : vector<8x8xf32>
    %189 = tpu.matmul %186, %187, %cst_83 {dimension_numbers = #tpu.dot_dimension_numbers<[1], [1], [0], [0], [0, 0, 1, 0], [], []>} : vector<8x8xf32>, vector<8x8xf32>, vector<8x8xf32> -> vector<8x8xf32>
    %cst_84 = arith.constant 0.353553385 : f32
    %190 = vector.broadcast %cst_84 : f32 to vector<8x8xf32>
    %191 = arith.mulf %189, %190 : vector<8x8xf32>
    %cst_85 = arith.constant 0.000000e+00 : f32
    %192 = vector.broadcast %cst_85 : f32 to vector<1x8xf32>
    %193 = arith.cmpf ogt, %7, %192 : vector<1x8xf32>
    %cst_86 = arith.constant -1.000000e+09 : f32
    %194 = vector.shape_cast %193 : vector<1x8xi1> to vector<1x8xi1>
    %195 = vector.broadcast %194 : vector<1x8xi1> to vector<8x8xi1>
    %196 = vector.broadcast %cst_86 : f32 to vector<8x8xf32>
    %197 = arith.select %195, %191, %196 : vector<8x8xi1>, vector<8x8xf32>
    %cst_87 = arith.constant dense<0xFF800000> : vector<8xf32>
    %198 = vector.multi_reduction <maximumf>, %197, %cst_87 [1] : vector<8x8xf32> to vector<8xf32>
    %199 = vector.shape_cast %198 : vector<8xf32> to vector<8x1xf32>
    %200 = vector.broadcast %199 : vector<8x1xf32> to vector<8x8xf32>
    %201 = arith.subf %197, %200 : vector<8x8xf32>
    %202 = math.exp %201 : vector<8x8xf32>
    %cst_88 = arith.constant dense<0.000000e+00> : vector<8xf32>
    %203 = vector.multi_reduction <add>, %202, %cst_88 [1] : vector<8x8xf32> to vector<8xf32>
    %204 = vector.shape_cast %203 : vector<8xf32> to vector<8x1xf32>
    %205 = tpu.reciprocal %204 {approx = true} : vector<8x1xf32> -> vector<8x1xf32>
    %206 = vector.broadcast %205 : vector<8x1xf32> to vector<8x8xf32>
    %207 = arith.mulf %202, %206 : vector<8x8xf32>
    %cst_89 = arith.constant dense<0.000000e+00> : vector<8x8xf32>
    %208 = tpu.matmul %207, %188, %cst_89 {dimension_numbers = #tpu.dot_dimension_numbers<[1], [0], [0], [1], [0, 0, 1, 1], [], []>} : vector<8x8xf32>, vector<8x8xf32>, vector<8x8xf32> -> vector<8x8xf32>
    %209 = vector.extract_strided_slice %184 {offsets = [0, 0], sizes = [8, 32], strides = [1, 1]} : vector<32x32xf32> to vector<8x32xf32>
    %cst_90 = arith.constant dense<0.000000e+00> : vector<8x32xf32>
    %210 = tpu.matmul %208, %209, %cst_90 {dimension_numbers = #tpu.dot_dimension_numbers<[1], [0], [0], [1], [0, 0, 1, 1], [], []>} : vector<8x8xf32>, vector<8x32xf32>, vector<8x32xf32> -> vector<8x32xf32>
    %211 = arith.addf %185, %210 : vector<8x32xf32>
    %212 = vector.extract_strided_slice %176 {offsets = [0, 8], sizes = [8, 8], strides = [1, 1]} : vector<8x32xf32> to vector<8x8xf32>
    %213 = vector.extract_strided_slice %182 {offsets = [0, 8], sizes = [8, 8], strides = [1, 1]} : vector<8x32xf32> to vector<8x8xf32>
    %214 = vector.extract_strided_slice %183 {offsets = [0, 8], sizes = [8, 8], strides = [1, 1]} : vector<8x32xf32> to vector<8x8xf32>
    %cst_91 = arith.constant dense<0.000000e+00> : vector<8x8xf32>
    %215 = tpu.matmul %212, %213, %cst_91 {dimension_numbers = #tpu.dot_dimension_numbers<[1], [1], [0], [0], [0, 0, 1, 0], [], []>} : vector<8x8xf32>, vector<8x8xf32>, vector<8x8xf32> -> vector<8x8xf32>
    %cst_92 = arith.constant 0.353553385 : f32
    %216 = vector.broadcast %cst_92 : f32 to vector<8x8xf32>
    %217 = arith.mulf %215, %216 : vector<8x8xf32>
    %cst_93 = arith.constant 0.000000e+00 : f32
    %218 = vector.broadcast %cst_93 : f32 to vector<1x8xf32>
    %219 = arith.cmpf ogt, %7, %218 : vector<1x8xf32>
    %cst_94 = arith.constant -1.000000e+09 : f32
    %220 = vector.shape_cast %219 : vector<1x8xi1> to vector<1x8xi1>
    %221 = vector.broadcast %220 : vector<1x8xi1> to vector<8x8xi1>
    %222 = vector.broadcast %cst_94 : f32 to vector<8x8xf32>
    %223 = arith.select %221, %217, %222 : vector<8x8xi1>, vector<8x8xf32>
    %cst_95 = arith.constant dense<0xFF800000> : vector<8xf32>
    %224 = vector.multi_reduction <maximumf>, %223, %cst_95 [1] : vector<8x8xf32> to vector<8xf32>
    %225 = vector.shape_cast %224 : vector<8xf32> to vector<8x1xf32>
    %226 = vector.broadcast %225 : vector<8x1xf32> to vector<8x8xf32>
    %227 = arith.subf %223, %226 : vector<8x8xf32>
    %228 = math.exp %227 : vector<8x8xf32>
    %cst_96 = arith.constant dense<0.000000e+00> : vector<8xf32>
    %229 = vector.multi_reduction <add>, %228, %cst_96 [1] : vector<8x8xf32> to vector<8xf32>
    %230 = vector.shape_cast %229 : vector<8xf32> to vector<8x1xf32>
    %231 = tpu.reciprocal %230 {approx = true} : vector<8x1xf32> -> vector<8x1xf32>
    %232 = vector.broadcast %231 : vector<8x1xf32> to vector<8x8xf32>
    %233 = arith.mulf %228, %232 : vector<8x8xf32>
    %cst_97 = arith.constant dense<0.000000e+00> : vector<8x8xf32>
    %234 = tpu.matmul %233, %214, %cst_97 {dimension_numbers = #tpu.dot_dimension_numbers<[1], [0], [0], [1], [0, 0, 1, 1], [], []>} : vector<8x8xf32>, vector<8x8xf32>, vector<8x8xf32> -> vector<8x8xf32>
    %235 = vector.extract_strided_slice %184 {offsets = [8, 0], sizes = [8, 32], strides = [1, 1]} : vector<32x32xf32> to vector<8x32xf32>
    %cst_98 = arith.constant dense<0.000000e+00> : vector<8x32xf32>
    %236 = tpu.matmul %234, %235, %cst_98 {dimension_numbers = #tpu.dot_dimension_numbers<[1], [0], [0], [1], [0, 0, 1, 1], [], []>} : vector<8x8xf32>, vector<8x32xf32>, vector<8x32xf32> -> vector<8x32xf32>
    %237 = arith.addf %211, %236 : vector<8x32xf32>
    %238 = vector.extract_strided_slice %176 {offsets = [0, 16], sizes = [8, 8], strides = [1, 1]} : vector<8x32xf32> to vector<8x8xf32>
    %239 = vector.extract_strided_slice %182 {offsets = [0, 16], sizes = [8, 8], strides = [1, 1]} : vector<8x32xf32> to vector<8x8xf32>
    %240 = vector.extract_strided_slice %183 {offsets = [0, 16], sizes = [8, 8], strides = [1, 1]} : vector<8x32xf32> to vector<8x8xf32>
    %cst_99 = arith.constant dense<0.000000e+00> : vector<8x8xf32>
    %241 = tpu.matmul %238, %239, %cst_99 {dimension_numbers = #tpu.dot_dimension_numbers<[1], [1], [0], [0], [0, 0, 1, 0], [], []>} : vector<8x8xf32>, vector<8x8xf32>, vector<8x8xf32> -> vector<8x8xf32>
    %cst_100 = arith.constant 0.353553385 : f32
    %242 = vector.broadcast %cst_100 : f32 to vector<8x8xf32>
    %243 = arith.mulf %241, %242 : vector<8x8xf32>
    %cst_101 = arith.constant 0.000000e+00 : f32
    %244 = vector.broadcast %cst_101 : f32 to vector<1x8xf32>
    %245 = arith.cmpf ogt, %7, %244 : vector<1x8xf32>
    %cst_102 = arith.constant -1.000000e+09 : f32
    %246 = vector.shape_cast %245 : vector<1x8xi1> to vector<1x8xi1>
    %247 = vector.broadcast %246 : vector<1x8xi1> to vector<8x8xi1>
    %248 = vector.broadcast %cst_102 : f32 to vector<8x8xf32>
    %249 = arith.select %247, %243, %248 : vector<8x8xi1>, vector<8x8xf32>
    %cst_103 = arith.constant dense<0xFF800000> : vector<8xf32>
    %250 = vector.multi_reduction <maximumf>, %249, %cst_103 [1] : vector<8x8xf32> to vector<8xf32>
    %251 = vector.shape_cast %250 : vector<8xf32> to vector<8x1xf32>
    %252 = vector.broadcast %251 : vector<8x1xf32> to vector<8x8xf32>
    %253 = arith.subf %249, %252 : vector<8x8xf32>
    %254 = math.exp %253 : vector<8x8xf32>
    %cst_104 = arith.constant dense<0.000000e+00> : vector<8xf32>
    %255 = vector.multi_reduction <add>, %254, %cst_104 [1] : vector<8x8xf32> to vector<8xf32>
    %256 = vector.shape_cast %255 : vector<8xf32> to vector<8x1xf32>
    %257 = tpu.reciprocal %256 {approx = true} : vector<8x1xf32> -> vector<8x1xf32>
    %258 = vector.broadcast %257 : vector<8x1xf32> to vector<8x8xf32>
    %259 = arith.mulf %254, %258 : vector<8x8xf32>
    %cst_105 = arith.constant dense<0.000000e+00> : vector<8x8xf32>
    %260 = tpu.matmul %259, %240, %cst_105 {dimension_numbers = #tpu.dot_dimension_numbers<[1], [0], [0], [1], [0, 0, 1, 1], [], []>} : vector<8x8xf32>, vector<8x8xf32>, vector<8x8xf32> -> vector<8x8xf32>
    %261 = vector.extract_strided_slice %184 {offsets = [16, 0], sizes = [8, 32], strides = [1, 1]} : vector<32x32xf32> to vector<8x32xf32>
    %cst_106 = arith.constant dense<0.000000e+00> : vector<8x32xf32>
    %262 = tpu.matmul %260, %261, %cst_106 {dimension_numbers = #tpu.dot_dimension_numbers<[1], [0], [0], [1], [0, 0, 1, 1], [], []>} : vector<8x8xf32>, vector<8x32xf32>, vector<8x32xf32> -> vector<8x32xf32>
    %263 = arith.addf %237, %262 : vector<8x32xf32>
    %264 = vector.extract_strided_slice %176 {offsets = [0, 24], sizes = [8, 8], strides = [1, 1]} : vector<8x32xf32> to vector<8x8xf32>
    %265 = vector.extract_strided_slice %182 {offsets = [0, 24], sizes = [8, 8], strides = [1, 1]} : vector<8x32xf32> to vector<8x8xf32>
    %266 = vector.extract_strided_slice %183 {offsets = [0, 24], sizes = [8, 8], strides = [1, 1]} : vector<8x32xf32> to vector<8x8xf32>
    %cst_107 = arith.constant dense<0.000000e+00> : vector<8x8xf32>
    %267 = tpu.matmul %264, %265, %cst_107 {dimension_numbers = #tpu.dot_dimension_numbers<[1], [1], [0], [0], [0, 0, 1, 0], [], []>} : vector<8x8xf32>, vector<8x8xf32>, vector<8x8xf32> -> vector<8x8xf32>
    %cst_108 = arith.constant 0.353553385 : f32
    %268 = vector.broadcast %cst_108 : f32 to vector<8x8xf32>
    %269 = arith.mulf %267, %268 : vector<8x8xf32>
    %cst_109 = arith.constant 0.000000e+00 : f32
    %270 = vector.broadcast %cst_109 : f32 to vector<1x8xf32>
    %271 = arith.cmpf ogt, %7, %270 : vector<1x8xf32>
    %cst_110 = arith.constant -1.000000e+09 : f32
    %272 = vector.shape_cast %271 : vector<1x8xi1> to vector<1x8xi1>
    %273 = vector.broadcast %272 : vector<1x8xi1> to vector<8x8xi1>
    %274 = vector.broadcast %cst_110 : f32 to vector<8x8xf32>
    %275 = arith.select %273, %269, %274 : vector<8x8xi1>, vector<8x8xf32>
    %cst_111 = arith.constant dense<0xFF800000> : vector<8xf32>
    %276 = vector.multi_reduction <maximumf>, %275, %cst_111 [1] : vector<8x8xf32> to vector<8xf32>
    %277 = vector.shape_cast %276 : vector<8xf32> to vector<8x1xf32>
    %278 = vector.broadcast %277 : vector<8x1xf32> to vector<8x8xf32>
    %279 = arith.subf %275, %278 : vector<8x8xf32>
    %280 = math.exp %279 : vector<8x8xf32>
    %cst_112 = arith.constant dense<0.000000e+00> : vector<8xf32>
    %281 = vector.multi_reduction <add>, %280, %cst_112 [1] : vector<8x8xf32> to vector<8xf32>
    %282 = vector.shape_cast %281 : vector<8xf32> to vector<8x1xf32>
    %283 = tpu.reciprocal %282 {approx = true} : vector<8x1xf32> -> vector<8x1xf32>
    %284 = vector.broadcast %283 : vector<8x1xf32> to vector<8x8xf32>
    %285 = arith.mulf %280, %284 : vector<8x8xf32>
    %cst_113 = arith.constant dense<0.000000e+00> : vector<8x8xf32>
    %286 = tpu.matmul %285, %266, %cst_113 {dimension_numbers = #tpu.dot_dimension_numbers<[1], [0], [0], [1], [0, 0, 1, 1], [], []>} : vector<8x8xf32>, vector<8x8xf32>, vector<8x8xf32> -> vector<8x8xf32>
    %287 = vector.extract_strided_slice %184 {offsets = [24, 0], sizes = [8, 32], strides = [1, 1]} : vector<32x32xf32> to vector<8x32xf32>
    %cst_114 = arith.constant dense<0.000000e+00> : vector<8x32xf32>
    %288 = tpu.matmul %286, %287, %cst_114 {dimension_numbers = #tpu.dot_dimension_numbers<[1], [0], [0], [1], [0, 0, 1, 1], [], []>} : vector<8x8xf32>, vector<8x32xf32>, vector<8x32xf32> -> vector<8x32xf32>
    %289 = arith.addf %263, %288 : vector<8x32xf32>
    %290 = arith.addf %144, %289 : vector<8x32xf32>
    %c0_115 = arith.constant 0 : index
    %c0_116 = arith.constant 0 : index
    %291 = vector.load %arg18[%c0_115, %c0_116] : memref<1x32xf32, #tpu.memory_space<vmem>>, vector<1x32xf32>
    %292 = vector.broadcast %291 : vector<1x32xf32> to vector<8x32xf32>
    %293 = arith.addf %290, %292 : vector<8x32xf32>
    %c0_117 = arith.constant 0 : index
    %c0_118 = arith.constant 0 : index
    %294 = vector.load %arg19[%c0_117, %c0_118] : memref<1x32xf32, #tpu.memory_space<vmem>>, vector<1x32xf32>
    %c0_119 = arith.constant 0 : index
    %c0_120 = arith.constant 0 : index
    %295 = vector.load %arg20[%c0_119, %c0_120] : memref<1x32xf32, #tpu.memory_space<vmem>>, vector<1x32xf32>
    %cst_121 = arith.constant dense<0.000000e+00> : vector<8xf32>
    %296 = vector.multi_reduction <add>, %293, %cst_121 [1] : vector<8x32xf32> to vector<8xf32>
    %297 = vector.shape_cast %296 : vector<8xf32> to vector<8x1xf32>
    %cst_122 = arith.constant 3.200000e+01 : f32
    %298 = vector.broadcast %cst_122 : f32 to vector<8x1xf32>
    %299 = arith.divf %297, %298 : vector<8x1xf32>
    %300 = vector.broadcast %299 : vector<8x1xf32> to vector<8x32xf32>
    %301 = arith.subf %293, %300 : vector<8x32xf32>
    %302 = vector.broadcast %299 : vector<8x1xf32> to vector<8x32xf32>
    %303 = arith.subf %293, %302 : vector<8x32xf32>
    %304 = arith.mulf %301, %303 : vector<8x32xf32>
    %cst_123 = arith.constant dense<0.000000e+00> : vector<8xf32>
    %305 = vector.multi_reduction <add>, %304, %cst_123 [1] : vector<8x32xf32> to vector<8xf32>
    %306 = vector.shape_cast %305 : vector<8xf32> to vector<8x1xf32>
    %cst_124 = arith.constant 3.100000e+01 : f32
    %307 = vector.broadcast %cst_124 : f32 to vector<8x1xf32>
    %308 = arith.divf %306, %307 : vector<8x1xf32>
    %309 = math.sqrt %308 : vector<8x1xf32>
    %cst_125 = arith.constant 9.99999997E-7 : f32
    %310 = vector.broadcast %cst_125 : f32 to vector<8x1xf32>
    %311 = arith.addf %309, %310 : vector<8x1xf32>
    %312 = tpu.reciprocal %311 {approx = true} : vector<8x1xf32> -> vector<8x1xf32>
    %313 = vector.broadcast %299 : vector<8x1xf32> to vector<8x32xf32>
    %314 = arith.subf %293, %313 : vector<8x32xf32>
    %315 = vector.broadcast %294 : vector<1x32xf32> to vector<8x32xf32>
    %316 = arith.mulf %315, %314 : vector<8x32xf32>
    %317 = vector.broadcast %312 : vector<8x1xf32> to vector<8x32xf32>
    %318 = arith.mulf %316, %317 : vector<8x32xf32>
    %319 = vector.broadcast %295 : vector<1x32xf32> to vector<8x32xf32>
    %320 = arith.addf %318, %319 : vector<8x32xf32>
    %c0_126 = arith.constant 0 : index
    %c0_127 = arith.constant 0 : index
    %321 = vector.load %arg21[%c0_126, %c0_127] : memref<32x128xf32, #tpu.memory_space<vmem>>, vector<32x128xf32>
    %cst_128 = arith.constant dense<0.000000e+00> : vector<8x128xf32>
    %322 = tpu.matmul %320, %321, %cst_128 {dimension_numbers = #tpu.dot_dimension_numbers<[1], [0], [0], [1], [0, 0, 1, 1], [], []>} : vector<8x32xf32>, vector<32x128xf32>, vector<8x128xf32> -> vector<8x128xf32>
    %c0_129 = arith.constant 0 : index
    %c0_130 = arith.constant 0 : index
    %323 = vector.load %arg22[%c0_129, %c0_130] : memref<1x128xf32, #tpu.memory_space<vmem>>, vector<1x128xf32>
    %324 = vector.broadcast %323 : vector<1x128xf32> to vector<8x128xf32>
    %325 = arith.addf %322, %324 : vector<8x128xf32>
    %cst_131 = arith.constant 0.000000e+00 : f32
    %326 = vector.broadcast %cst_131 : f32 to vector<8x128xf32>
    %327 = arith.maximumf %325, %326 : vector<8x128xf32>
    %c0_132 = arith.constant 0 : index
    %c0_133 = arith.constant 0 : index
    %328 = vector.load %arg23[%c0_132, %c0_133] : memref<128x32xf32, #tpu.memory_space<vmem>>, vector<128x32xf32>
    %cst_134 = arith.constant dense<0.000000e+00> : vector<8x32xf32>
    %329 = tpu.matmul %327, %328, %cst_134 {dimension_numbers = #tpu.dot_dimension_numbers<[1], [0], [0], [1], [0, 0, 1, 1], [], []>} : vector<8x128xf32>, vector<128x32xf32>, vector<8x32xf32> -> vector<8x32xf32>
    %330 = arith.addf %293, %329 : vector<8x32xf32>
    %c0_135 = arith.constant 0 : index
    %c0_136 = arith.constant 0 : index
    %331 = vector.load %arg24[%c0_135, %c0_136] : memref<1x32xf32, #tpu.memory_space<vmem>>, vector<1x32xf32>
    %332 = vector.broadcast %331 : vector<1x32xf32> to vector<8x32xf32>
    %333 = arith.addf %330, %332 : vector<8x32xf32>
    %c0_137 = arith.constant 0 : index
    %c0_138 = arith.constant 0 : index
    %c0_139 = arith.constant 0 : index
    %334 = vector.load %arg25[%c0_137, %c0_138, %c0_139] : memref<1x8x32xf32, #tpu.memory_space<vmem>>, vector<1x8x32xf32>
    %335 = vector.shape_cast %334 : vector<1x8x32xf32> to vector<8x32xf32>
    %336 = vector.shape_cast %333 : vector<8x32xf32> to vector<1x8x32xf32>
    tpu.vector_store %arg25[%c0_137, %c0_138, %c0_139], %336 {strides = array<i32>} : memref<1x8x32xf32, #tpu.memory_space<vmem>>, vector<1x8x32xf32>,
    return
  }
  func.func @transform_0(%arg0: i32) -> (i32, i32, i32) {
    %c0_i32 = arith.constant 0 : i32
    %c0_i32_0 = arith.constant 0 : i32
    %c0_i32_1 = arith.constant 0 : i32
    return %arg0, %c0_i32, %c0_i32_0 : i32, i32, i32
  }
  func.func @transform_1(%arg0: i32) -> (i32, i32, i32) {
    %c0_i32 = arith.constant 0 : i32
    %c0_i32_0 = arith.constant 0 : i32
    %c0_i32_1 = arith.constant 0 : i32
    return %arg0, %c0_i32, %c0_i32_0 : i32, i32, i32
  }
  func.func @transform_2(%arg0: i32) -> (i32, i32, i32) {
    %c0_i32 = arith.constant 0 : i32
    %c0_i32_0 = arith.constant 0 : i32
    %c0_i32_1 = arith.constant 0 : i32
    return %arg0, %c0_i32, %c0_i32_0 : i32, i32, i32
  }
  func.func @transform_3(%arg0: i32) -> (i32, i32, i32) {
    %c0_i32 = arith.constant 0 : i32
    %c0_i32_0 = arith.constant 0 : i32
    %c0_i32_1 = arith.constant 0 : i32
    return %arg0, %c0_i32, %c0_i32_0 : i32, i32, i32
  }
  func.func @transform_4(%arg0: i32) -> (i32, i32) {
    %c0_i32 = arith.constant 0 : i32
    %c0_i32_0 = arith.constant 0 : i32
    %c0_i32_1 = arith.constant 0 : i32
    return %c0_i32, %c0_i32_0 : i32, i32
  }
  func.func @transform_5(%arg0: i32) -> (i32, i32) {
    %c0_i32 = arith.constant 0 : i32
    %c0_i32_0 = arith.constant 0 : i32
    %c0_i32_1 = arith.constant 0 : i32
    return %c0_i32, %c0_i32_0 : i32, i32
  }
  func.func @transform_6(%arg0: i32) -> (i32, i32) {
    %c0_i32 = arith.constant 0 : i32
    %c0_i32_0 = arith.constant 0 : i32
    %c0_i32_1 = arith.constant 0 : i32
    return %c0_i32, %c0_i32_0 : i32, i32
  }
  func.func @transform_7(%arg0: i32) -> (i32, i32) {
    %c0_i32 = arith.constant 0 : i32
    %c0_i32_0 = arith.constant 0 : i32
    %c0_i32_1 = arith.constant 0 : i32
    return %c0_i32, %c0_i32_0 : i32, i32
  }
  func.func @transform_8(%arg0: i32) -> (i32, i32) {
    %c0_i32 = arith.constant 0 : i32
    %c0_i32_0 = arith.constant 0 : i32
    %c0_i32_1 = arith.constant 0 : i32
    return %c0_i32, %c0_i32_0 : i32, i32
  }
  func.func @transform_9(%arg0: i32) -> (i32, i32) {
    %c0_i32 = arith.constant 0 : i32
    %c0_i32_0 = arith.constant 0 : i32
    %c0_i32_1 = arith.constant 0 : i32
    return %c0_i32, %c0_i32_0 : i32, i32
  }
  func.func @transform_10(%arg0: i32) -> (i32, i32) {
    %c0_i32 = arith.constant 0 : i32
    %c0_i32_0 = arith.constant 0 : i32
    %c0_i32_1 = arith.constant 0 : i32
    return %c0_i32, %c0_i32_0 : i32, i32
  }
  func.func @transform_11(%arg0: i32) -> (i32, i32) {
    %c0_i32 = arith.constant 0 : i32
    %c0_i32_0 = arith.constant 0 : i32
    %c0_i32_1 = arith.constant 0 : i32
    return %c0_i32, %c0_i32_0 : i32, i32
  }
  func.func @transform_12(%arg0: i32) -> (i32, i32) {
    %c0_i32 = arith.constant 0 : i32
    %c0_i32_0 = arith.constant 0 : i32
    %c0_i32_1 = arith.constant 0 : i32
    return %c0_i32, %c0_i32_0 : i32, i32
  }
  func.func @transform_13(%arg0: i32) -> (i32, i32) {
    %c0_i32 = arith.constant 0 : i32
    %c0_i32_0 = arith.constant 0 : i32
    %c0_i32_1 = arith.constant 0 : i32
    return %c0_i32, %c0_i32_0 : i32, i32
  }
  func.func @transform_14(%arg0: i32) -> (i32, i32) {
    %c0_i32 = arith.constant 0 : i32
    %c0_i32_0 = arith.constant 0 : i32
    %c0_i32_1 = arith.constant 0 : i32
    return %c0_i32, %c0_i32_0 : i32, i32
  }
  func.func @transform_15(%arg0: i32) -> (i32, i32) {
    %c0_i32 = arith.constant 0 : i32
    %c0_i32_0 = arith.constant 0 : i32
    %c0_i32_1 = arith.constant 0 : i32
    return %c0_i32, %c0_i32_0 : i32, i32
  }
  func.func @transform_16(%arg0: i32) -> (i32, i32) {
    %c0_i32 = arith.constant 0 : i32
    %c0_i32_0 = arith.constant 0 : i32
    %c0_i32_1 = arith.constant 0 : i32
    return %c0_i32, %c0_i32_0 : i32, i32
  }
  func.func @transform_17(%arg0: i32) -> (i32, i32) {
    %c0_i32 = arith.constant 0 : i32
    %c0_i32_0 = arith.constant 0 : i32
    %c0_i32_1 = arith.constant 0 : i32
    return %c0_i32, %c0_i32_0 : i32, i32
  }
  func.func @transform_18(%arg0: i32) -> (i32, i32) {
    %c0_i32 = arith.constant 0 : i32
    %c0_i32_0 = arith.constant 0 : i32
    %c0_i32_1 = arith.constant 0 : i32
    return %c0_i32, %c0_i32_0 : i32, i32
  }
  func.func @transform_19(%arg0: i32) -> (i32, i32) {
    %c0_i32 = arith.constant 0 : i32
    %c0_i32_0 = arith.constant 0 : i32
    %c0_i32_1 = arith.constant 0 : i32
    return %c0_i32, %c0_i32_0 : i32, i32
  }
  func.func @transform_20(%arg0: i32) -> (i32, i32) {
    %c0_i32 = arith.constant 0 : i32
    %c0_i32_0 = arith.constant 0 : i32
    %c0_i32_1 = arith.constant 0 : i32
    return %c0_i32, %c0_i32_0 : i32, i32
  }
  func.func @transform_21(%arg0: i32) -> (i32, i32) {
    %c0_i32 = arith.constant 0 : i32
    %c0_i32_0 = arith.constant 0 : i32
    %c0_i32_1 = arith.constant 0 : i32
    return %c0_i32, %c0_i32_0 : i32, i32
  }
  func.func @transform_22(%arg0: i32) -> (i32, i32) {
    %c0_i32 = arith.constant 0 : i32
    %c0_i32_0 = arith.constant 0 : i32
    %c0_i32_1 = arith.constant 0 : i32
    return %c0_i32, %c0_i32_0 : i32, i32
  }
  func.func @transform_23(%arg0: i32) -> (i32, i32) {
    %c0_i32 = arith.constant 0 : i32
    %c0_i32_0 = arith.constant 0 : i32
    %c0_i32_1 = arith.constant 0 : i32
    return %c0_i32, %c0_i32_0 : i32, i32
  }
  func.func @transform_24(%arg0: i32) -> (i32, i32, i32) {
    %c0_i32 = arith.constant 0 : i32
    %c0_i32_0 = arith.constant 0 : i32
    %c0_i32_1 = arith.constant 0 : i32
    return %arg0, %c0_i32, %c0_i32_0 : i32, i32, i32
  }
}

module attributes {stable_mosaic.version = 11 : i64} {
  func.func @_decoder_layer_kernel(%arg0: i32, %arg1: memref<1x8x32xf32, #tpu.memory_space<vmem>>, %arg2: memref<1x8x32xf32, #tpu.memory_space<vmem>>, %arg3: memref<1x8x8xf32, #tpu.memory_space<vmem>>, %arg4: memref<1x1x8xf32, #tpu.memory_space<vmem>>, %arg5: memref<1x32xf32, #tpu.memory_space<vmem>>, %arg6: memref<1x32xf32, #tpu.memory_space<vmem>>, %arg7: memref<32x96xf32, #tpu.memory_space<vmem>>, %arg8: memref<1x96xf32, #tpu.memory_space<vmem>>, %arg9: memref<32x32xf32, #tpu.memory_space<vmem>>, %arg10: memref<1x32xf32, #tpu.memory_space<vmem>>, %arg11: memref<1x32xf32, #tpu.memory_space<vmem>>, %arg12: memref<1x32xf32, #tpu.memory_space<vmem>>, %arg13: memref<32x32xf32, #tpu.memory_space<vmem>>, %arg14: memref<1x32xf32, #tpu.memory_space<vmem>>, %arg15: memref<32x64xf32, #tpu.memory_space<vmem>>, %arg16: memref<1x64xf32, #tpu.memory_space<vmem>>, %arg17: memref<32x32xf32, #tpu.memory_space<vmem>>, %arg18: memref<1x32xf32, #tpu.memory_space<vmem>>, %arg19: memref<1x32xf32, #tpu.memory_space<vmem>>, %arg20: memref<1x32xf32, #tpu.memory_space<vmem>>, %arg21: memref<32x128xf32, #tpu.memory_space<vmem>>, %arg22: memref<1x128xf32, #tpu.memory_space<vmem>>, %arg23: memref<128x32xf32, #tpu.memory_space<vmem>>, %arg24: memref<1x32xf32, #tpu.memory_space<vmem>>, %arg25: memref<1x8x32xf32, #tpu.memory_space<vmem>>) attributes {dimension_semantics = [#tpu.dimension_semantics<parallel>], iteration_bounds = array<i64: 2>, scalar_prefetch = 0 : i64, scratch_operands = 0 : i64, tpu.core_type = #tpu.core_type<tc>, window_params = [{transform_indices = @transform_0, window_bounds = array<i64: 1, 8, 32>}, {transform_indices = @transform_1, window_bounds = array<i64: 1, 8, 32>}, {transform_indices = @transform_2, window_bounds = array<i64: 1, 8, 8>}, {transform_indices = @transform_3, window_bounds = array<i64: 1, 1, 8>}, {pipeline_mode = #tpu.pipeline_mode<synchronous>, transform_indices = @transform_4, window_bounds = array<i64: 1, 32>}, {pipeline_mode = #tpu.pipeline_mode<synchronous>, transform_indices = @transform_5, window_bounds = array<i64: 1, 32>}, {pipeline_mode = #tpu.pipeline_mode<synchronous>, transform_indices = @transform_6, window_bounds = array<i64: 32, 96>}, {pipeline_mode = #tpu.pipeline_mode<synchronous>, transform_indices = @transform_7, window_bounds = array<i64: 1, 96>}, {pipeline_mode = #tpu.pipeline_mode<synchronous>, transform_indices = @transform_8, window_bounds = array<i64: 32, 32>}, {pipeline_mode = #tpu.pipeline_mode<synchronous>, transform_indices = @transform_9, window_bounds = array<i64: 1, 32>}, {pipeline_mode = #tpu.pipeline_mode<synchronous>, transform_indices = @transform_10, window_bounds = array<i64: 1, 32>}, {pipeline_mode = #tpu.pipeline_mode<synchronous>, transform_indices = @transform_11, window_bounds = array<i64: 1, 32>}, {pipeline_mode = #tpu.pipeline_mode<synchronous>, transform_indices = @transform_12, window_bounds = array<i64: 32, 32>}, {pipeline_mode = #tpu.pipeline_mode<synchronous>, transform_indices = @transform_13, window_bounds = array<i64: 1, 32>}, {pipeline_mode = #tpu.pipeline_mode<synchronous>, transform_indices = @transform_14, window_bounds = array<i64: 32, 64>}, {pipeline_mode = #tpu.pipeline_mode<synchronous>, transform_indices = @transform_15, window_bounds = array<i64: 1, 64>}, {pipeline_mode = #tpu.pipeline_mode<synchronous>, transform_indices = @transform_16, window_bounds = array<i64: 32, 32>}, {pipeline_mode = #tpu.pipeline_mode<synchronous>, transform_indices = @transform_17, window_bounds = array<i64: 1, 32>}, {pipeline_mode = #tpu.pipeline_mode<synchronous>, transform_indices = @transform_18, window_bounds = array<i64: 1, 32>}, {pipeline_mode = #tpu.pipeline_mode<synchronous>, transform_indices = @transform_19, window_bounds = array<i64: 1, 32>}, {pipeline_mode = #tpu.pipeline_mode<synchronous>, transform_indices = @transform_20, window_bounds = array<i64: 32, 128>}, {pipeline_mode = #tpu.pipeline_mode<synchronous>, transform_indices = @transform_21, window_bounds = array<i64: 1, 128>}, {pipeline_mode = #tpu.pipeline_mode<synchronous>, transform_indices = @transform_22, window_bounds = array<i64: 128, 32>}, {pipeline_mode = #tpu.pipeline_mode<synchronous>, transform_indices = @transform_23, window_bounds = array<i64: 1, 32>}, {transform_indices = @transform_24, window_bounds = array<i64: 1, 8, 32>}]} {
    %c0 = arith.constant 0 : index
    %c0_0 = arith.constant 0 : index
    %c0_1 = arith.constant 0 : index
    %0 = vector.load %arg1[%c0, %c0_0, %c0_1] : memref<1x8x32xf32, #tpu.memory_space<vmem>>, vector<1x8x32xf32>
    %1 = vector.shape_cast %0 : vector<1x8x32xf32> to vector<8x32xf32>
    %c0_2 = arith.constant 0 : index
    %c0_3 = arith.constant 0 : index
    %c0_4 = arith.constant 0 : index
    %2 = vector.load %arg2[%c0_2, %c0_3, %c0_4] : memref<1x8x32xf32, #tpu.memory_space<vmem>>, vector<1x8x32xf32>
    %3 = vector.shape_cast %2 : vector<1x8x32xf32> to vector<8x32xf32>
    %c0_5 = arith.constant 0 : index
    %c0_6 = arith.constant 0 : index
    %c0_7 = arith.constant 0 : index
    %4 = vector.load %arg3[%c0_5, %c0_6, %c0_7] : memref<1x8x8xf32, #tpu.memory_space<vmem>>, vector<1x8x8xf32>
    %5 = vector.shape_cast %4 : vector<1x8x8xf32> to vector<8x8xf32>
    %c0_8 = arith.constant 0 : index
    %c0_9 = arith.constant 0 : index
    %c0_10 = arith.constant 0 : index
    %6 = vector.load %arg4[%c0_8, %c0_9, %c0_10] : memref<1x1x8xf32, #tpu.memory_space<vmem>>, vector<1x1x8xf32>
    %7 = vector.shape_cast %6 : vector<1x1x8xf32> to vector<1x8xf32>
    %c0_11 = arith.constant 0 : index
    %c0_12 = arith.constant 0 : index
    %8 = vector.load %arg5[%c0_11, %c0_12] : memref<1x32xf32, #tpu.memory_space<vmem>>, vector<1x32xf32>
    %c0_13 = arith.constant 0 : index
    %c0_14 = arith.constant 0 : index
    %9 = vector.load %arg6[%c0_13, %c0_14] : memref<1x32xf32, #tpu.memory_space<vmem>>, vector<1x32xf32>
    %cst = arith.constant dense<0.000000e+00> : vector<8xf32>
    %10 = vector.multi_reduction <add>, %1, %cst [1] : vector<8x32xf32> to vector<8xf32>
    %11 = vector.shape_cast %10 : vector<8xf32> to vector<8x1xf32>
    %cst_15 = arith.constant 3.200000e+01 : f32
    %12 = vector.broadcast %cst_15 : f32 to vector<8x1xf32>
    %13 = arith.divf %11, %12 : vector<8x1xf32>
    %14 = vector.broadcast %13 : vector<8x1xf32> to vector<8x32xf32>
    %15 = arith.subf %1, %14 : vector<8x32xf32>
    %16 = vector.broadcast %13 : vector<8x1xf32> to vector<8x32xf32>
    %17 = arith.subf %1, %16 : vector<8x32xf32>
    %18 = arith.mulf %15, %17 : vector<8x32xf32>
    %cst_16 = arith.constant dense<0.000000e+00> : vector<8xf32>
    %19 = vector.multi_reduction <add>, %18, %cst_16 [1] : vector<8x32xf32> to vector<8xf32>
    %20 = vector.shape_cast %19 : vector<8xf32> to vector<8x1xf32>
    %cst_17 = arith.constant 3.100000e+01 : f32
    %21 = vector.broadcast %cst_17 : f32 to vector<8x1xf32>
    %22 = arith.divf %20, %21 : vector<8x1xf32>
    %23 = math.sqrt %22 : vector<8x1xf32>
    %cst_18 = arith.constant 9.99999997E-7 : f32
    %24 = vector.broadcast %cst_18 : f32 to vector<8x1xf32>
    %25 = arith.addf %23, %24 : vector<8x1xf32>
    %26 = tpu.reciprocal %25 {approx = true} : vector<8x1xf32> -> vector<8x1xf32>
    %27 = vector.broadcast %13 : vector<8x1xf32> to vector<8x32xf32>
    %28 = arith.subf %1, %27 : vector<8x32xf32>
    %29 = vector.broadcast %8 : vector<1x32xf32> to vector<8x32xf32>
    %30 = arith.mulf %29, %28 : vector<8x32xf32>
    %31 = vector.broadcast %26 : vector<8x1xf32> to vector<8x32xf32>
    %32 = arith.mulf %30, %31 : vector<8x32xf32>
    %33 = vector.broadcast %9 : vector<1x32xf32> to vector<8x32xf32>
    %34 = arith.addf %32, %33 : vector<8x32xf32>
    %c0_19 = arith.constant 0 : index
    %c0_20 = arith.constant 0 : index
    %35 = vector.load %arg7[%c0_19, %c0_20] : memref<32x96xf32, #tpu.memory_space<vmem>>, vector<32x96xf32>
    %cst_21 = arith.constant dense<0.000000e+00> : vector<8x96xf32>
    %36 = tpu.matmul %34, %35, %cst_21 {dimension_numbers = #tpu.dot_dimension_numbers<[1], [0], [0], [1], [0, 0, 1, 1], [], []>} : vector<8x32xf32>, vector<32x96xf32>, vector<8x96xf32> -> vector<8x96xf32>
    %c0_22 = arith.constant 0 : index
    %c0_23 = arith.constant 0 : index
    %37 = vector.load %arg8[%c0_22, %c0_23] : memref<1x96xf32, #tpu.memory_space<vmem>>, vector<1x96xf32>
    %38 = vector.broadcast %37 : vector<1x96xf32> to vector<8x96xf32>
    %39 = arith.addf %36, %38 : vector<8x96xf32>
    %40 = vector.extract_strided_slice %39 {offsets = [0, 0], sizes = [8, 32], strides = [1, 1]} : vector<8x96xf32> to vector<8x32xf32>
    %41 = vector.extract_strided_slice %39 {offsets = [0, 32], sizes = [8, 32], strides = [1, 1]} : vector<8x96xf32> to vector<8x32xf32>
    %42 = vector.extract_strided_slice %39 {offsets = [0, 64], sizes = [8, 32], strides = [1, 1]} : vector<8x96xf32> to vector<8x32xf32>
    %c0_24 = arith.constant 0 : index
    %c0_25 = arith.constant 0 : index
    %43 = vector.load %arg9[%c0_24, %c0_25] : memref<32x32xf32, #tpu.memory_space<vmem>>, vector<32x32xf32>
    %cst_26 = arith.constant 0.000000e+00 : f32
    %44 = vector.broadcast %cst_26 : f32 to vector<8x32xf32>
    %45 = vector.extract_strided_slice %40 {offsets = [0, 0], sizes = [8, 8], strides = [1, 1]} : vector<8x32xf32> to vector<8x8xf32>
    %46 = vector.extract_strided_slice %41 {offsets = [0, 0], sizes = [8, 8], strides = [1, 1]} : vector<8x32xf32> to vector<8x8xf32>
    %47 = vector.extract_strided_slice %42 {offsets = [0, 0], sizes = [8, 8], strides = [1, 1]} : vector<8x32xf32> to vector<8x8xf32>
    %cst_27 = arith.constant dense<0.000000e+00> : vector<8x8xf32>
    %48 = tpu.matmul %45, %46, %cst_27 {dimension_numbers = #tpu.dot_dimension_numbers<[1], [1], [0], [0], [0, 0, 1, 0], [], []>} : vector<8x8xf32>, vector<8x8xf32>, vector<8x8xf32> -> vector<8x8xf32>
    %cst_28 = arith.constant 0.353553385 : f32
    %49 = vector.broadcast %cst_28 : f32 to vector<8x8xf32>
    %50 = arith.mulf %48, %49 : vector<8x8xf32>
    %cst_29 = arith.constant 0.000000e+00 : f32
    %51 = vector.broadcast %cst_29 : f32 to vector<8x8xf32>
    %52 = arith.cmpf ogt, %5, %51 : vector<8x8xf32>
    %cst_30 = arith.constant -1.000000e+09 : f32
    %53 = vector.broadcast %cst_30 : f32 to vector<8x8xf32>
    %54 = arith.select %52, %50, %53 : vector<8x8xi1>, vector<8x8xf32>
    %cst_31 = arith.constant dense<0xFF800000> : vector<8xf32>
    %55 = vector.multi_reduction <maximumf>, %54, %cst_31 [1] : vector<8x8xf32> to vector<8xf32>
    %56 = vector.shape_cast %55 : vector<8xf32> to vector<8x1xf32>
    %57 = vector.broadcast %56 : vector<8x1xf32> to vector<8x8xf32>
    %58 = arith.subf %54, %57 : vector<8x8xf32>
    %59 = math.exp %58 : vector<8x8xf32>
    %cst_32 = arith.constant dense<0.000000e+00> : vector<8xf32>
    %60 = vector.multi_reduction <add>, %59, %cst_32 [1] : vector<8x8xf32> to vector<8xf32>
    %61 = vector.shape_cast %60 : vector<8xf32> to vector<8x1xf32>
    %62 = tpu.reciprocal %61 {approx = true} : vector<8x1xf32> -> vector<8x1xf32>
    %63 = vector.broadcast %62 : vector<8x1xf32> to vector<8x8xf32>
    %64 = arith.mulf %59, %63 : vector<8x8xf32>
    %cst_33 = arith.constant dense<0.000000e+00> : vector<8x8xf32>
    %65 = tpu.matmul %64, %47, %cst_33 {dimension_numbers = #tpu.dot_dimension_numbers<[1], [0], [0], [1], [0, 0, 1, 1], [], []>} : vector<8x8xf32>, vector<8x8xf32>, vector<8x8xf32> -> vector<8x8xf32>
    %66 = vector.extract_strided_slice %43 {offsets = [0, 0], sizes = [8, 32], strides = [1, 1]} : vector<32x32xf32> to vector<8x32xf32>
    %cst_34 = arith.constant dense<0.000000e+00> : vector<8x32xf32>
    %67 = tpu.matmul %65, %66, %cst_34 {dimension_numbers = #tpu.dot_dimension_numbers<[1], [0], [0], [1], [0, 0, 1, 1], [], []>} : vector<8x8xf32>, vector<8x32xf32>, vector<8x32xf32> -> vector<8x32xf32>
    %68 = arith.addf %44, %67 : vector<8x32xf32>
    %69 = vector.extract_strided_slice %40 {offsets = [0, 8], sizes = [8, 8], strides = [1, 1]} : vector<8x32xf32> to vector<8x8xf32>
    %70 = vector.extract_strided_slice %41 {offsets = [0, 8], sizes = [8, 8], strides = [1, 1]} : vector<8x32xf32> to vector<8x8xf32>
    %71 = vector.extract_strided_slice %42 {offsets = [0, 8], sizes = [8, 8], strides = [1, 1]} : vector<8x32xf32> to vector<8x8xf32>
    %cst_35 = arith.constant dense<0.000000e+00> : vector<8x8xf32>
    %72 = tpu.matmul %69, %70, %cst_35 {dimension_numbers = #tpu.dot_dimension_numbers<[1], [1], [0], [0], [0, 0, 1, 0], [], []>} : vector<8x8xf32>, vector<8x8xf32>, vector<8x8xf32> -> vector<8x8xf32>
    %cst_36 = arith.constant 0.353553385 : f32
    %73 = vector.broadcast %cst_36 : f32 to vector<8x8xf32>
    %74 = arith.mulf %72, %73 : vector<8x8xf32>
    %cst_37 = arith.constant 0.000000e+00 : f32
    %75 = vector.broadcast %cst_37 : f32 to vector<8x8xf32>
    %76 = arith.cmpf ogt, %5, %75 : vector<8x8xf32>
    %cst_38 = arith.constant -1.000000e+09 : f32
    %77 = vector.broadcast %cst_38 : f32 to vector<8x8xf32>
    %78 = arith.select %76, %74, %77 : vector<8x8xi1>, vector<8x8xf32>
    %cst_39 = arith.constant dense<0xFF800000> : vector<8xf32>
    %79 = vector.multi_reduction <maximumf>, %78, %cst_39 [1] : vector<8x8xf32> to vector<8xf32>
    %80 = vector.shape_cast %79 : vector<8xf32> to vector<8x1xf32>
    %81 = vector.broadcast %80 : vector<8x1xf32> to vector<8x8xf32>
    %82 = arith.subf %78, %81 : vector<8x8xf32>
    %83 = math.exp %82 : vector<8x8xf32>
    %cst_40 = arith.constant dense<0.000000e+00> : vector<8xf32>
    %84 = vector.multi_reduction <add>, %83, %cst_40 [1] : vector<8x8xf32> to vector<8xf32>
    %85 = vector.shape_cast %84 : vector<8xf32> to vector<8x1xf32>
    %86 = tpu.reciprocal %85 {approx = true} : vector<8x1xf32> -> vector<8x1xf32>
    %87 = vector.broadcast %86 : vector<8x1xf32> to vector<8x8xf32>
    %88 = arith.mulf %83, %87 : vector<8x8xf32>
    %cst_41 = arith.constant dense<0.000000e+00> : vector<8x8xf32>
    %89 = tpu.matmul %88, %71, %cst_41 {dimension_numbers = #tpu.dot_dimension_numbers<[1], [0], [0], [1], [0, 0, 1, 1], [], []>} : vector<8x8xf32>, vector<8x8xf32>, vector<8x8xf32> -> vector<8x8xf32>
    %90 = vector.extract_strided_slice %43 {offsets = [8, 0], sizes = [8, 32], strides = [1, 1]} : vector<32x32xf32> to vector<8x32xf32>
    %cst_42 = arith.constant dense<0.000000e+00> : vector<8x32xf32>
    %91 = tpu.matmul %89, %90, %cst_42 {dimension_numbers = #tpu.dot_dimension_numbers<[1], [0], [0], [1], [0, 0, 1, 1], [], []>} : vector<8x8xf32>, vector<8x32xf32>, vector<8x32xf32> -> vector<8x32xf32>
    %92 = arith.addf %68, %91 : vector<8x32xf32>
    %93 = vector.extract_strided_slice %40 {offsets = [0, 16], sizes = [8, 8], strides = [1, 1]} : vector<8x32xf32> to vector<8x8xf32>
    %94 = vector.extract_strided_slice %41 {offsets = [0, 16], sizes = [8, 8], strides = [1, 1]} : vector<8x32xf32> to vector<8x8xf32>
    %95 = vector.extract_strided_slice %42 {offsets = [0, 16], sizes = [8, 8], strides = [1, 1]} : vector<8x32xf32> to vector<8x8xf32>
    %cst_43 = arith.constant dense<0.000000e+00> : vector<8x8xf32>
    %96 = tpu.matmul %93, %94, %cst_43 {dimension_numbers = #tpu.dot_dimension_numbers<[1], [1], [0], [0], [0, 0, 1, 0], [], []>} : vector<8x8xf32>, vector<8x8xf32>, vector<8x8xf32> -> vector<8x8xf32>
    %cst_44 = arith.constant 0.353553385 : f32
    %97 = vector.broadcast %cst_44 : f32 to vector<8x8xf32>
    %98 = arith.mulf %96, %97 : vector<8x8xf32>
    %cst_45 = arith.constant 0.000000e+00 : f32
    %99 = vector.broadcast %cst_45 : f32 to vector<8x8xf32>
    %100 = arith.cmpf ogt, %5, %99 : vector<8x8xf32>
    %cst_46 = arith.constant -1.000000e+09 : f32
    %101 = vector.broadcast %cst_46 : f32 to vector<8x8xf32>
    %102 = arith.select %100, %98, %101 : vector<8x8xi1>, vector<8x8xf32>
    %cst_47 = arith.constant dense<0xFF800000> : vector<8xf32>
    %103 = vector.multi_reduction <maximumf>, %102, %cst_47 [1] : vector<8x8xf32> to vector<8xf32>
    %104 = vector.shape_cast %103 : vector<8xf32> to vector<8x1xf32>
    %105 = vector.broadcast %104 : vector<8x1xf32> to vector<8x8xf32>
    %106 = arith.subf %102, %105 : vector<8x8xf32>
    %107 = math.exp %106 : vector<8x8xf32>
    %cst_48 = arith.constant dense<0.000000e+00> : vector<8xf32>
    %108 = vector.multi_reduction <add>, %107, %cst_48 [1] : vector<8x8xf32> to vector<8xf32>
    %109 = vector.shape_cast %108 : vector<8xf32> to vector<8x1xf32>
    %110 = tpu.reciprocal %109 {approx = true} : vector<8x1xf32> -> vector<8x1xf32>
    %111 = vector.broadcast %110 : vector<8x1xf32> to vector<8x8xf32>
    %112 = arith.mulf %107, %111 : vector<8x8xf32>
    %cst_49 = arith.constant dense<0.000000e+00> : vector<8x8xf32>
    %113 = tpu.matmul %112, %95, %cst_49 {dimension_numbers = #tpu.dot_dimension_numbers<[1], [0], [0], [1], [0, 0, 1, 1], [], []>} : vector<8x8xf32>, vector<8x8xf32>, vector<8x8xf32> -> vector<8x8xf32>
    %114 = vector.extract_strided_slice %43 {offsets = [16, 0], sizes = [8, 32], strides = [1, 1]} : vector<32x32xf32> to vector<8x32xf32>
    %cst_50 = arith.constant dense<0.000000e+00> : vector<8x32xf32>
    %115 = tpu.matmul %113, %114, %cst_50 {dimension_numbers = #tpu.dot_dimension_numbers<[1], [0], [0], [1], [0, 0, 1, 1], [], []>} : vector<8x8xf32>, vector<8x32xf32>, vector<8x32xf32> -> vector<8x32xf32>
    %116 = arith.addf %92, %115 : vector<8x32xf32>
    %117 = vector.extract_strided_slice %40 {offsets = [0, 24], sizes = [8, 8], strides = [1, 1]} : vector<8x32xf32> to vector<8x8xf32>
    %118 = vector.extract_strided_slice %41 {offsets = [0, 24], sizes = [8, 8], strides = [1, 1]} : vector<8x32xf32> to vector<8x8xf32>
    %119 = vector.extract_strided_slice %42 {offsets = [0, 24], sizes = [8, 8], strides = [1, 1]} : vector<8x32xf32> to vector<8x8xf32>
    %cst_51 = arith.constant dense<0.000000e+00> : vector<8x8xf32>
    %120 = tpu.matmul %117, %118, %cst_51 {dimension_numbers = #tpu.dot_dimension_numbers<[1], [1], [0], [0], [0, 0, 1, 0], [], []>} : vector<8x8xf32>, vector<8x8xf32>, vector<8x8xf32> -> vector<8x8xf32>
    %cst_52 = arith.constant 0.353553385 : f32
    %121 = vector.broadcast %cst_52 : f32 to vector<8x8xf32>
    %122 = arith.mulf %120, %121 : vector<8x8xf32>
    %cst_53 = arith.constant 0.000000e+00 : f32
    %123 = vector.broadcast %cst_53 : f32 to vector<8x8xf32>
    %124 = arith.cmpf ogt, %5, %123 : vector<8x8xf32>
    %cst_54 = arith.constant -1.000000e+09 : f32
    %125 = vector.broadcast %cst_54 : f32 to vector<8x8xf32>
    %126 = arith.select %124, %122, %125 : vector<8x8xi1>, vector<8x8xf32>
    %cst_55 = arith.constant dense<0xFF800000> : vector<8xf32>
    %127 = vector.multi_reduction <maximumf>, %126, %cst_55 [1] : vector<8x8xf32> to vector<8xf32>
    %128 = vector.shape_cast %127 : vector<8xf32> to vector<8x1xf32>
    %129 = vector.broadcast %128 : vector<8x1xf32> to vector<8x8xf32>
    %130 = arith.subf %126, %129 : vector<8x8xf32>
    %131 = math.exp %130 : vector<8x8xf32>
    %cst_56 = arith.constant dense<0.000000e+00> : vector<8xf32>
    %132 = vector.multi_reduction <add>, %131, %cst_56 [1] : vector<8x8xf32> to vector<8xf32>
    %133 = vector.shape_cast %132 : vector<8xf32> to vector<8x1xf32>
    %134 = tpu.reciprocal %133 {approx = true} : vector<8x1xf32> -> vector<8x1xf32>
    %135 = vector.broadcast %134 : vector<8x1xf32> to vector<8x8xf32>
    %136 = arith.mulf %131, %135 : vector<8x8xf32>
    %cst_57 = arith.constant dense<0.000000e+00> : vector<8x8xf32>
    %137 = tpu.matmul %136, %119, %cst_57 {dimension_numbers = #tpu.dot_dimension_numbers<[1], [0], [0], [1], [0, 0, 1, 1], [], []>} : vector<8x8xf32>, vector<8x8xf32>, vector<8x8xf32> -> vector<8x8xf32>
    %138 = vector.extract_strided_slice %43 {offsets = [24, 0], sizes = [8, 32], strides = [1, 1]} : vector<32x32xf32> to vector<8x32xf32>
    %cst_58 = arith.constant dense<0.000000e+00> : vector<8x32xf32>
    %139 = tpu.matmul %137, %138, %cst_58 {dimension_numbers = #tpu.dot_dimension_numbers<[1], [0], [0], [1], [0, 0, 1, 1], [], []>} : vector<8x8xf32>, vector<8x32xf32>, vector<8x32xf32> -> vector<8x32xf32>
    %140 = arith.addf %116, %139 : vector<8x32xf32>
    %141 = arith.addf %1, %140 : vector<8x32xf32>
    %c0_59 = arith.constant 0 : index
    %c0_60 = arith.constant 0 : index
    %142 = vector.load %arg10[%c0_59, %c0_60] : memref<1x32xf32, #tpu.memory_space<vmem>>, vector<1x32xf32>
    %143 = vector.broadcast %142 : vector<1x32xf32> to vector<8x32xf32>
    %144 = arith.addf %141, %143 : vector<8x32xf32>
    %c0_61 = arith.constant 0 : index
    %c0_62 = arith.constant 0 : index
    %145 = vector.load %arg11[%c0_61, %c0_62] : memref<1x32xf32, #tpu.memory_space<vmem>>, vector<1x32xf32>
    %c0_63 = arith.constant 0 : index
    %c0_64 = arith.constant 0 : index
    %146 = vector.load %arg12[%c0_63, %c0_64] : memref<1x32xf32, #tpu.memory_space<vmem>>, vector<1x32xf32>
    %cst_65 = arith.constant dense<0.000000e+00> : vector<8xf32>
    %147 = vector.multi_reduction <add>, %144, %cst_65 [1] : vector<8x32xf32> to vector<8xf32>
    %148 = vector.shape_cast %147 : vector<8xf32> to vector<8x1xf32>
    %cst_66 = arith.constant 3.200000e+01 : f32
    %149 = vector.broadcast %cst_66 : f32 to vector<8x1xf32>
    %150 = arith.divf %148, %149 : vector<8x1xf32>
    %151 = vector.broadcast %150 : vector<8x1xf32> to vector<8x32xf32>
    %152 = arith.subf %144, %151 : vector<8x32xf32>
    %153 = vector.broadcast %150 : vector<8x1xf32> to vector<8x32xf32>
    %154 = arith.subf %144, %153 : vector<8x32xf32>
    %155 = arith.mulf %152, %154 : vector<8x32xf32>
    %cst_67 = arith.constant dense<0.000000e+00> : vector<8xf32>
    %156 = vector.multi_reduction <add>, %155, %cst_67 [1] : vector<8x32xf32> to vector<8xf32>
    %157 = vector.shape_cast %156 : vector<8xf32> to vector<8x1xf32>
    %cst_68 = arith.constant 3.100000e+01 : f32
    %158 = vector.broadcast %cst_68 : f32 to vector<8x1xf32>
    %159 = arith.divf %157, %158 : vector<8x1xf32>
    %160 = math.sqrt %159 : vector<8x1xf32>
    %cst_69 = arith.constant 9.99999997E-7 : f32
    %161 = vector.broadcast %cst_69 : f32 to vector<8x1xf32>
    %162 = arith.addf %160, %161 : vector<8x1xf32>
    %163 = tpu.reciprocal %162 {approx = true} : vector<8x1xf32> -> vector<8x1xf32>
    %164 = vector.broadcast %150 : vector<8x1xf32> to vector<8x32xf32>
    %165 = arith.subf %144, %164 : vector<8x32xf32>
    %166 = vector.broadcast %145 : vector<1x32xf32> to vector<8x32xf32>
    %167 = arith.mulf %166, %165 : vector<8x32xf32>
    %168 = vector.broadcast %163 : vector<8x1xf32> to vector<8x32xf32>
    %169 = arith.mulf %167, %168 : vector<8x32xf32>
    %170 = vector.broadcast %146 : vector<1x32xf32> to vector<8x32xf32>
    %171 = arith.addf %169, %170 : vector<8x32xf32>
    %c0_70 = arith.constant 0 : index
    %c0_71 = arith.constant 0 : index
    %172 = vector.load %arg13[%c0_70, %c0_71] : memref<32x32xf32, #tpu.memory_space<vmem>>, vector<32x32xf32>
    %cst_72 = arith.constant dense<0.000000e+00> : vector<8x32xf32>
    %173 = tpu.matmul %171, %172, %cst_72 {dimension_numbers = #tpu.dot_dimension_numbers<[1], [0], [0], [1], [0, 0, 1, 1], [], []>} : vector<8x32xf32>, vector<32x32xf32>, vector<8x32xf32> -> vector<8x32xf32>
    %c0_73 = arith.constant 0 : index
    %c0_74 = arith.constant 0 : index
    %174 = vector.load %arg14[%c0_73, %c0_74] : memref<1x32xf32, #tpu.memory_space<vmem>>, vector<1x32xf32>
    %175 = vector.broadcast %174 : vector<1x32xf32> to vector<8x32xf32>
    %176 = arith.addf %173, %175 : vector<8x32xf32>
    %c0_75 = arith.constant 0 : index
    %c0_76 = arith.constant 0 : index
    %177 = vector.load %arg15[%c0_75, %c0_76] : memref<32x64xf32, #tpu.memory_space<vmem>>, vector<32x64xf32>
    %cst_77 = arith.constant dense<0.000000e+00> : vector<8x64xf32>
    %178 = tpu.matmul %3, %177, %cst_77 {dimension_numbers = #tpu.dot_dimension_numbers<[1], [0], [0], [1], [0, 0, 1, 1], [], []>} : vector<8x32xf32>, vector<32x64xf32>, vector<8x64xf32> -> vector<8x64xf32>
    %c0_78 = arith.constant 0 : index
    %c0_79 = arith.constant 0 : index
    %179 = vector.load %arg16[%c0_78, %c0_79] : memref<1x64xf32, #tpu.memory_space<vmem>>, vector<1x64xf32>
    %180 = vector.broadcast %179 : vector<1x64xf32> to vector<8x64xf32>
    %181 = arith.addf %178, %180 : vector<8x64xf32>
    %182 = vector.extract_strided_slice %181 {offsets = [0, 0], sizes = [8, 32], strides = [1, 1]} : vector<8x64xf32> to vector<8x32xf32>
    %183 = vector.extract_strided_slice %181 {offsets = [0, 32], sizes = [8, 32], strides = [1, 1]} : vector<8x64xf32> to vector<8x32xf32>
    %c0_80 = arith.constant 0 : index
    %c0_81 = arith.constant 0 : index
    %184 = vector.load %arg17[%c0_80, %c0_81] : memref<32x32xf32, #tpu.memory_space<vmem>>, vector<32x32xf32>
    %cst_82 = arith.constant 0.000000e+00 : f32
    %185 = vector.broadcast %cst_82 : f32 to vector<8x32xf32>
    %186 = vector.extract_strided_slice %176 {offsets = [0, 0], sizes = [8, 8], strides = [1, 1]} : vector<8x32xf32> to vector<8x8xf32>
    %187 = vector.extract_strided_slice %182 {offsets = [0, 0], sizes = [8, 8], strides = [1, 1]} : vector<8x32xf32> to vector<8x8xf32>
    %188 = vector.extract_strided_slice %183 {offsets = [0, 0], sizes = [8, 8], strides = [1, 1]} : vector<8x32xf32> to vector<8x8xf32>
    %cst_83 = arith.constant dense<0.000000e+00> : vector<8x8xf32>
    %189 = tpu.matmul %186, %187, %cst_83 {dimension_numbers = #tpu.dot_dimension_numbers<[1], [1], [0], [0], [0, 0, 1, 0], [], []>} : vector<8x8xf32>, vector<8x8xf32>, vector<8x8xf32> -> vector<8x8xf32>
    %cst_84 = arith.constant 0.353553385 : f32
    %190 = vector.broadcast %cst_84 : f32 to vector<8x8xf32>
    %191 = arith.mulf %189, %190 : vector<8x8xf32>
    %cst_85 = arith.constant 0.000000e+00 : f32
    %192 = vector.broadcast %cst_85 : f32 to vector<1x8xf32>
    %193 = arith.cmpf ogt, %7, %192 : vector<1x8xf32>
    %cst_86 = arith.constant -1.000000e+09 : f32
    %194 = vector.shape_cast %193 : vector<1x8xi1> to vector<1x8xi1>
    %195 = vector.broadcast %194 : vector<1x8xi1> to vector<8x8xi1>
    %196 = vector.broadcast %cst_86 : f32 to vector<8x8xf32>
    %197 = arith.select %195, %191, %196 : vector<8x8xi1>, vector<8x8xf32>
    %cst_87 = arith.constant dense<0xFF800000> : vector<8xf32>
    %198 = vector.multi_reduction <maximumf>, %197, %cst_87 [1] : vector<8x8xf32> to vector<8xf32>
    %199 = vector.shape_cast %198 : vector<8xf32> to vector<8x1xf32>
    %200 = vector.broadcast %199 : vector<8x1xf32> to vector<8x8xf32>
    %201 = arith.subf %197, %200 : vector<8x8xf32>
    %202 = math.exp %201 : vector<8x8xf32>
    %cst_88 = arith.constant dense<0.000000e+00> : vector<8xf32>
    %203 = vector.multi_reduction <add>, %202, %cst_88 [1] : vector<8x8xf32> to vector<8xf32>
    %204 = vector.shape_cast %203 : vector<8xf32> to vector<8x1xf32>
    %205 = tpu.reciprocal %204 {approx = true} : vector<8x1xf32> -> vector<8x1xf32>
    %206 = vector.broadcast %205 : vector<8x1xf32> to vector<8x8xf32>
    %207 = arith.mulf %202, %206 : vector<8x8xf32>
    %cst_89 = arith.constant dense<0.000000e+00> : vector<8x8xf32>
    %208 = tpu.matmul %207, %188, %cst_89 {dimension_numbers = #tpu.dot_dimension_numbers<[1], [0], [0], [1], [0, 0, 1, 1], [], []>} : vector<8x8xf32>, vector<8x8xf32>, vector<8x8xf32> -> vector<8x8xf32>
    %209 = vector.extract_strided_slice %184 {offsets = [0, 0], sizes = [8, 32], strides = [1, 1]} : vector<32x32xf32> to vector<8x32xf32>
    %cst_90 = arith.constant dense<0.000000e+00> : vector<8x32xf32>
    %210 = tpu.matmul %208, %209, %cst_90 {dimension_numbers = #tpu.dot_dimension_numbers<[1], [0], [0], [1], [0, 0, 1, 1], [], []>} : vector<8x8xf32>, vector<8x32xf32>, vector<8x32xf32> -> vector<8x32xf32>
    %211 = arith.addf %185, %210 : vector<8x32xf32>
    %212 = vector.extract_strided_slice %176 {offsets = [0, 8], sizes = [8, 8], strides = [1, 1]} : vector<8x32xf32> to vector<8x8xf32>
    %213 = vector.extract_strided_slice %182 {offsets = [0, 8], sizes = [8, 8], strides = [1, 1]} : vector<8x32xf32> to vector<8x8xf32>
    %214 = vector.extract_strided_slice %183 {offsets = [0, 8], sizes = [8, 8], strides = [1, 1]} : vector<8x32xf32> to vector<8x8xf32>
    %cst_91 = arith.constant dense<0.000000e+00> : vector<8x8xf32>
    %215 = tpu.matmul %212, %213, %cst_91 {dimension_numbers = #tpu.dot_dimension_numbers<[1], [1], [0], [0], [0, 0, 1, 0], [], []>} : vector<8x8xf32>, vector<8x8xf32>, vector<8x8xf32> -> vector<8x8xf32>
    %cst_92 = arith.constant 0.353553385 : f32
    %216 = vector.broadcast %cst_92 : f32 to vector<8x8xf32>
    %217 = arith.mulf %215, %216 : vector<8x8xf32>
    %cst_93 = arith.constant 0.000000e+00 : f32
    %218 = vector.broadcast %cst_93 : f32 to vector<1x8xf32>
    %219 = arith.cmpf ogt, %7, %218 : vector<1x8xf32>
    %cst_94 = arith.constant -1.000000e+09 : f32
    %220 = vector.shape_cast %219 : vector<1x8xi1> to vector<1x8xi1>
    %221 = vector.broadcast %220 : vector<1x8xi1> to vector<8x8xi1>
    %222 = vector.broadcast %cst_94 : f32 to vector<8x8xf32>
    %223 = arith.select %221, %217, %222 : vector<8x8xi1>, vector<8x8xf32>
    %cst_95 = arith.constant dense<0xFF800000> : vector<8xf32>
    %224 = vector.multi_reduction <maximumf>, %223, %cst_95 [1] : vector<8x8xf32> to vector<8xf32>
    %225 = vector.shape_cast %224 : vector<8xf32> to vector<8x1xf32>
    %226 = vector.broadcast %225 : vector<8x1xf32> to vector<8x8xf32>
    %227 = arith.subf %223, %226 : vector<8x8xf32>
    %228 = math.exp %227 : vector<8x8xf32>
    %cst_96 = arith.constant dense<0.000000e+00> : vector<8xf32>
    %229 = vector.multi_reduction <add>, %228, %cst_96 [1] : vector<8x8xf32> to vector<8xf32>
    %230 = vector.shape_cast %229 : vector<8xf32> to vector<8x1xf32>
    %231 = tpu.reciprocal %230 {approx = true} : vector<8x1xf32> -> vector<8x1xf32>
    %232 = vector.broadcast %231 : vector<8x1xf32> to vector<8x8xf32>
    %233 = arith.mulf %228, %232 : vector<8x8xf32>
    %cst_97 = arith.constant dense<0.000000e+00> : vector<8x8xf32>
    %234 = tpu.matmul %233, %214, %cst_97 {dimension_numbers = #tpu.dot_dimension_numbers<[1], [0], [0], [1], [0, 0, 1, 1], [], []>} : vector<8x8xf32>, vector<8x8xf32>, vector<8x8xf32> -> vector<8x8xf32>
    %235 = vector.extract_strided_slice %184 {offsets = [8, 0], sizes = [8, 32], strides = [1, 1]} : vector<32x32xf32> to vector<8x32xf32>
    %cst_98 = arith.constant dense<0.000000e+00> : vector<8x32xf32>
    %236 = tpu.matmul %234, %235, %cst_98 {dimension_numbers = #tpu.dot_dimension_numbers<[1], [0], [0], [1], [0, 0, 1, 1], [], []>} : vector<8x8xf32>, vector<8x32xf32>, vector<8x32xf32> -> vector<8x32xf32>
    %237 = arith.addf %211, %236 : vector<8x32xf32>
    %238 = vector.extract_strided_slice %176 {offsets = [0, 16], sizes = [8, 8], strides = [1, 1]} : vector<8x32xf32> to vector<8x8xf32>
    %239 = vector.extract_strided_slice %182 {offsets = [0, 16], sizes = [8, 8], strides = [1, 1]} : vector<8x32xf32> to vector<8x8xf32>
    %240 = vector.extract_strided_slice %183 {offsets = [0, 16], sizes = [8, 8], strides = [1, 1]} : vector<8x32xf32> to vector<8x8xf32>
    %cst_99 = arith.constant dense<0.000000e+00> : vector<8x8xf32>
    %241 = tpu.matmul %238, %239, %cst_99 {dimension_numbers = #tpu.dot_dimension_numbers<[1], [1], [0], [0], [0, 0, 1, 0], [], []>} : vector<8x8xf32>, vector<8x8xf32>, vector<8x8xf32> -> vector<8x8xf32>
    %cst_100 = arith.constant 0.353553385 : f32
    %242 = vector.broadcast %cst_100 : f32 to vector<8x8xf32>
    %243 = arith.mulf %241, %242 : vector<8x8xf32>
    %cst_101 = arith.constant 0.000000e+00 : f32
    %244 = vector.broadcast %cst_101 : f32 to vector<1x8xf32>
    %245 = arith.cmpf ogt, %7, %244 : vector<1x8xf32>
    %cst_102 = arith.constant -1.000000e+09 : f32
    %246 = vector.shape_cast %245 : vector<1x8xi1> to vector<1x8xi1>
    %247 = vector.broadcast %246 : vector<1x8xi1> to vector<8x8xi1>
    %248 = vector.broadcast %cst_102 : f32 to vector<8x8xf32>
    %249 = arith.select %247, %243, %248 : vector<8x8xi1>, vector<8x8xf32>
    %cst_103 = arith.constant dense<0xFF800000> : vector<8xf32>
    %250 = vector.multi_reduction <maximumf>, %249, %cst_103 [1] : vector<8x8xf32> to vector<8xf32>
    %251 = vector.shape_cast %250 : vector<8xf32> to vector<8x1xf32>
    %252 = vector.broadcast %251 : vector<8x1xf32> to vector<8x8xf32>
    %253 = arith.subf %249, %252 : vector<8x8xf32>
    %254 = math.exp %253 : vector<8x8xf32>
    %cst_104 = arith.constant dense<0.000000e+00> : vector<8xf32>
    %255 = vector.multi_reduction <add>, %254, %cst_104 [1] : vector<8x8xf32> to vector<8xf32>
    %256 = vector.shape_cast %255 : vector<8xf32> to vector<8x1xf32>
    %257 = tpu.reciprocal %256 {approx = true} : vector<8x1xf32> -> vector<8x1xf32>
    %258 = vector.broadcast %257 : vector<8x1xf32> to vector<8x8xf32>
    %259 = arith.mulf %254, %258 : vector<8x8xf32>
    %cst_105 = arith.constant dense<0.000000e+00> : vector<8x8xf32>
    %260 = tpu.matmul %259, %240, %cst_105 {dimension_numbers = #tpu.dot_dimension_numbers<[1], [0], [0], [1], [0, 0, 1, 1], [], []>} : vector<8x8xf32>, vector<8x8xf32>, vector<8x8xf32> -> vector<8x8xf32>
    %261 = vector.extract_strided_slice %184 {offsets = [16, 0], sizes = [8, 32], strides = [1, 1]} : vector<32x32xf32> to vector<8x32xf32>
    %cst_106 = arith.constant dense<0.000000e+00> : vector<8x32xf32>
    %262 = tpu.matmul %260, %261, %cst_106 {dimension_numbers = #tpu.dot_dimension_numbers<[1], [0], [0], [1], [0, 0, 1, 1], [], []>} : vector<8x8xf32>, vector<8x32xf32>, vector<8x32xf32> -> vector<8x32xf32>
    %263 = arith.addf %237, %262 : vector<8x32xf32>
    %264 = vector.extract_strided_slice %176 {offsets = [0, 24], sizes = [8, 8], strides = [1, 1]} : vector<8x32xf32> to vector<8x8xf32>
    %265 = vector.extract_strided_slice %182 {offsets = [0, 24], sizes = [8, 8], strides = [1, 1]} : vector<8x32xf32> to vector<8x8xf32>
    %266 = vector.extract_strided_slice %183 {offsets = [0, 24], sizes = [8, 8], strides = [1, 1]} : vector<8x32xf32> to vector<8x8xf32>
    %cst_107 = arith.constant dense<0.000000e+00> : vector<8x8xf32>
    %267 = tpu.matmul %264, %265, %cst_107 {dimension_numbers = #tpu.dot_dimension_numbers<[1], [1], [0], [0], [0, 0, 1, 0], [], []>} : vector<8x8xf32>, vector<8x8xf32>, vector<8x8xf32> -> vector<8x8xf32>
    %cst_108 = arith.constant 0.353553385 : f32
    %268 = vector.broadcast %cst_108 : f32 to vector<8x8xf32>
    %269 = arith.mulf %267, %268 : vector<8x8xf32>
    %cst_109 = arith.constant 0.000000e+00 : f32
    %270 = vector.broadcast %cst_109 : f32 to vector<1x8xf32>
    %271 = arith.cmpf ogt, %7, %270 : vector<1x8xf32>
    %cst_110 = arith.constant -1.000000e+09 : f32
    %272 = vector.shape_cast %271 : vector<1x8xi1> to vector<1x8xi1>
    %273 = vector.broadcast %272 : vector<1x8xi1> to vector<8x8xi1>
    %274 = vector.broadcast %cst_110 : f32 to vector<8x8xf32>
    %275 = arith.select %273, %269, %274 : vector<8x8xi1>, vector<8x8xf32>
    %cst_111 = arith.constant dense<0xFF800000> : vector<8xf32>
    %276 = vector.multi_reduction <maximumf>, %275, %cst_111 [1] : vector<8x8xf32> to vector<8xf32>
    %277 = vector.shape_cast %276 : vector<8xf32> to vector<8x1xf32>
    %278 = vector.broadcast %277 : vector<8x1xf32> to vector<8x8xf32>
    %279 = arith.subf %275, %278 : vector<8x8xf32>
    %280 = math.exp %279 : vector<8x8xf32>
    %cst_112 = arith.constant dense<0.000000e+00> : vector<8xf32>
    %281 = vector.multi_reduction <add>, %280, %cst_112 [1] : vector<8x8xf32> to vector<8xf32>
    %282 = vector.shape_cast %281 : vector<8xf32> to vector<8x1xf32>
    %283 = tpu.reciprocal %282 {approx = true} : vector<8x1xf32> -> vector<8x1xf32>
    %284 = vector.broadcast %283 : vector<8x1xf32> to vector<8x8xf32>
    %285 = arith.mulf %280, %284 : vector<8x8xf32>
    %cst_113 = arith.constant dense<0.000000e+00> : vector<8x8xf32>
    %286 = tpu.matmul %285, %266, %cst_113 {dimension_numbers = #tpu.dot_dimension_numbers<[1], [0], [0], [1], [0, 0, 1, 1], [], []>} : vector<8x8xf32>, vector<8x8xf32>, vector<8x8xf32> -> vector<8x8xf32>
    %287 = vector.extract_strided_slice %184 {offsets = [24, 0], sizes = [8, 32], strides = [1, 1]} : vector<32x32xf32> to vector<8x32xf32>
    %cst_114 = arith.constant dense<0.000000e+00> : vector<8x32xf32>
    %288 = tpu.matmul %286, %287, %cst_114 {dimension_numbers = #tpu.dot_dimension_numbers<[1], [0], [0], [1], [0, 0, 1, 1], [], []>} : vector<8x8xf32>, vector<8x32xf32>, vector<8x32xf32> -> vector<8x32xf32>
    %289 = arith.addf %263, %288 : vector<8x32xf32>
    %290 = arith.addf %144, %289 : vector<8x32xf32>
    %c0_115 = arith.constant 0 : index
    %c0_116 = arith.constant 0 : index
    %291 = vector.load %arg18[%c0_115, %c0_116] : memref<1x32xf32, #tpu.memory_space<vmem>>, vector<1x32xf32>
    %292 = vector.broadcast %291 : vector<1x32xf32> to vector<8x32xf32>
    %293 = arith.addf %290, %292 : vector<8x32xf32>
    %c0_117 = arith.constant 0 : index
    %c0_118 = arith.constant 0 : index
    %294 = vector.load %arg19[%c0_117, %c0_118] : memref<1x32xf32, #tpu.memory_space<vmem>>, vector<1x32xf32>
    %c0_119 = arith.constant 0 : index
    %c0_120 = arith.constant 0 : index
    %295 = vector.load %arg20[%c0_119, %c0_120] : memref<1x32xf32, #tpu.memory_space<vmem>>, vector<1x32xf32>
    %cst_121 = arith.constant dense<0.000000e+00> : vector<8xf32>
    %296 = vector.multi_reduction <add>, %293, %cst_121 [1] : vector<8x32xf32> to vector<8xf32>
    %297 = vector.shape_cast %296 : vector<8xf32> to vector<8x1xf32>
    %cst_122 = arith.constant 3.200000e+01 : f32
    %298 = vector.broadcast %cst_122 : f32 to vector<8x1xf32>
    %299 = arith.divf %297, %298 : vector<8x1xf32>
    %300 = vector.broadcast %299 : vector<8x1xf32> to vector<8x32xf32>
    %301 = arith.subf %293, %300 : vector<8x32xf32>
    %302 = vector.broadcast %299 : vector<8x1xf32> to vector<8x32xf32>
    %303 = arith.subf %293, %302 : vector<8x32xf32>
    %304 = arith.mulf %301, %303 : vector<8x32xf32>
    %cst_123 = arith.constant dense<0.000000e+00> : vector<8xf32>
    %305 = vector.multi_reduction <add>, %304, %cst_123 [1] : vector<8x32xf32> to vector<8xf32>
    %306 = vector.shape_cast %305 : vector<8xf32> to vector<8x1xf32>
    %cst_124 = arith.constant 3.100000e+01 : f32
    %307 = vector.broadcast %cst_124 : f32 to vector<8x1xf32>
    %308 = arith.divf %306, %307 : vector<8x1xf32>
    %309 = math.sqrt %308 : vector<8x1xf32>
    %cst_125 = arith.constant 9.99999997E-7 : f32
    %310 = vector.broadcast %cst_125 : f32 to vector<8x1xf32>
    %311 = arith.addf %309, %310 : vector<8x1xf32>
    %312 = tpu.reciprocal %311 {approx = true} : vector<8x1xf32> -> vector<8x1xf32>
    %313 = vector.broadcast %299 : vector<8x1xf32> to vector<8x32xf32>
    %314 = arith.subf %293, %313 : vector<8x32xf32>
    %315 = vector.broadcast %294 : vector<1x32xf32> to vector<8x32xf32>
    %316 = arith.mulf %315, %314 : vector<8x32xf32>
    %317 = vector.broadcast %312 : vector<8x1xf32> to vector<8x32xf32>
    %318 = arith.mulf %316, %317 : vector<8x32xf32>
    %319 = vector.broadcast %295 : vector<1x32xf32> to vector<8x32xf32>
    %320 = arith.addf %318, %319 : vector<8x32xf32>
    %c0_126 = arith.constant 0 : index
    %c0_127 = arith.constant 0 : index
    %321 = vector.load %arg21[%c0_126, %c0_127] : memref<32x128xf32, #tpu.memory_space<vmem>>, vector<32x128xf32>
    %cst_128 = arith.constant dense<0.000000e+00> : vector<8x128xf32>
    %322 = tpu.matmul %320, %321, %cst_128 {dimension_numbers = #tpu.dot_dimension_numbers<[1], [0], [0], [1], [0, 0, 1, 1], [], []>} : vector<8x32xf32>, vector<32x128xf32>, vector<8x128xf32> -> vector<8x128xf32>
    %c0_129 = arith.constant 0 : index
    %c0_130 = arith.constant 0 : index
    %323 = vector.load %arg22[%c0_129, %c0_130] : memref<1x128xf32, #tpu.memory_space<vmem>>, vector<1x128xf32>
    %324 = vector.broadcast %323 : vector<1x128xf32> to vector<8x128xf32>
    %325 = arith.addf %322, %324 : vector<8x128xf32>
    %cst_131 = arith.constant 0.000000e+00 : f32
    %326 = vector.broadcast %cst_131 : f32 to vector<8x128xf32>
    %327 = arith.maximumf %325, %326 : vector<8x128xf32>
    %c0_132 = arith.constant 0 : index
    %c0_133 = arith.constant 0 : index
    %328 = vector.load %arg23[%c0_132, %c0_133] : memref<128x32xf32, #tpu.memory_space<vmem>>, vector<128x32xf32>
    %cst_134 = arith.constant dense<0.000000e+00> : vector<8x32xf32>
    %329 = tpu.matmul %327, %328, %cst_134 {dimension_numbers = #tpu.dot_dimension_numbers<[1], [0], [0], [1], [0, 0, 1, 1], [], []>} : vector<8x128xf32>, vector<128x32xf32>, vector<8x32xf32> -> vector<8x32xf32>
    %330 = arith.addf %293, %329 : vector<8x32xf32>
    %c0_135 = arith.constant 0 : index
    %c0_136 = arith.constant 0 : index
    %331 = vector.load %arg24[%c0_135, %c0_136] : memref<1x32xf32, #tpu.memory_space<vmem>>, vector<1x32xf32>
    %332 = vector.broadcast %331 : vector<1x32xf32> to vector<8x32xf32>
    %333 = arith.addf %330, %332 : vector<8x32xf32>
    %c0_137 = arith.constant 0 : index
    %c0_138 = arith.constant 0 : index
    %c0_139 = arith.constant 0 : index
    %334 = vector.load %arg25[%c0_137, %c0_138, %c0_139] : memref<1x8x32xf32, #tpu.memory_space<vmem>>, vector<1x8x32xf32>
    %335 = vector.shape_cast %334 : vector<1x8x32xf32> to vector<8x32xf32>
    %336 = vector.shape_cast %333 : vector<8x32xf32> to vector<1x8x32xf32>
    tpu.vector_store %arg25[%c0_137, %c0_138, %c0_139], %336 {strides = array<i32>} : memref<1x8x32xf32, #tpu.memory_space<vmem>>, vector<1x8x32xf32>,
    return
  }
  func.func @transform_0(%arg0: i32) -> (i32, i32, i32) {
    %c0_i32 = arith.constant 0 : i32
    %c0_i32_0 = arith.constant 0 : i32
    %c0_i32_1 = arith.constant 0 : i32
    return %arg0, %c0_i32, %c0_i32_0 : i32, i32, i32
  }
  func.func @transform_1(%arg0: i32) -> (i32, i32, i32) {
    %c0_i32 = arith.constant 0 : i32
    %c0_i32_0 = arith.constant 0 : i32
    %c0_i32_1 = arith.constant 0 : i32
    return %arg0, %c0_i32, %c0_i32_0 : i32, i32, i32
  }
  func.func @transform_2(%arg0: i32) -> (i32, i32, i32) {
    %c0_i32 = arith.constant 0 : i32
    %c0_i32_0 = arith.constant 0 : i32
    %c0_i32_1 = arith.constant 0 : i32
    return %arg0, %c0_i32, %c0_i32_0 : i32, i32, i32
  }
  func.func @transform_3(%arg0: i32) -> (i32, i32, i32) {
    %c0_i32 = arith.constant 0 : i32
    %c0_i32_0 = arith.constant 0 : i32
    %c0_i32_1 = arith.constant 0 : i32
    return %arg0, %c0_i32, %c0_i32_0 : i32, i32, i32
  }
  func.func @transform_4(%arg0: i32) -> (i32, i32) {
    %c0_i32 = arith.constant 0 : i32
    %c0_i32_0 = arith.constant 0 : i32
    %c0_i32_1 = arith.constant 0 : i32
    return %c0_i32, %c0_i32_0 : i32, i32
  }
  func.func @transform_5(%arg0: i32) -> (i32, i32) {
    %c0_i32 = arith.constant 0 : i32
    %c0_i32_0 = arith.constant 0 : i32
    %c0_i32_1 = arith.constant 0 : i32
    return %c0_i32, %c0_i32_0 : i32, i32
  }
  func.func @transform_6(%arg0: i32) -> (i32, i32) {
    %c0_i32 = arith.constant 0 : i32
    %c0_i32_0 = arith.constant 0 : i32
    %c0_i32_1 = arith.constant 0 : i32
    return %c0_i32, %c0_i32_0 : i32, i32
  }
  func.func @transform_7(%arg0: i32) -> (i32, i32) {
    %c0_i32 = arith.constant 0 : i32
    %c0_i32_0 = arith.constant 0 : i32
    %c0_i32_1 = arith.constant 0 : i32
    return %c0_i32, %c0_i32_0 : i32, i32
  }
  func.func @transform_8(%arg0: i32) -> (i32, i32) {
    %c0_i32 = arith.constant 0 : i32
    %c0_i32_0 = arith.constant 0 : i32
    %c0_i32_1 = arith.constant 0 : i32
    return %c0_i32, %c0_i32_0 : i32, i32
  }
  func.func @transform_9(%arg0: i32) -> (i32, i32) {
    %c0_i32 = arith.constant 0 : i32
    %c0_i32_0 = arith.constant 0 : i32
    %c0_i32_1 = arith.constant 0 : i32
    return %c0_i32, %c0_i32_0 : i32, i32
  }
  func.func @transform_10(%arg0: i32) -> (i32, i32) {
    %c0_i32 = arith.constant 0 : i32
    %c0_i32_0 = arith.constant 0 : i32
    %c0_i32_1 = arith.constant 0 : i32
    return %c0_i32, %c0_i32_0 : i32, i32
  }
  func.func @transform_11(%arg0: i32) -> (i32, i32) {
    %c0_i32 = arith.constant 0 : i32
    %c0_i32_0 = arith.constant 0 : i32
    %c0_i32_1 = arith.constant 0 : i32
    return %c0_i32, %c0_i32_0 : i32, i32
  }
  func.func @transform_12(%arg0: i32) -> (i32, i32) {
    %c0_i32 = arith.constant 0 : i32
    %c0_i32_0 = arith.constant 0 : i32
    %c0_i32_1 = arith.constant 0 : i32
    return %c0_i32, %c0_i32_0 : i32, i32
  }
  func.func @transform_13(%arg0: i32) -> (i32, i32) {
    %c0_i32 = arith.constant 0 : i32
    %c0_i32_0 = arith.constant 0 : i32
    %c0_i32_1 = arith.constant 0 : i32
    return %c0_i32, %c0_i32_0 : i32, i32
  }
  func.func @transform_14(%arg0: i32) -> (i32, i32) {
    %c0_i32 = arith.constant 0 : i32
    %c0_i32_0 = arith.constant 0 : i32
    %c0_i32_1 = arith.constant 0 : i32
    return %c0_i32, %c0_i32_0 : i32, i32
  }
  func.func @transform_15(%arg0: i32) -> (i32, i32) {
    %c0_i32 = arith.constant 0 : i32
    %c0_i32_0 = arith.constant 0 : i32
    %c0_i32_1 = arith.constant 0 : i32
    return %c0_i32, %c0_i32_0 : i32, i32
  }
  func.func @transform_16(%arg0: i32) -> (i32, i32) {
    %c0_i32 = arith.constant 0 : i32
    %c0_i32_0 = arith.constant 0 : i32
    %c0_i32_1 = arith.constant 0 : i32
    return %c0_i32, %c0_i32_0 : i32, i32
  }
  func.func @transform_17(%arg0: i32) -> (i32, i32) {
    %c0_i32 = arith.constant 0 : i32
    %c0_i32_0 = arith.constant 0 : i32
    %c0_i32_1 = arith.constant 0 : i32
    return %c0_i32, %c0_i32_0 : i32, i32
  }
  func.func @transform_18(%arg0: i32) -> (i32, i32) {
    %c0_i32 = arith.constant 0 : i32
    %c0_i32_0 = arith.constant 0 : i32
    %c0_i32_1 = arith.constant 0 : i32
    return %c0_i32, %c0_i32_0 : i32, i32
  }
  func.func @transform_19(%arg0: i32) -> (i32, i32) {
    %c0_i32 = arith.constant 0 : i32
    %c0_i32_0 = arith.constant 0 : i32
    %c0_i32_1 = arith.constant 0 : i32
    return %c0_i32, %c0_i32_0 : i32, i32
  }
  func.func @transform_20(%arg0: i32) -> (i32, i32) {
    %c0_i32 = arith.constant 0 : i32
    %c0_i32_0 = arith.constant 0 : i32
    %c0_i32_1 = arith.constant 0 : i32
    return %c0_i32, %c0_i32_0 : i32, i32
  }
  func.func @transform_21(%arg0: i32) -> (i32, i32) {
    %c0_i32 = arith.constant 0 : i32
    %c0_i32_0 = arith.constant 0 : i32
    %c0_i32_1 = arith.constant 0 : i32
    return %c0_i32, %c0_i32_0 : i32, i32
  }
  func.func @transform_22(%arg0: i32) -> (i32, i32) {
    %c0_i32 = arith.constant 0 : i32
    %c0_i32_0 = arith.constant 0 : i32
    %c0_i32_1 = arith.constant 0 : i32
    return %c0_i32, %c0_i32_0 : i32, i32
  }
  func.func @transform_23(%arg0: i32) -> (i32, i32) {
    %c0_i32 = arith.constant 0 : i32
    %c0_i32_0 = arith.constant 0 : i32
    %c0_i32_1 = arith.constant 0 : i32
    return %c0_i32, %c0_i32_0 : i32, i32
  }
  func.func @transform_24(%arg0: i32) -> (i32, i32, i32) {
    %c0_i32 = arith.constant 0 : i32
    %c0_i32_0 = arith.constant 0 : i32
    %c0_i32_1 = arith.constant 0 : i32
    return %arg0, %c0_i32, %c0_i32_0 : i32, i32, i32
  }
}

module attributes {stable_mosaic.version = 11 : i64} {
  func.func @_decoder_head_kernel(%arg0: i32, %arg1: memref<1x8x32xf32, #tpu.memory_space<vmem>>, %arg2: memref<1x32xf32, #tpu.memory_space<vmem>>, %arg3: memref<1x32xf32, #tpu.memory_space<vmem>>, %arg4: memref<32x154xf32, #tpu.memory_space<vmem>>, %arg5: memref<1x154xf32, #tpu.memory_space<vmem>>, %arg6: memref<32x4xf32, #tpu.memory_space<vmem>>, %arg7: memref<1x4xf32, #tpu.memory_space<vmem>>, %arg8: memref<1x8x154xf32, #tpu.memory_space<vmem>>, %arg9: memref<1x8x4xf32, #tpu.memory_space<vmem>>) attributes {dimension_semantics = [#tpu.dimension_semantics<parallel>], iteration_bounds = array<i64: 2>, scalar_prefetch = 0 : i64, scratch_operands = 0 : i64, tpu.core_type = #tpu.core_type<tc>, window_params = [{transform_indices = @transform_0, window_bounds = array<i64: 1, 8, 32>}, {pipeline_mode = #tpu.pipeline_mode<synchronous>, transform_indices = @transform_1, window_bounds = array<i64: 1, 32>}, {pipeline_mode = #tpu.pipeline_mode<synchronous>, transform_indices = @transform_2, window_bounds = array<i64: 1, 32>}, {pipeline_mode = #tpu.pipeline_mode<synchronous>, transform_indices = @transform_3, window_bounds = array<i64: 32, 154>}, {pipeline_mode = #tpu.pipeline_mode<synchronous>, transform_indices = @transform_4, window_bounds = array<i64: 1, 154>}, {pipeline_mode = #tpu.pipeline_mode<synchronous>, transform_indices = @transform_5, window_bounds = array<i64: 32, 4>}, {pipeline_mode = #tpu.pipeline_mode<synchronous>, transform_indices = @transform_6, window_bounds = array<i64: 1, 4>}, {transform_indices = @transform_7, window_bounds = array<i64: 1, 8, 154>}, {transform_indices = @transform_8, window_bounds = array<i64: 1, 8, 4>}]} {
    %c0 = arith.constant 0 : index
    %c0_0 = arith.constant 0 : index
    %c0_1 = arith.constant 0 : index
    %0 = vector.load %arg1[%c0, %c0_0, %c0_1] : memref<1x8x32xf32, #tpu.memory_space<vmem>>, vector<1x8x32xf32>
    %1 = vector.shape_cast %0 : vector<1x8x32xf32> to vector<8x32xf32>
    %c0_2 = arith.constant 0 : index
    %c0_3 = arith.constant 0 : index
    %2 = vector.load %arg2[%c0_2, %c0_3] : memref<1x32xf32, #tpu.memory_space<vmem>>, vector<1x32xf32>
    %c0_4 = arith.constant 0 : index
    %c0_5 = arith.constant 0 : index
    %3 = vector.load %arg3[%c0_4, %c0_5] : memref<1x32xf32, #tpu.memory_space<vmem>>, vector<1x32xf32>
    %cst = arith.constant dense<0.000000e+00> : vector<8xf32>
    %4 = vector.multi_reduction <add>, %1, %cst [1] : vector<8x32xf32> to vector<8xf32>
    %5 = vector.shape_cast %4 : vector<8xf32> to vector<8x1xf32>
    %cst_6 = arith.constant 3.200000e+01 : f32
    %6 = vector.broadcast %cst_6 : f32 to vector<8x1xf32>
    %7 = arith.divf %5, %6 : vector<8x1xf32>
    %8 = vector.broadcast %7 : vector<8x1xf32> to vector<8x32xf32>
    %9 = arith.subf %1, %8 : vector<8x32xf32>
    %10 = vector.broadcast %7 : vector<8x1xf32> to vector<8x32xf32>
    %11 = arith.subf %1, %10 : vector<8x32xf32>
    %12 = arith.mulf %9, %11 : vector<8x32xf32>
    %cst_7 = arith.constant dense<0.000000e+00> : vector<8xf32>
    %13 = vector.multi_reduction <add>, %12, %cst_7 [1] : vector<8x32xf32> to vector<8xf32>
    %14 = vector.shape_cast %13 : vector<8xf32> to vector<8x1xf32>
    %cst_8 = arith.constant 3.100000e+01 : f32
    %15 = vector.broadcast %cst_8 : f32 to vector<8x1xf32>
    %16 = arith.divf %14, %15 : vector<8x1xf32>
    %17 = math.sqrt %16 : vector<8x1xf32>
    %cst_9 = arith.constant 9.99999997E-7 : f32
    %18 = vector.broadcast %cst_9 : f32 to vector<8x1xf32>
    %19 = arith.addf %17, %18 : vector<8x1xf32>
    %20 = tpu.reciprocal %19 {approx = true} : vector<8x1xf32> -> vector<8x1xf32>
    %21 = vector.broadcast %7 : vector<8x1xf32> to vector<8x32xf32>
    %22 = arith.subf %1, %21 : vector<8x32xf32>
    %23 = vector.broadcast %2 : vector<1x32xf32> to vector<8x32xf32>
    %24 = arith.mulf %23, %22 : vector<8x32xf32>
    %25 = vector.broadcast %20 : vector<8x1xf32> to vector<8x32xf32>
    %26 = arith.mulf %24, %25 : vector<8x32xf32>
    %27 = vector.broadcast %3 : vector<1x32xf32> to vector<8x32xf32>
    %28 = arith.addf %26, %27 : vector<8x32xf32>
    %c0_10 = arith.constant 0 : index
    %c0_11 = arith.constant 0 : index
    %29 = vector.load %arg4[%c0_10, %c0_11] : memref<32x154xf32, #tpu.memory_space<vmem>>, vector<32x154xf32>
    %cst_12 = arith.constant dense<0.000000e+00> : vector<8x154xf32>
    %30 = tpu.matmul %28, %29, %cst_12 {dimension_numbers = #tpu.dot_dimension_numbers<[1], [0], [0], [1], [0, 0, 1, 1], [], []>} : vector<8x32xf32>, vector<32x154xf32>, vector<8x154xf32> -> vector<8x154xf32>
    %c0_13 = arith.constant 0 : index
    %c0_14 = arith.constant 0 : index
    %31 = vector.load %arg5[%c0_13, %c0_14] : memref<1x154xf32, #tpu.memory_space<vmem>>, vector<1x154xf32>
    %32 = vector.broadcast %31 : vector<1x154xf32> to vector<8x154xf32>
    %33 = arith.addf %30, %32 : vector<8x154xf32>
    %cst_15 = arith.constant dense<0xFF800000> : vector<8xf32>
    %34 = vector.multi_reduction <maximumf>, %33, %cst_15 [1] : vector<8x154xf32> to vector<8xf32>
    %35 = vector.shape_cast %34 : vector<8xf32> to vector<8x1xf32>
    %36 = vector.broadcast %35 : vector<8x1xf32> to vector<8x154xf32>
    %37 = arith.subf %33, %36 : vector<8x154xf32>
    %38 = math.exp %37 : vector<8x154xf32>
    %cst_16 = arith.constant dense<0.000000e+00> : vector<8xf32>
    %39 = vector.multi_reduction <add>, %38, %cst_16 [1] : vector<8x154xf32> to vector<8xf32>
    %40 = vector.shape_cast %39 : vector<8xf32> to vector<8x1xf32>
    %41 = math.log %40 : vector<8x1xf32>
    %42 = vector.broadcast %41 : vector<8x1xf32> to vector<8x154xf32>
    %43 = arith.subf %37, %42 : vector<8x154xf32>
    %c0_17 = arith.constant 0 : index
    %c0_18 = arith.constant 0 : index
    %c0_19 = arith.constant 0 : index
    %44 = vector.load %arg8[%c0_17, %c0_18, %c0_19] : memref<1x8x154xf32, #tpu.memory_space<vmem>>, vector<1x8x154xf32>
    %45 = vector.shape_cast %44 : vector<1x8x154xf32> to vector<8x154xf32>
    %46 = vector.shape_cast %43 : vector<8x154xf32> to vector<1x8x154xf32>
    tpu.vector_store %arg8[%c0_17, %c0_18, %c0_19], %46 {strides = array<i32>} : memref<1x8x154xf32, #tpu.memory_space<vmem>>, vector<1x8x154xf32>,
    %c0_20 = arith.constant 0 : index
    %c0_21 = arith.constant 0 : index
    %47 = vector.load %arg6[%c0_20, %c0_21] : memref<32x4xf32, #tpu.memory_space<vmem>>, vector<32x4xf32>
    %cst_22 = arith.constant dense<0.000000e+00> : vector<8x4xf32>
    %48 = tpu.matmul %28, %47, %cst_22 {dimension_numbers = #tpu.dot_dimension_numbers<[1], [0], [0], [1], [0, 0, 1, 1], [], []>} : vector<8x32xf32>, vector<32x4xf32>, vector<8x4xf32> -> vector<8x4xf32>
    %c0_23 = arith.constant 0 : index
    %c0_24 = arith.constant 0 : index
    %49 = vector.load %arg7[%c0_23, %c0_24] : memref<1x4xf32, #tpu.memory_space<vmem>>, vector<1x4xf32>
    %50 = vector.broadcast %49 : vector<1x4xf32> to vector<8x4xf32>
    %51 = arith.addf %48, %50 : vector<8x4xf32>
    %cst_25 = arith.constant 0.000000e+00 : f32
    %52 = vector.broadcast %cst_25 : f32 to vector<8x4xf32>
    %53 = arith.subf %52, %51 : vector<8x4xf32>
    %54 = math.exp %53 : vector<8x4xf32>
    %cst_26 = arith.constant 1.000000e+00 : f32
    %55 = vector.broadcast %cst_26 : f32 to vector<8x4xf32>
    %56 = arith.addf %55, %54 : vector<8x4xf32>
    %cst_27 = arith.constant 1.000000e+00 : f32
    %57 = vector.broadcast %cst_27 : f32 to vector<8x4xf32>
    %58 = arith.divf %57, %56 : vector<8x4xf32>
    %c0_28 = arith.constant 0 : index
    %c0_29 = arith.constant 0 : index
    %c0_30 = arith.constant 0 : index
    %59 = vector.load %arg9[%c0_28, %c0_29, %c0_30] : memref<1x8x4xf32, #tpu.memory_space<vmem>>, vector<1x8x4xf32>
    %60 = vector.shape_cast %59 : vector<1x8x4xf32> to vector<8x4xf32>
    %61 = vector.shape_cast %58 : vector<8x4xf32> to vector<1x8x4xf32>
    tpu.vector_store %arg9[%c0_28, %c0_29, %c0_30], %61 {strides = array<i32>} : memref<1x8x4xf32, #tpu.memory_space<vmem>>, vector<1x8x4xf32>,
    return
  }
  func.func @transform_0(%arg0: i32) -> (i32, i32, i32) {
    %c0_i32 = arith.constant 0 : i32
    %c0_i32_0 = arith.constant 0 : i32
    %c0_i32_1 = arith.constant 0 : i32
    return %arg0, %c0_i32, %c0_i32_0 : i32, i32, i32
  }
  func.func @transform_1(%arg0: i32) -> (i32, i32) {
    %c0_i32 = arith.constant 0 : i32
    %c0_i32_0 = arith.constant 0 : i32
    %c0_i32_1 = arith.constant 0 : i32
    return %c0_i32, %c0_i32_0 : i32, i32
  }
  func.func @transform_2(%arg0: i32) -> (i32, i32) {
    %c0_i32 = arith.constant 0 : i32
    %c0_i32_0 = arith.constant 0 : i32
    %c0_i32_1 = arith.constant 0 : i32
    return %c0_i32, %c0_i32_0 : i32, i32
  }
  func.func @transform_3(%arg0: i32) -> (i32, i32) {
    %c0_i32 = arith.constant 0 : i32
    %c0_i32_0 = arith.constant 0 : i32
    %c0_i32_1 = arith.constant 0 : i32
    return %c0_i32, %c0_i32_0 : i32, i32
  }
  func.func @transform_4(%arg0: i32) -> (i32, i32) {
    %c0_i32 = arith.constant 0 : i32
    %c0_i32_0 = arith.constant 0 : i32
    %c0_i32_1 = arith.constant 0 : i32
    return %c0_i32, %c0_i32_0 : i32, i32
  }
  func.func @transform_5(%arg0: i32) -> (i32, i32) {
    %c0_i32 = arith.constant 0 : i32
    %c0_i32_0 = arith.constant 0 : i32
    %c0_i32_1 = arith.constant 0 : i32
    return %c0_i32, %c0_i32_0 : i32, i32
  }
  func.func @transform_6(%arg0: i32) -> (i32, i32) {
    %c0_i32 = arith.constant 0 : i32
    %c0_i32_0 = arith.constant 0 : i32
    %c0_i32_1 = arith.constant 0 : i32
    return %c0_i32, %c0_i32_0 : i32, i32
  }
  func.func @transform_7(%arg0: i32) -> (i32, i32, i32) {
    %c0_i32 = arith.constant 0 : i32
    %c0_i32_0 = arith.constant 0 : i32
    %c0_i32_1 = arith.constant 0 : i32
    return %arg0, %c0_i32, %c0_i32_0 : i32, i32, i32
  }
  func.func @transform_8(%arg0: i32) -> (i32, i32, i32) {
    %c0_i32 = arith.constant 0 : i32
    %c0_i32_0 = arith.constant 0 : i32
    %c0_i32_1 = arith.constant 0 : i32
    return %arg0, %c0_i32, %c0_i32_0 : i32, i32, i32
  }
}

</mosaic_0001>

<bundles_post_ra>
// kernel: rel2reg_layout_forward.9
= control target key start
LH: loop header
LB: loop body
LE: loop exit
PB: predicated region body
PF: predicated region fallthrough
CT: control target
= control target key end

     0   :  { %vm18_vm0 = vcmask 261120   ;;  %v115_v4 = vmov 32.0   ;;  %v116_v24 = vmov 31.0   ;;  %s161_s0 = inlined_call_operand.vmem [shape: f32[16,32], index: 0, kind: input, shape index: {}]   ;;  %s162_s1 = inlined_call_operand.vmem [shape: f32[1,32], index: 1, kind: input, shape index: {}]   ;;  %s163_s2 = inlined_call_operand.vmem [shape: f32[1,32], index: 2, kind: input, shape index: {}]   ;;  %s164_s3 = inlined_call_operand.vmem [shape: f32[16,32], index: 3, kind: output, shape index: {}]  }
   0x1   :  { %v14_v0 = vld [vmem:[%s161_s0] sm:$0xff]  ;;  %v15_v2 = vld [vmem:[%s161_s0 + $0x8] sm:$0xff]  ;;  %103 = vrcp.f32 %v115_v4 }
   0x2   :  { %v19_v1 = vsel %vm18_vm0, %v14_v0, 0.0  ;;  %v22_v3 = vsel %vm18_vm0, %v15_v2, 0.0  ;;  %v101_v12 = vld [vmem:[%s162_s1] ss:$0 sm:$0xff]  ;;  %105 = vrcp.f32 %v116_v24 }
   0x3   :  { %20 = vadd.xlane.f32.xlu0 %v19_v1  ;;  %v102_v55 = vld [vmem:[%s163_s2] ss:$0 sm:$0xff] }
   0x7   :  { %v104_v5 = vpop.eup %103 }
   0x8   :  { %v26_v6 = vmul.f32 32.0, %v104_v5  ;;  %vm30_vm1 = vweird.f32 %v104_v5  ;;  %v106_v25 = vpop.eup %105 }
   0x9   :  { %v45_v26 = vmul.f32 31.0, %v106_v25  ;;  %vm49_vm2 = vweird.f32 %v106_v25 }
   0xa   :  { %v27_v7 = vsub.f32 1.0, %v26_v6 }
   0xb   :  { %23 = vadd.xlane.f32.xlu0 %v22_v3  ;;  %v46_v27 = vsub.f32 1.0, %v45_v26 }
   0xc   :  { %v28_v8 = vmul.f32 %v104_v5, %v27_v7 }
   0xd   :  { %v47_v28 = vmul.f32 %v106_v25, %v46_v27 }
   0xe   :  { %v29_v9 = vadd.f32 %v104_v5, %v28_v8 }
   0xf   :  { %v48_v29 = vadd.f32 %v106_v25, %v47_v28 }
  0x10   :  { %v31_v10 = vsel %vm30_vm1, %v104_v5, %v29_v9 }
  0x11   :  { %v50_v30 = vsel %vm49_vm2, %v106_v25, %v48_v29 }
  0x76   :  { %v21_v11 = vpop.xlane.xlu0 %20 }
  0x77   :  { %v32_v13 = vmul.f32 %v31_v10, %v21_v11 }
  0x79   :  { %v34_v14 = vsub.f32 %v14_v0, %v32_v13 }
  0x7b   :  { %v84_v15 = vmul.f32 %v101_v12, %v34_v14  ;;  %v36_v16 = vmul.f32 %v34_v14, %v34_v14 }
  0x7d   :  { %v38_v17 = vsel %vm18_vm0, %v36_v16, 0.0 }
  0x7e   :  { %39 = vadd.xlane.f32.xlu1 %v38_v17  ;;  %v24_v18 = vpop.xlane.xlu0 %23 }
  0x7f   :  { %v33_v19 = vmul.f32 %v31_v10, %v24_v18 }
  0x81   :  { %v35_v20 = vsub.f32 %v15_v2, %v33_v19 }
  0x83   :  { %v85_v21 = vmul.f32 %v101_v12, %v35_v20  ;;  %v37_v22 = vmul.f32 %v35_v20, %v35_v20 }
  0x85   :  { %v41_v23 = vsel %vm18_vm0, %v37_v22, 0.0 }
  0x86   :  { %42 = vadd.xlane.f32.xlu1 %v41_v23 }
  0xf1   :  { %v40_v31 = vpop.xlane.xlu1 %39 }
  0xf2   :  { %v51_v32 = vmul.f32 %v50_v30, %v40_v31 }
  0xf4   :  { %107 = vrsqrt.f32 %v51_v32  ;;  %vm60_vm3 = vcmp.eq.f32.partialorder %v51_v32, inf  ;;  %v63_v45 = vand.u32 2147483648, %v51_v32  ;;  %vm62_vm4 = vcmp.eq.f32.partialorder %v51_v32, 0.0 }
  0xf9   :  { %v43_v33 = vpop.xlane.xlu1 %42 }
  0xfa   :  { %v108_v34 = vpop.eup %107  ;;  %v52_v35 = vmul.f32 %v50_v30, %v43_v33 }
  0xfb   :  { %v54_v36 = vmul.f32 %v108_v34, %v51_v32 }
  0xfc   :  { %109 = vrsqrt.f32 %v52_v35  ;;  %vm72_vm5 = vcmp.eq.f32.partialorder %v52_v35, inf  ;;  %v75_v53 = vand.u32 2147483648, %v52_v35  ;;  %vm74_vm6 = vcmp.eq.f32.partialorder %v52_v35, 0.0 }
  0xfd   :  { %v55_v37 = vmul.f32 %v108_v34, %v54_v36 }
  0xff   :  { %v56_v38 = vmul.f32 0.5, %v55_v37 }
 0x101   :  { %v57_v39 = vsub.f32 1.5, %v56_v38 }
 0x102   :  { %v110_v40 = vpop.eup %109 }
 0x103   :  { %v58_v41 = vmul.f32 %v108_v34, %v57_v39  ;;  %v66_v42 = vmul.f32 %v110_v40, %v52_v35 }
 0x105   :  { %v59_v43 = vmul.f32 %v58_v41, %v51_v32  ;;  %v67_v44 = vmul.f32 %v110_v40, %v66_v42 }
 0x107   :  { %v61_v46 = vsel %vm60_vm3, %v51_v32, %v59_v43  ;;  %v68_v47 = vmul.f32 0.5, %v67_v44 }
 0x108   :  { %v64_v48 = vsel %vm62_vm4, %v63_v45, %v61_v46 }
 0x109   :  { %v77_v49 = vadd.f32 1e-06, %v64_v48  ;;  %v69_v50 = vsub.f32 1.5, %v68_v47 }
 0x10b   :  { %111 = vrcp.f32 %v77_v49  ;;  %v70_v51 = vmul.f32 %v110_v40, %v69_v50 }
 0x10d   :  { %v71_v52 = vmul.f32 %v70_v51, %v52_v35 }
 0x10f   :  { %v73_v54 = vsel %vm72_vm5, %v52_v35, %v71_v52 }
 0x110   :  { %v76_v56 = vsel %vm74_vm6, %v75_v53, %v73_v54 }
 0x111   :  { %v112_v57 = vpop.eup %111  ;;  %v78_v58 = vadd.f32 1e-06, %v76_v56 }
 0x112   :  { %v86_v59 = vmul.f32 %v112_v57, %v84_v15 }
 0x113   :  { %113 = vrcp.f32 %v78_v58 }
 0x114   :  { %v91_v60 = vadd.f32 %v102_v55, %v86_v59 }
 0x116   :  { %93 = vst.msk [vmem:[%s164_s3] sm:$0xff] %vm18_vm0, %v91_v60 }
 0x119   :  { %v114_v61 = vpop.eup %113 }
 0x11a   :  { %v87_v62 = vmul.f32 %v114_v61, %v85_v21 }
 0x11c   :  { %v92_v63 = vadd.f32 %v102_v55, %v87_v62 }
 0x11e   :  { %94 = vst.msk [vmem:[%s164_s3 + $0x8] sm:$0xff] %vm18_vm0, %v92_v63 }

// kernel: rel2reg_layout_forward.10
= control target key start
LH: loop header
LB: loop body
LE: loop exit
PB: predicated region body
PF: predicated region fallthrough
CT: control target
= control target key end

     0   :  { %vm28_vm0 = vcmask 1043456   ;;  %vm21_vm1 = vcmask 31744   ;;  %vm55_vm2 = vcmask 261120   ;;  %s105_s1 = inlined_call_operand.vmem [shape: f32[4,32], index: 1, kind: input, shape index: {}]   ;;  %s106_s0 = inlined_call_operand.vmem [shape: f32[16,4], index: 0, kind: input, shape index: {}]   ;;  %s107_s2 = inlined_call_operand.vmem [shape: f32[1,32], index: 2, kind: input, shape index: {}]   ;;  %s108_s3 = inlined_call_operand.vmem [shape: f32[16,32], index: 3, kind: output, shape index: {}]  }
   0x1   :  { %v16_v0 = vld [vmem:[%s105_s1] sm:$0xf]  ;;  %v15_v2 = vld [vmem:[%s106_s0 + $0x8] sm:$0xff] }
   0x2   :  { %v14_v1 = vld [vmem:[%s106_s0] sm:$0xff]  ;;  %62 = vmatpush.msk.msra.mxu0 %vm28_vm0, %v16_v0  ;;  %65 = vmatpush.msk.msra.mxu1 %vm28_vm0, %v16_v0 }
   0x3   :  { %63 = vmatmul.msk.f32.vlgmr.msra.gmra.mxu0 %vm21_vm1, %v14_v1  ;;  %64 = vmatmul.msk.f32.vlgmr.msra.gmra.mxu1 %vm21_vm1, %v15_v2  ;;  %v66_v3 = vld [vmem:[%s107_s2] ss:$0 sm:$0xff] }
  0x80   :  { %v49_v4 = vpop.f32.mrf.mxu0  ;;  %v52_v5 = vpop.f32.mrf.mxu1 }
  0x81   :  { %v50_v6 = vadd.f32 %v66_v3, %v49_v4  ;;  %v53_v7 = vadd.f32 %v66_v3, %v52_v5 }
  0x83   :  { %56 = vst.msk [vmem:[%s108_s3] sm:$0xff] %vm55_vm2, %v50_v6 }
  0x84   :  { %57 = vst.msk [vmem:[%s108_s3 + $0x8] sm:$0xff] %vm55_vm2, %v53_v7 }

// kernel: rel2reg_layout_forward.7
= control target key start
LH: loop header
LB: loop body
LE: loop exit
PB: predicated region body
PF: predicated region fallthrough
CT: control target
= control target key end

     0   :  { %s1290_s29 = smov 0   ;;  %s1501_s0 = inlined_call_operand.vmem [shape: f32[2,8,32], index: 0, kind: input, shape index: {}]   ;;  %s1502_s1 = inlined_call_operand.vmem [shape: f32[2,1,8], index: 1, kind: input, shape index: {}]   ;;  %s1503_s2 = inlined_call_operand.vmem [shape: f32[1,32], index: 2, kind: input, shape index: {}]   ;;  %s1504_s3 = inlined_call_operand.vmem [shape: f32[1,32], index: 3, kind: input, shape index: {}]   ;;  %s1505_s4 = inlined_call_operand.vmem [shape: f32[32,96], index: 4, kind: input, shape index: {}]   ;;  %s1506_s5 = inlined_call_operand.vmem [shape: f32[1,96], index: 5, kind: input, shape index: {}]   ;;  %s1507_s6 = inlined_call_operand.vmem [shape: f32[32,32], index: 6, kind: input, shape index: {}]   ;;  %s1508_s7 = inlined_call_operand.vmem [shape: f32[1,32], index: 7, kind: input, shape index: {}]   ;;  %s1509_s8 = inlined_call_operand.vmem [shape: f32[1,32], index: 8, kind: input, shape index: {}]   ;;  %s1510_s9 = inlined_call_operand.vmem [shape: f32[1,32], index: 9, kind: input, shape index: {}]   ;;  %s1511_s10 = inlined_call_operand.vmem [shape: f32[32,128], index: 10, kind: input, shape index: {}]   ;;  %s1512_s11 = inlined_call_operand.vmem [shape: f32[1,128], index: 11, kind: input, shape index: {}]   ;;  %s1513_s12 = inlined_call_operand.vmem [shape: f32[128,32], index: 12, kind: input, shape index: {}]   ;;  %s1514_s13 = inlined_call_operand.vmem [shape: f32[1,32], index: 13, kind: input, shape index: {}]   ;;  %s1515_s14 = inlined_call_operand.vmem [shape: f32[2,8,32], index: 14, kind: output, shape index: {}]  }
   0x1 LB: > { %s1108_s30 = sadd.s32 4294967295, %s1199_s29   ;;  %p1112_p0 = scmp.ge.s32.totalorder %s1199_s29, 1  ;;  %s1199_s29 = sphi %s1290_s29, %s24_s29  }
   0x2   : > { %p419_p1 = scmp.lt.s32.totalorder %s1199_s29, 3 }
   0x4   : > { %p420_p2 = pnand %p1112_p0, %p419_p1 }
   0x5   : > { %p466_p3 = scmp.lt.s32.totalorder (!%p420_p2), %s1108_s30, 1  ;;  %s1203_s20 = smov (!%p420_p2), 112  }
   0x6   : > { %423 = sbr.rel (%p420_p2) target bundleno = 2165 (0x875), region = 76  ;;  %s1204_s21 = smov (!%p420_p2), 120  }
   0x7   : > { %s1205_s22 = smov (!%p420_p2), 96   ;;  %s1206_s23 = smov (!%p420_p2), 80  }
   0x8   : > { %s1207_s24 = smov (!%p420_p2), 88   ;;  %s1209_s28 = smov (!%p420_p2), 64  }
   0x9   : > { %s1210_s16 = smov (!%p420_p2), 48   ;;  %s1211_s17 = smov (!%p420_p2), 72  }
   0xa   : > { %s1213_s19 = smov (!%p420_p2), 40  }
   0xb   : > { %s1519_s30 = smov (!%p466_p3, %s1108_s30), 1  ;;  %vm481_vm0 = vcmask 261120   ;;  %v1201_v2 = vmov 32.0   ;;  %v1202_v14 = vmov 31.0   ;;  %v532_v15 = vld [vmem:[%s1505_s4 + $0x18] sm:$0xff]  ;;  %v531_v16 = vld [vmem:[%s1505_s4 + $0x10] sm:$0xff] }
   0xc   : > { %s1113_s15 = sshll.u32 %s1519_s30, 3  ;;  %1165 = vrcp.f32 %v1201_v2  ;;  %552 = vmatpush.msra.mxu0 %v532_v15  ;;  %v530_v18 = vld [vmem:[%s1505_s4 + $0x8] sm:$0xff]  ;;  %v529_v20 = vld [vmem:[%s1505_s4] sm:$0xff]  ;;  %vm567_vm5 = vcmask 64512   ;;  %s472_s27 = scalar_lea.vmem %s1502_s1, %s1519_s30  ;;  %v1208_v53 = vmov 0  }
   0xd   : > { %s469_s18 = scalar_lea.vmem %s1501_s0, %s1113_s15  ;;  %1167 = vrcp.f32 %v1202_v14  ;;  %v1157_v38 = vld [vmem:[%s1503_s2] ss:$0 sm:$0xff] }
   0xe   : > { %v1306_v0 = vld [vmem:[%s469_s18] sm:$0xff]  ;;  %553 = vmatpush.msra.mxu0 %v531_v16  ;;  %s1212_s18 = smov 104  }
   0xf   : > { %v482_v1 = vsel %vm481_vm0, %v1306_v0, 0.0  ;;  %v1158_v40 = vld [vmem:[%s1504_s3] ss:$0 sm:$0xff] }
  0x10   : > { %483 = vadd.xlane.f32.xlu0 %v482_v1  ;;  %554 = vmatpush.msra.mxu0 %v530_v18  ;;  %v1159_v44 = vld [vmem:[%s1506_s5] ss:$0 sm:$0xff] }
  0x11   : > { %v478_v52 = vld [vmem:[%s472_s27] sm:$0x1] }
  0x12   : > { %v1166_v3 = vpop.eup %1165  ;;  %555 = vmatpush.msra.mxu0 %v529_v20  ;;  %vm593_vm6 = vcmp.gt.f32.partialorder %v478_v52, 0.0 }
  0x13   : > { %v486_v4 = vmul.f32 32.0, %v1166_v3  ;;  %vm490_vm1 = vweird.f32 %v1166_v3  ;;  %v1168_v17 = vpop.eup %1167  ;;  %v594_v54 = vsel %vm593_vm6, 1, %v1208_v53 }
  0x14   : > { %v499_v19 = vmul.f32 31.0, %v1168_v17  ;;  %vm503_vm2 = vweird.f32 %v1168_v17  ;;  %v595_v55 = vperm.slane %v594_v54, 0 }
  0x15   : > { %v487_v5 = vsub.f32 1.0, %v486_v4 }
  0x16   : > { %v500_v21 = vsub.f32 1.0, %v499_v19  ;;  %vm1358_vm7 = vcmp.eq.s32.totalorder %v595_v55, 1 }
  0x17   : > { %v488_v6 = vmul.f32 %v1166_v3, %v487_v5 }
  0x18   : > { %v501_v22 = vmul.f32 %v1168_v17, %v500_v21 }
  0x19   : > { %v489_v7 = vadd.f32 %v1166_v3, %v488_v6 }
  0x1a   : > { %v502_v23 = vadd.f32 %v1168_v17, %v501_v22 }
  0x1b   : > { %v1310_v8 = vsel %vm490_vm1, %v1166_v3, %v489_v7 }
  0x1c   : > { %v1327_v24 = vsel %vm503_vm2, %v1168_v17, %v502_v23 }
  0x83   : > { %v484_v9 = vpop.xlane.xlu0 %483 }
  0x84   : > { %v492_v10 = vmul.f32 %v1310_v8, %v484_v9 }
  0x86   : > { %v493_v11 = vsub.f32 %v1306_v0, %v492_v10 }
  0x88   : > { %v494_v12 = vmul.f32 %v493_v11, %v493_v11  ;;  %v523_v39 = vmul.f32 %v1157_v38, %v493_v11  ;;  %v560_v38 = vld [vmem:[%s1507_s6] sm:$0xff] }
  0x89   : > { %743 = vmatpush.msra.mxu3 %v560_v38  ;;  %v1007_v38 = vld [vmem:[%s1513_s12 + $0x20] sm:$0xff] }
  0x8a   : > { %v495_v13 = vsel %vm481_vm0, %v494_v12, 0.0 }
  0x8b   : > { %496 = vadd.xlane.f32.xlu0 %v495_v13 }
  0xfe   : > { %v497_v25 = vpop.xlane.xlu0 %496 }
  0xff   : > { %v505_v26 = vmul.f32 %v1327_v24, %v497_v25 }
 0x101   : > { %1169 = vrsqrt.f32 %v505_v26  ;;  %vm513_vm3 = vcmp.eq.f32.partialorder %v505_v26, inf  ;;  %v516_v34 = vand.u32 2147483648, %v505_v26  ;;  %vm515_vm4 = vcmp.eq.f32.partialorder %v505_v26, 0.0 }
 0x107   : > { %v1170_v27 = vpop.eup %1169 }
 0x108   : > { %v507_v28 = vmul.f32 %v1170_v27, %v505_v26 }
 0x10a   : > { %v508_v29 = vmul.f32 %v1170_v27, %v507_v28 }
 0x10c   : > { %v509_v30 = vmul.f32 0.5, %v508_v29 }
 0x10e   : > { %v510_v31 = vsub.f32 1.5, %v509_v30 }
 0x110   : > { %v511_v32 = vmul.f32 %v1170_v27, %v510_v31 }
 0x112   : > { %v512_v33 = vmul.f32 %v511_v32, %v505_v26 }
 0x114   : > { %v514_v35 = vsel %vm513_vm3, %v505_v26, %v512_v33 }
 0x115   : > { %v517_v36 = vsel %vm515_vm4, %v516_v34, %v514_v35 }
 0x116   : > { %v518_v37 = vadd.f32 1e-06, %v517_v36 }
 0x118   : > { %1171 = vrcp.f32 %v518_v37 }
 0x11e   : > { %v1172_v41 = vpop.eup %1171 }
 0x11f   : > { %v524_v42 = vmul.f32 %v1172_v41, %v523_v39  ;;  %v562_v41 = vld [vmem:[%s1507_s6 + $0x10] sm:$0xff] }
 0x121   : > { %v528_v43 = vadd.f32 %v1158_v40, %v524_v42  ;;  %v561_v40 = vld [vmem:[%s1507_s6 + $0x8] sm:$0xff] }
 0x123   : > { %1115 = vmatmul.msk.f32.vlgmr.msra.gmra.mxu0 %vm481_vm0, %v528_v43 }
 0x1a0   : > { %v557_v45 = vpop.f32.mrf.mxu0 }
 0x1a1   : > { %v1340_v46 = vadd.f32 %v1159_v44, %v557_v45 }
 0x1a3   : > { %748 = vrot.lane.b32.xlu0 %v1340_v46, %s1203_s20  ;;  %635 = vrot.lane.b32.xlu2 %v1340_v46, %s1204_s21  ;;  %s1214_s20 = smov 56  }
 0x1a4   : > { %565 = vrot.lane.b32.xlu1 %v1340_v46, %s1205_s22 }
 0x1ab   : > { %750 = vrot.lane.b32.xlu2 %v1340_v46, %s1206_s23 }
 0x1ac   : > { %637 = vrot.lane.b32.xlu1 %v1340_v46, %s1207_s24 }
 0x1fd   : > { %v636_v47 = vpop.permute.xlu2 %635 }
 0x205   : > { %v751_v50 = vpop.permute.xlu2 %750 }
 0x215   : > { %v749_v51 = vpop.permute.xlu0 %748 }
 0x216   : > { %v566_v48 = vpop.permute.xlu1 %565 }
 0x217   : > { %1116 = vmatpush.xpose.msk.msra.mxu1 %vm567_vm5, %v566_v48 }
 0x21a   : > { %1117 = vmatmul.msk.f32.vlgmr.msra.gmra.mxu1 %vm567_vm5, %v1340_v46 }
 0x21b   : > { %720 = vmatpush.msrb.mxu1 %v561_v40  ;;  %v1006_v40 = vld [vmem:[%s1513_s12 + $0x18] sm:$0xff] }
 0x21d   : > { %833 = vmatpush.msra.mxu1 %v562_v41 }
 0x21e   : > { %v638_v49 = vpop.permute.xlu1 %637 }
 0x21f   : > { %1119 = vmatpush.xpose.msk.msrb.mxu0 %vm567_vm5, %v638_v49 }
 0x222   : > { %1120 = vmatmul.msk.f32.vlgmr.msrb.gmra.mxu0 %vm567_vm5, %v636_v47 }
 0x223   : > { %1124 = vmatpush.xpose.msk.msra.mxu0 %vm567_vm5, %v751_v50 }
 0x22a   : > { %1125 = vmatmul.msk.f32.vlgmr.msra.gmra.mxu0 %vm567_vm5, %v749_v51 }
 0x297   : > { %v589_v56 = vpop.f32.mrf.mxu1 }
 0x298   : > { %v592_v58 = vmul.f32 0.35355338, %v589_v56  ;;  %v563_v56 = vld [vmem:[%s1507_s6 + $0x18] sm:$0xff] }
 0x29a   : > { %v597_v59 = vsel %vm1358_vm7, %v592_v58, -1e+09 }
 0x29b   : > { %v598_v60 = vsel %vm567_vm5, %v597_v59, -inf }
 0x29c   : > { %599 = vmax.xlane.f32.xlu1 %v598_v60 }
 0x29f   : > { %v660_v61 = vpop.f32.mrf.mxu0 }
 0x2a0   : > { %v663_v62 = vmul.f32 0.35355338, %v660_v61 }
 0x2a2   : > { %v664_v63 = vsel %vm1358_vm7, %v663_v62, -1e+09 }
 0x2a3   : > { %v665_v1 = vsel %vm567_vm5, %v664_v63, -inf }
 0x2a4   : > { %666 = vmax.xlane.f32.xlu2 %v665_v1 }
 0x2a7   : > { %v773_v2 = vpop.f32.mrf.mxu0 }
 0x2a8   : > { %v776_v3 = vmul.f32 0.35355338, %v773_v2  ;;  %v1160_v2 = vld [vmem:[%s1508_s7] ss:$0 sm:$0xff] }
 0x2aa   : > { %v777_v4 = vsel %vm1358_vm7, %v776_v3, -1e+09 }
 0x2ab   : > { %v778_v5 = vsel %vm567_vm5, %v777_v4, -inf }
 0x2ac   : > { %779 = vmax.xlane.f32.xlu0 %v778_v5 }
 0x2bc   : > { %609 = vrot.lane.b32.xlu2 %v1340_v46, %s1209_s28 }
 0x2c0   : > { %789 = vrot.lane.b32.xlu0 %v1340_v46, %s1210_s16  ;;  %s476_s16 = scalar_lea.vmem %s1515_s14, %s1113_s15 }
 0x30f   : > { %v600_v6 = vpop.xlane.xlu1 %599 }
 0x310   : > { %v601_v7 = vsub.f32 %v597_v59, %v600_v6 }
 0x312   : > { %v602_v9 = vmul.f32 1.442695, %v601_v7 }
 0x314   : > { %1173 = vpow2.f32 %v602_v9 }
 0x317   : > { %v667_v10 = vpop.xlane.xlu2 %666 }
 0x318   : > { %v668_v11 = vsub.f32 %v664_v63, %v667_v10 }
 0x31a   : > { %v1174_v12 = vpop.eup %1173  ;;  %v669_v13 = vmul.f32 1.442695, %v668_v11 }
 0x31b   : > { %v604_v14 = vsel %vm567_vm5, %v1174_v12, 0.0 }
 0x31c   : > { %1175 = vpow2.f32 %v669_v13  ;;  %605 = vadd.xlane.f32.xlu2 %v604_v14  ;;  %v972_v13 = vld [vmem:[%s1511_s10 + $0x8] sm:$0xff] }
 0x31f   : > { %v780_v15 = vpop.xlane.xlu0 %779  ;;  %v610_v16 = vpop.permute.xlu2 %609 }
 0x320   : > { %v781_v17 = vsub.f32 %v777_v4, %v780_v15  ;;  %630 = vmatpush.msra.mxu2 %v610_v16  ;;  %v1018_v16 = vld [vmem:[%s1513_s12 + $0x78] sm:$0xff] }
 0x321   : > { %1019 = vmatpush.msrb.mxu3 %v1018_v16 }
 0x322   : > { %v1176_v18 = vpop.eup %1175  ;;  %v782_v19 = vmul.f32 1.442695, %v781_v17  ;;  %v1017_v17 = vld [vmem:[%s1513_s12 + $0x70] sm:$0xff] }
 0x323   : > { %v671_v20 = vsel %vm567_vm5, %v1176_v18, 0.0  ;;  %1020 = vmatpush.msrb.mxu3 %v1017_v17 }
 0x324   : > { %1177 = vpow2.f32 %v782_v19  ;;  %672 = vadd.xlane.f32.xlu1 %v671_v20 }
 0x32a   : > { %v1178_v21 = vpop.eup %1177 }
 0x32b   : > { %v784_v22 = vsel %vm567_vm5, %v1178_v21, 0.0 }
 0x32c   : > { %785 = vadd.xlane.f32.xlu1 %v784_v22 }
 0x332   : > { %v790_v35 = vpop.permute.xlu0 %789 }
 0x334   : > { %841 = vrot.lane.b32.xlu2 %v1340_v46, %s1211_s17 }
 0x33c   : > { %839 = vrot.lane.b32.xlu2 %v1340_v46, %s1212_s18 }
 0x344   : > { %880 = vrot.lane.b32.xlu2 %v1340_v46, %s1213_s19 }
 0x345   : > { %676 = vrot.lane.b32.xlu1 %v1340_v46, %s1214_s20 }
 0x38f   : > { %v606_v23 = vpop.xlane.xlu2 %605 }
 0x390   : > { %1179 = vrcp.f32 %v606_v23  ;;  %v1013_v23 = vld [vmem:[%s1513_s12 + $0x50] sm:$0xff] }
 0x396   : > { %v1180_v25 = vpop.eup %1179 }
 0x397   : > { %v842_v26 = vpop.permute.xlu2 %841  ;;  %v608_v27 = vmul.f32 %v1180_v25, %v1174_v12  ;;  %v673_v29 = vpop.xlane.xlu1 %672  ;;  %v974_v12 = vld [vmem:[%s1511_s10 + $0x18] sm:$0xff] }
 0x398   : > { %1181 = vrcp.f32 %v673_v29 }
 0x399   : > { %1118 = vmatmul.msk.f32.vlgmr.msra.gmra.mxu2 %vm567_vm5, %v608_v27 }
 0x39e   : > { %v1182_v32 = vpop.eup %1181 }
 0x39f   : > { %v840_v28 = vpop.permute.xlu2 %839  ;;  %v786_v31 = vpop.xlane.xlu1 %785  ;;  %v675_v34 = vmul.f32 %v1182_v32, %v1176_v18  ;;  %v1016_v18 = vld [vmem:[%s1513_s12 + $0x68] sm:$0xff] }
 0x3a0   : > { %1183 = vrcp.f32 %v786_v31  ;;  %1021 = vmatpush.msrb.mxu3 %v1016_v18 }
 0x3a6   : > { %v1184_v36 = vpop.eup %1183 }
 0x3a7   : > { %v881_v30 = vpop.permute.xlu2 %880  ;;  %v788_v37 = vmul.f32 %v1184_v36, %v1178_v21  ;;  %v1014_v21 = vld [vmem:[%s1513_s12 + $0x58] sm:$0xff]  ;;  %v1008_v36 = vld [vmem:[%s1513_s12 + $0x28] sm:$0xff] }
 0x3a8   : > { %901 = vmatpush.msrb.mxu0 %v881_v30  ;;  %v1010_v30 = vld [vmem:[%s1513_s12 + $0x38] sm:$0xff] }
 0x3b7   : > { %v677_v33 = vpop.permute.xlu1 %676 }
 0x3b8   : > { %697 = vmatpush.msrb.mxu2 %v677_v33  ;;  %v1009_v33 = vld [vmem:[%s1513_s12 + $0x30] sm:$0xff] }
 0x3b9   : > { %1121 = vmatmul.msk.f32.vlgmr.msrb.gmra.mxu2 %vm567_vm5, %v675_v34 }
 0x3ba   : > { %810 = vmatpush.msra.mxu2 %v790_v35 }
 0x3bc   : > { %1128 = vmatpush.xpose.msk.msrb.mxu2 %vm567_vm5, %v842_v26  ;;  %v1012_v26 = vld [vmem:[%s1513_s12 + $0x48] sm:$0xff] }
 0x3c1   : > { %1126 = vmatmul.msk.f32.vlgmr.msra.gmra.mxu2 %vm567_vm5, %v788_v37 }
 0x3c2   : > { %924 = vmatpush.msra.mxu2 %v563_v56 }
 0x3c9   : > { %1129 = vmatmul.msk.f32.vlgmr.msrb.gmra.mxu2 %vm567_vm5, %v840_v28  ;;  %v1011_v28 = vld [vmem:[%s1513_s12 + $0x40] sm:$0xff] }
 0x41c   : > { %v632_v39 = vpop.f32.mrf.mxu2 }
 0x41d   : > { %1123 = vmatmul.msk.f32.vlgmr.msra.gmra.mxu3 %vm567_vm5, %v632_v39  ;;  %v1161_v39 = vld [vmem:[%s1509_s8] ss:$0 sm:$0xff] }
 0x43c   : > { %v699_v42 = vpop.f32.mrf.mxu2 }
 0x43d   : > { %1122 = vmatmul.msk.f32.vlgmr.msrb.gmra.mxu1 %vm567_vm5, %v699_v42  ;;  %v1162_v42 = vld [vmem:[%s1510_s9] ss:$0 sm:$0xff] }
 0x43e   : > { %994 = vmatpush.msrb.mxu1 %v974_v12 }
 0x444   : > { %v812_v43 = vpop.f32.mrf.mxu2 }
 0x445   : > { %1127 = vmatmul.msk.f32.vlgmr.msra.gmra.mxu1 %vm567_vm5, %v812_v43 }
 0x44c   : > { %v864_v44 = vpop.f32.mrf.mxu2 }
 0x44d   : > { %v867_v45 = vmul.f32 0.35355338, %v864_v44 }
 0x44f   : > { %v868_v46 = vsel %vm1358_vm7, %v867_v45, -1e+09 }
 0x450   : > { %v869_v47 = vsel %vm567_vm5, %v868_v46, -inf }
 0x451   : > { %870 = vmax.xlane.f32.xlu0 %v869_v47  ;;  %v1004_v47 = vld [vmem:[%s1513_s12 + $0x8] sm:$0xff] }
 0x4a0   : > { %v745_v59 = vpop.f32.mrf.mxu3 }
 0x4ba   : > { %v722_v58 = vpop.f32.mrf.mxu1 }
 0x4bb   : > { %v746_v61 = vadd.f32 %v745_v59, %v722_v58 }
 0x4c2   : > { %v835_v60 = vpop.f32.mrf.mxu1 }
 0x4c3   : > { %v838_v62 = vadd.f32 %v835_v60, %v746_v61 }
 0x4c4   : > { %v871_v48 = vpop.xlane.xlu0 %870 }
 0x4c5   : > { %v872_v49 = vsub.f32 %v868_v46, %v871_v48  ;;  %v1005_v46 = vld [vmem:[%s1513_s12 + $0x10] sm:$0xff]  ;;  %v1003_v48 = vld [vmem:[%s1513_s12] sm:$0xff] }
 0x4c7   : > { %v873_v50 = vmul.f32 1.442695, %v872_v49  ;;  %v1163_v49 = vld [vmem:[%s1512_s11] ss:$0 sm:$0xff] }
 0x4c9   : > { %1185 = vpow2.f32 %v873_v50 }
 0x4cf   : > { %v1186_v51 = vpop.eup %1185 }
 0x4d0   : > { %v875_v52 = vsel %vm567_vm5, %v1186_v51, 0.0 }
 0x4d1   : > { %876 = vadd.xlane.f32.xlu1 %v875_v52 }
 0x544   : > { %v877_v53 = vpop.xlane.xlu1 %876 }
 0x545   : > { %1187 = vrcp.f32 %v877_v53  ;;  %v1164_v53 = vld [vmem:[%s1514_s13] ss:$0 sm:$0xff] }
 0x54b   : > { %v1188_v54 = vpop.eup %1187 }
 0x54c   : > { %v879_v55 = vmul.f32 %v1188_v54, %v1186_v51 }
 0x54e   : > { %1130 = vmatmul.msk.f32.vlgmr.msrb.gmra.mxu0 %vm567_vm5, %v879_v55 }
 0x5cb   : > { %v903_v57 = vpop.f32.mrf.mxu0 }
 0x5cc   : > { %1131 = vmatmul.msk.f32.vlgmr.msra.gmra.mxu2 %vm567_vm5, %v903_v57 }
 0x64f   : > { %v926_v63 = vpop.f32.mrf.mxu2 }
 0x650   : > { %v929_v1 = vadd.f32 %v926_v63, %v838_v62 }
 0x652   : > { %v930_v3 = vadd.f32 %v929_v1, %v1306_v0  ;;  %v973_v0 = vld [vmem:[%s1511_s10 + $0x10] sm:$0xff] }
 0x653   : > { %995 = vmatpush.msrb.mxu1 %v973_v0 }
 0x654   : > { %v1410_v4 = vadd.f32 %v1160_v2, %v930_v3 }
 0x655   : > { %996 = vmatpush.msrb.mxu1 %v972_v13 }
 0x656   : > { %v938_v5 = vsel %vm481_vm0, %v1410_v4, 0.0 }
 0x657   : > { %939 = vadd.xlane.f32.xlu2 %v938_v5 }
 0x6ca   : > { %v940_v6 = vpop.xlane.xlu2 %939 }
 0x6cb   : > { %v941_v7 = vmul.f32 %v940_v6, %v1310_v8  ;;  %v971_v8 = vld [vmem:[%s1511_s10] sm:$0xff] }
 0x6cc   : > { %997 = vmatpush.msrb.mxu1 %v971_v8 }
 0x6cd   : > { %v942_v9 = vsub.f32 %v1410_v4, %v941_v7 }
 0x6cf   : > { %v943_v10 = vmul.f32 %v942_v9, %v942_v9  ;;  %v965_v41 = vmul.f32 %v1161_v39, %v942_v9 }
 0x6d1   : > { %v944_v11 = vsel %vm481_vm0, %v943_v10, 0.0 }
 0x6d2   : > { %945 = vadd.xlane.f32.xlu0 %v944_v11 }
 0x745   : > { %v946_v14 = vpop.xlane.xlu0 %945 }
 0x746   : > { %v947_v15 = vmul.f32 %v946_v14, %v1327_v24  ;;  %v1015_v24 = vld [vmem:[%s1513_s12 + $0x60] sm:$0xff] }
 0x747   : > { %1022 = vmatpush.msrb.mxu3 %v1015_v24 }
 0x748   : > { %1189 = vrsqrt.f32 %v947_v15  ;;  %vm955_vm8 = vcmp.eq.f32.partialorder %v947_v15, inf  ;;  %v958_v32 = vand.u32 2147483648, %v947_v15  ;;  %vm957_vm9 = vcmp.eq.f32.partialorder %v947_v15, 0.0 }
 0x749   : > { %1023 = vmatpush.msrb.mxu3 %v1014_v21 }
 0x74b   : > { %1024 = vmatpush.msrb.mxu3 %v1013_v23 }
 0x74d   : > { %1025 = vmatpush.msrb.mxu3 %v1012_v26 }
 0x74e   : > { %v1190_v19 = vpop.eup %1189 }
 0x74f   : > { %v949_v20 = vmul.f32 %v1190_v19, %v947_v15  ;;  %1026 = vmatpush.msrb.mxu3 %v1011_v28 }
 0x751   : > { %v950_v22 = vmul.f32 %v1190_v19, %v949_v20  ;;  %1027 = vmatpush.msrb.mxu3 %v1010_v30 }
 0x753   : > { %v951_v25 = vmul.f32 0.5, %v950_v22  ;;  %1028 = vmatpush.msrb.mxu3 %v1009_v33 }
 0x755   : > { %v952_v27 = vsub.f32 1.5, %v951_v25  ;;  %1029 = vmatpush.msrb.mxu3 %v1008_v36 }
 0x757   : > { %v953_v29 = vmul.f32 %v1190_v19, %v952_v27  ;;  %1030 = vmatpush.msrb.mxu3 %v1007_v38 }
 0x759   : > { %v954_v31 = vmul.f32 %v953_v29, %v947_v15  ;;  %1031 = vmatpush.msrb.mxu3 %v1006_v40 }
 0x75b   : > { %v956_v34 = vsel %vm955_vm8, %v947_v15, %v954_v31  ;;  %1032 = vmatpush.msrb.mxu3 %v1005_v46 }
 0x75c   : > { %v959_v35 = vsel %vm957_vm9, %v958_v32, %v956_v34 }
 0x75d   : > { %v960_v37 = vadd.f32 1e-06, %v959_v35  ;;  %1033 = vmatpush.msrb.mxu3 %v1004_v47 }
 0x75f   : > { %1191 = vrcp.f32 %v960_v37  ;;  %1034 = vmatpush.msrb.mxu3 %v1003_v48 }
 0x765   : > { %v1192_v43 = vpop.eup %1191 }
 0x766   : > { %v966_v44 = vmul.f32 %v1192_v43, %v965_v41 }
 0x768   : > { %v970_v45 = vadd.f32 %v1162_v42, %v966_v44 }
 0x76a   : > { %1132 = vmatmul.msk.f32.vlgmr.msrb.gmra.mxu1 %vm481_vm0, %v970_v45 }
 0x7e7   : > { %v999_v50 = vpop.f32.mrf.mxu1 }
 0x7e8   : > { %v1000_v51 = vadd.f32 %v1163_v49, %v999_v50 }
 0x7ea   : > { %v1002_v52 = vmax.f32 %v1000_v51, 0.0 }
 0x7ec   : > { %1035 = vmatmul.f32.vlgmr.msrb.gmra.mxu3 %v1002_v52 }
 0x86f   : > { %v1036_v54 = vpop.f32.mrf.mxu3 }
 0x870   : > { %v1039_v55 = vadd.f32 %v1036_v54, %v1410_v4 }
 0x872   : > { %v1044_v56 = vadd.f32 %v1164_v53, %v1039_v55 }
 0x874   : > { %1045 = vst.msk [vmem:[%s476_s16] sm:$0xff] %vm481_vm0, %v1044_v56 }
 0x875 PF: > { %s24_s29 = sadd.s32 1, %s1199_s29  }
 0x876   : > { %p21_p4 = scmp.ge.s32.totalorder %s24_s29, 4  }
 0x878   :  { %23 = sbr.rel (!%p21_p4) target bundleno = 1 (0x1), region = 109 }

// kernel: rel2reg_layout_forward.13
= control target key start
LH: loop header
LB: loop body
LE: loop exit
PB: predicated region body
PF: predicated region fallthrough
CT: control target
= control target key end

     0   :  { %14 = vsyncpa [#allocation3], 0  ;;  %s937_s0 = inlined_call_operand.vmem [shape: f32[2,8,32], index: 0, kind: input, shape index: {}]   ;;  %s938_s1 = inlined_call_operand.vmem [shape: f32[1,32], index: 1, kind: input, shape index: {}]   ;;  %s939_s2 = inlined_call_operand.vmem [shape: f32[1,32], index: 2, kind: input, shape index: {}]   ;;  %s940_s3 = inlined_call_operand.vmem [shape: f32[32,154], index: 3, kind: input, shape index: {}]   ;;  %s941_s4 = inlined_call_operand.vmem [shape: f32[1,154], index: 4, kind: input, shape index: {}]   ;;  %s942_s5 = inlined_call_operand.vmem [shape: f32[32,4], index: 5, kind: input, shape index: {}]   ;;  %s943_s6 = inlined_call_operand.vmem [shape: f32[1,4], index: 6, kind: input, shape index: {}]   ;;  %s944_s7 = inlined_call_operand.hbm [shape: f32[2,8,154], index: 7, kind: output, shape index: {0}]   ;;  %s945_s8 = inlined_call_operand.vmem [shape: f32[2,8,4], index: 8, kind: output, shape index: {1}]  }
   0x1   :  { %16 = vsyncpa [#allocation3 + $0x1], 0  ;;  %s786_s27 = smov 0   ;;  %s788_s28 = smov 0  }
   0x2   :  { %s790_s29 = smov 0   ;;  %s792_s30 = smov 0  }
   0x3 LB: > { %s807_s9 = sadd.s32 4294967295, %s737_s30   ;;  %s597_s10 = sadd.s32 4294967294, %s737_s30   ;;  %s737_s30 = sphi %s792_s30, %s951_s30   ;;  %s733_s29 = sphi %s790_s29, %s950_s29   ;;  %s729_s28 = sphi %s788_s28, %s949_s28   ;;  %s725_s27 = sphi %s786_s27, %s948_s27  }
   0x4   : > { %s811_s11 = sadd.s32 1, %s737_s30   ;;  %s181_s12 = sadd.s32 1, %s733_s29 }
   0x5   : > { %s178_s13 = ssub.s32 %s737_s30, %s811_s11  ;;  %p191_p0 = scmp.ne.s32.totalorder %s733_s29, %s729_s28 }
   0x6   : > { %p179_p1 = scmp.eq.s32.totalorder %s178_s13, 0  ;;  %p192_p2 = scmp.eq.s32.totalorder %s807_s9, 1 }
   0x7   : > { %p197_p3 = scmp.ne.s32.totalorder %s729_s28, %s725_s27  ;;  %p198_p4 = scmp.eq.s32.totalorder %s597_s10, 1 }
   0x8   : > { %s822_s14 = scalar_select %p179_p1, %s733_s29, %s181_s12  }
   0x9   : > { %p824_p5 = por %p192_p2, %p191_p0  ;;  %p828_p6 = por %p198_p4, %p197_p3 }
   0xa   : > { %p600_p7 = scmp.ge.s32.totalorder %s737_s30, 1  ;;  %p267_p8 = scmp.lt.s32.totalorder %s737_s30, 3 }
   0xc   : > { %p268_p9 = pnand %p600_p7, %p267_p8 }
   0xd   : > { %p304_p10 = scmp.lt.s32.totalorder (!%p268_p9), %s807_s9, 1  ;;  %s612_s24 = sshll.u32 (!%p268_p9), %s807_s9, 4 }
   0xe   : > { %271 = sbr.rel (%p268_p9) target bundleno = 693 (0x2b5), region = 48  ;;  %s506_s10 = scalar_lea.hbm (!%p268_p9), %s944_s7, %s612_s24 }
   0xf   : > { %s510_s19 = sshll.u32 (!%p268_p9), %s506_s10, 4  ;;  %s511_s19 = int_to_ptr.hbm [resolvable:$true] %s510_s19 }
  0x13   : > { %s836_s17 = scalar_select %p304_p10, %s807_s9, 1  ;;  %vm315_vm0 = vcmask 261120   ;;  %v739_v2 = vmov 32.0   ;;  %v740_v14 = vmov 31.0   ;;  %v369_v15 = vld [vmem:[%s940_s3 + $0x30] sm:$0xff]  ;;  %v370_v16 = vld [vmem:[%s940_s3 + $0x38] sm:$0xff] }
  0x14   : > { %657 = vrcp.f32 %v739_v2  ;;  %v444_v17 = vld [vmem:[%s942_s5 + $0x18] sm:$0xff]  ;;  %392 = vmatpush.msra.mxu0 %v369_v15  ;;  %412 = vmatpush.msra.mxu1 %v370_v16  ;;  %v367_v19 = vld [vmem:[%s940_s3 + $0x20] sm:$0xff]  ;;  %v368_v20 = vld [vmem:[%s940_s3 + $0x28] sm:$0xff]  ;;  %vm420_vm5 = vcmask 211968   ;;  %vm488_vm9 = vcmask 31744  }
  0x15   : > { %s602_s18 = sshll.u32 %s836_s17, 3  ;;  %659 = vrcp.f32 %v740_v14  ;;  %v443_v21 = vld [vmem:[%s942_s5 + $0x10] sm:$0xff]  ;;  %461 = vmatpush.msra.mxu2 %v444_v17  ;;  %v366_v23 = vld [vmem:[%s940_s3 + $0x18] sm:$0xff]  ;;  %v442_v24 = vld [vmem:[%s942_s5 + $0x8] sm:$0xff]  ;;  %s295_s17 = sand.u32 1, %s729_s28  }
  0x16   : > { %s307_s21 = scalar_lea.vmem %s937_s0, %s602_s18  ;;  %v365_v22 = vld [vmem:[%s940_s3 + $0x10] sm:$0xff]  ;;  %393 = vmatpush.msra.mxu0 %v367_v19  ;;  %413 = vmatpush.msra.mxu1 %v368_v20  ;;  %v363_v26 = vld [vmem:[%s940_s3] sm:$0xff]  ;;  %v364_v27 = vld [vmem:[%s940_s3 + $0x8] sm:$0xff]  ;;  %s311_s23 = scalar_lea.vmem %s945_s8, %s602_s18 }
  0x17   : > { %v312_v0 = vld [vmem:[%s307_s21] sm:$0xff]  ;;  %462 = vmatpush.msra.mxu2 %v443_v21  ;;  %s601_s18 = sshll.u32 %s295_s17, 4  ;;  %s491_s20 = scalar_lea.sflag [#allocation3], %s295_s17 }
  0x18   : > { %v316_v1 = vsel %vm315_vm0, %v312_v0, 0.0  ;;  %394 = vmatpush.msra.mxu0 %v365_v22  ;;  %414 = vmatpush.msra.mxu1 %v366_v23  ;;  %v441_v28 = vld [vmem:[%s942_s5] sm:$0xff]  ;;  %s297_s12 = scalar_lea.vmem [#allocation2], %s601_s18  ;;  %s689_s21 = sshra.s32 %s511_s19, 4  ;;  %s690_s21 = int_to_ptr.hbm [resolvable:$true] %s689_s21 }
  0x19   : > { %317 = vadd.xlane.f32.xlu0 %v316_v1  ;;  %463 = vmatpush.msra.mxu2 %v442_v24  ;;  %v654_v46 = vld [vmem:[%s938_s1] ss:$0 sm:$0xff]  ;;  %s508_s13 = sshll.u32 %s297_s12, 4  ;;  %s691_s9 = scalar_lea.hbm %s690_s21, 16  ;;  %s509_s13 = int_to_ptr.vmem [resolvable:$true] %s508_s13 }
  0x1a   : > { %v658_v3 = vpop.eup %657  ;;  %395 = vmatpush.msra.mxu0 %v363_v26  ;;  %415 = vmatpush.msra.mxu1 %v364_v27  ;;  %v655_v48 = vld [vmem:[%s939_s2] ss:$0 sm:$0xff]  ;;  %p692_p11 = scmp.ne.s32.totalorder %s690_s21, %s691_s9  ;;  %s695_s18 = scalar_lea.hbm %s944_s7, 32 }
  0x1b   : > { %v320_v4 = vmul.f32 32.0, %v658_v3  ;;  %vm324_vm1 = vweird.f32 %v658_v3  ;;  %v660_v18 = vpop.eup %659  ;;  %464 = vmatpush.msra.mxu2 %v441_v28  ;;  %v371_v52 = vld [vmem:[%s941_s4] sm:$0x3]  ;;  %p696_p0 = scmp.lt.s32.totalorder %s690_s21, %s944_s7  ;;  %p697_p1 = scmp.lt.s32.totalorder %s695_s18, %s691_s9 }
  0x1c   : > { %v333_v25 = vmul.f32 31.0, %v660_v18  ;;  %vm337_vm2 = vweird.f32 %v660_v18  ;;  %v373_v53 = vperm.slane %v371_v52, 0  ;;  %v374_v54 = vperm.slane %v371_v52, 1  ;;  %v656_v60 = vld [vmem:[%s943_s6] ss:$0 sm:$0xff]  ;;  %p693_p12 = pnand %p692_p11, %p824_p5 }
  0x1d   : > { %v321_v5 = vsub.f32 1.0, %v320_v4  ;;  %p698_p2 = por %p697_p1, %p696_p0 }
  0x1e   : > { %v334_v29 = vsub.f32 1.0, %v333_v25  ;;  %p694_p13 = pneg %p693_p12 }
  0x1f   : > { %v322_v6 = vmul.f32 %v658_v3, %v321_v5 }
  0x20   : > { %v335_v30 = vmul.f32 %v660_v18, %v334_v29  ;;  %p699_p3 = pnand %p698_p2, %p694_p13 }
  0x21   : > { %v323_v7 = vadd.f32 %v658_v3, %v322_v6 }
  0x22   : > { %v336_v31 = vadd.f32 %v660_v18, %v335_v30 }
  0x23   : > { %v325_v8 = vsel %vm324_vm1, %v658_v3, %v323_v7 }
  0x24   : > { %v338_v32 = vsel %vm337_vm2, %v660_v18, %v336_v31 }
  0x8c   : > { %v318_v9 = vpop.xlane.xlu0 %317 }
  0x8d   : > { %v326_v10 = vmul.f32 %v325_v8, %v318_v9 }
  0x8f   : > { %v327_v11 = vsub.f32 %v312_v0, %v326_v10 }
  0x91   : > { %v328_v12 = vmul.f32 %v327_v11, %v327_v11  ;;  %v357_v47 = vmul.f32 %v654_v46, %v327_v11 }
  0x93   : > { %v329_v13 = vsel %vm315_vm0, %v328_v12, 0.0 }
  0x94   : > { %330 = vadd.xlane.f32.xlu0 %v329_v13 }
 0x107   : > { %v331_v33 = vpop.xlane.xlu0 %330 }
 0x108   : > { %v339_v34 = vmul.f32 %v338_v32, %v331_v33 }
 0x10a   : > { %661 = vrsqrt.f32 %v339_v34  ;;  %vm347_vm3 = vcmp.eq.f32.partialorder %v339_v34, inf  ;;  %v350_v42 = vand.u32 2147483648, %v339_v34  ;;  %vm349_vm4 = vcmp.eq.f32.partialorder %v339_v34, 0.0 }
 0x110   : > { %v662_v35 = vpop.eup %661 }
 0x111   : > { %v341_v36 = vmul.f32 %v662_v35, %v339_v34 }
 0x113   : > { %v342_v37 = vmul.f32 %v662_v35, %v341_v36 }
 0x115   : > { %v343_v38 = vmul.f32 0.5, %v342_v37 }
 0x117   : > { %v344_v39 = vsub.f32 1.5, %v343_v38 }
 0x119   : > { %v345_v40 = vmul.f32 %v662_v35, %v344_v39 }
 0x11b   : > { %v346_v41 = vmul.f32 %v345_v40, %v339_v34 }
 0x11d   : > { %v348_v43 = vsel %vm347_vm3, %v339_v34, %v346_v41 }
 0x11e   : > { %v351_v44 = vsel %vm349_vm4, %v350_v42, %v348_v43 }
 0x11f   : > { %v352_v45 = vadd.f32 1e-06, %v351_v44 }
 0x121   : > { %663 = vrcp.f32 %v352_v45 }
 0x127   : > { %v664_v49 = vpop.eup %663 }
 0x128   : > { %v358_v50 = vmul.f32 %v664_v49, %v357_v47 }
 0x12a   : > { %v362_v51 = vadd.f32 %v655_v48, %v358_v50 }
 0x12c   : > { %604 = vmatmul.msk.f32.vlgmr.msra.gmra.mxu0 %vm315_vm0, %v362_v51  ;;  %605 = vmatmul.msk.f32.vlgmr.msra.gmra.mxu1 %vm315_vm0, %v362_v51 }
 0x12d   : > { %606 = vmatmul.msk.f32.vlgmr.msra.gmra.mxu2 %vm315_vm0, %v362_v51 }
 0x1a9   : > { %v397_v55 = vpop.f32.mrf.mxu0  ;;  %v417_v56 = vpop.f32.mrf.mxu1 }
 0x1aa   : > { %v398_v57 = vadd.f32 %v397_v55, %v373_v53  ;;  %v418_v58 = vadd.f32 %v417_v56, %v374_v54 }
 0x1ac   : > { %v421_v59 = vsel %vm420_vm5, %v418_v58, -inf }
 0x1ad   : > { %v422_v61 = vmax.f32 %v398_v57, %v421_v59 }
 0x1af   : > { %423 = vmax.xlane.f32.xlu1 %v422_v61 }
 0x1b0   : > { %v466_v62 = vpop.f32.mrf.mxu2 }
 0x1b1   : > { %v467_v63 = vadd.f32 %v656_v60, %v466_v62 }
 0x1b3   : > { %v469_v0 = vsub.f32 0.0, %v467_v63 }
 0x1b5   : > { %v470_v1 = vmul.f32 1.442695, %v469_v0 }
 0x1b7   : > { %665 = vpow2.f32 %v470_v1 }
 0x1bd   : > { %v666_v2 = vpop.eup %665 }
 0x1be   : > { %v472_v3 = vadd.f32 1.0, %v666_v2 }
 0x1c0   : > { %667 = vrcp.f32 %v472_v3  ;;  %v484_v7 = vand.u32 2147483648, %v472_v3  ;;  %v482_v9 = vand.u32 2147483647, %v472_v3  ;;  %vm478_vm7 = vweird.f32 %v472_v3 }
 0x1c2   : > { %v485_v11 = vor.u32 1.1754944e-38, %v484_v7  ;;  %vm483_vm10 = vcmp.eq.f32.partialorder %v482_v9, 8.507059e+37 }
 0x1c6   : > { %v668_v4 = vpop.eup %667 }
 0x1c7   : > { %v474_v5 = vmul.f32 %v668_v4, %v472_v3  ;;  %vm479_vm6 = vweird.f32 %v668_v4 }
 0x1c8   : > { %vm480_vm8 = vmor %vm478_vm7, %vm479_vm6 }
 0x1c9   : > { %v475_v6 = vsub.f32 1.0, %v474_v5 }
 0x1cb   : > { %v476_v8 = vmul.f32 %v668_v4, %v475_v6 }
 0x1cd   : > { %v477_v10 = vadd.f32 %v668_v4, %v476_v8 }
 0x1cf   : > { %v481_v12 = vsel %vm480_vm8, %v668_v4, %v477_v10 }
 0x1d0   : > { %v486_v13 = vsel %vm483_vm10, %v485_v11, %v481_v12 }
 0x1d1   : > { %489 = vst.msk [vmem:[%s311_s23] sm:$0xff] %vm488_vm9, %v486_v13 }
 0x222   : > { %v424_v14 = vpop.xlane.xlu1 %423 }
 0x223   : > { %v425_v15 = vsub.f32 %v398_v57, %v424_v14  ;;  %v426_v16 = vsub.f32 %v418_v58, %v424_v14 }
 0x225   : > { %v427_v17 = vmul.f32 1.442695, %v425_v15  ;;  %v429_v18 = vmul.f32 1.442695, %v426_v16 }
 0x227   : > { %669 = vpow2.f32 %v427_v17 }
 0x228   : > { %671 = vpow2.f32 %v429_v18 }
 0x22d   : > { %v670_v19 = vpop.eup %669 }
 0x22e   : > { %v672_v20 = vpop.eup %671 }
 0x22f   : > { %v431_v21 = vsel %vm420_vm5, %v672_v20, 0.0 }
 0x230   : > { %v432_v22 = vadd.f32 %v670_v19, %v431_v21 }
 0x232   : > { %433 = vadd.xlane.f32.xlu1 %v432_v22 }
 0x2a5   : > { %v434_v23 = vpop.xlane.xlu1 %433 }
 0x2a6   : > { %673 = vlog2.f32 %v434_v23 }
 0x2ac   : > { %v674_v24 = vpop.eup %673 }
 0x2ad   : > { %v436_v25 = vmul.f32 0.6931472, %v674_v24 }
 0x2af   : > { %v437_v26 = vsub.f32 %v425_v15, %v436_v25  ;;  %v438_v27 = vsub.f32 %v426_v16, %v436_v25 }
 0x2b1   : > { %439 = vst [vmem:[%s297_s12] sm:$0xff] %v437_v26 }
 0x2b2   : > { %440 = vst.msk [vmem:[%s297_s12 + $0x8] sm:$0xff] %vm420_vm5, %v438_v27 }
 0x2b3   : > { %702 = shalt.err (!%p699_p3)
}
 0x2b4   : > { %613 = dma.vmem_to_hbm [thread:$0]  (%p824_p5), %s509_s13, 256, %s511_s19, %s491_s20  }
 0x2b5 PF: > { %p619_p4 = scmp.ge.s32.totalorder %s737_s30, 2  ;;  %s525_s17 = sand.u32 1, %s725_s27  }
 0x2b6   : > { %s526_s26 = scalar_lea.sflag [#allocation3], %s525_s17 }
 0x2b7   : > { %p616_p7 = pnand %p619_p4, %p828_p6 }
 0x2b9   : > { %p617_p8 = pneg %p616_p7 }
 0x2bb   : > { %720 = dma.done.wait (%p617_p8), %s526_s26, 256  }
 0x2bc   : > { %722 = vsyncadd (%p617_p8), %s526_s26, 4294967040  ;;  %p19_p9 = scmp.ge.s32.totalorder %s811_s11, 4   ;;  %s948_s27 = smov %s729_s28 }
 0x2bd   : > { %s949_s28 = smov %s733_s29  ;;  %s950_s29 = smov %s822_s14 }
 0x2be   : > { %s951_s30 = smov %s811_s11  ;;  %21 = sbr.rel (!%p19_p9) target bundleno = 3 (0x3), region = 95 }
 0x2c3   :  { %539 = vsyncpa [#allocation3], 1 }
 0x2c4   :  { %541 = vsyncpa [#allocation3 + $0x1], 1 }

// kernel: rel2reg_layout_forward.12
= control target key start
LH: loop header
LB: loop body
LE: loop exit
PB: predicated region body
PF: predicated region fallthrough
CT: control target
= control target key end

     0   :  { %s2686_s0 = inlined_call_operand.vmem [shape: f32[2,8,32], index: 0, kind: input, shape index: {}]   ;;  %s2687_s1 = inlined_call_operand.vmem [shape: f32[2,8,32], index: 1, kind: input, shape index: {}]   ;;  %s2688_s2 = inlined_call_operand.vmem [shape: f32[2,8,8], index: 2, kind: input, shape index: {}]   ;;  %s2689_s3 = inlined_call_operand.vmem [shape: f32[2,1,8], index: 3, kind: input, shape index: {}]   ;;  %s2690_s4 = inlined_call_operand.vmem [shape: f32[1,32], index: 4, kind: input, shape index: {}]   ;;  %s2691_s5 = inlined_call_operand.vmem [shape: f32[1,32], index: 5, kind: input, shape index: {}]   ;;  %s2692_s6 = inlined_call_operand.vmem [shape: f32[32,96], index: 6, kind: input, shape index: {}]   ;;  %s2693_s7 = inlined_call_operand.vmem [shape: f32[1,96], index: 7, kind: input, shape index: {}]   ;;  %s2694_s8 = inlined_call_operand.vmem [shape: f32[32,32], index: 8, kind: input, shape index: {}]   ;;  %s2695_s9 = inlined_call_operand.vmem [shape: f32[1,32], index: 9, kind: input, shape index: {}]   ;;  %s2696_s10 = inlined_call_operand.vmem [shape: f32[1,32], index: 10, kind: input, shape index: {}]   ;;  %s2697_s11 = inlined_call_operand.vmem [shape: f32[1,32], index: 11, kind: input, shape index: {}]   ;;  %s2698_s12 = inlined_call_operand.vmem [shape: f32[32,32], index: 12, kind: input, shape index: {}]   ;;  %s2699_s13 = inlined_call_operand.vmem [shape: f32[1,32], index: 13, kind: input, shape index: {}]   ;;  %s2700_s14 = inlined_call_operand.vmem [shape: f32[32,64], index: 14, kind: input, shape index: {}]   ;;  %s2701_s15 = inlined_call_operand.vmem [shape: f32[1,64], index: 15, kind: input, shape index: {}]   ;;  %s2702_s16 = inlined_call_operand.vmem [shape: f32[32,32], index: 16, kind: input, shape index: {}]   ;;  %s2703_s17 = inlined_call_operand.vmem [shape: f32[1,32], index: 17, kind: input, shape index: {}]   ;;  %s2704_s18 = inlined_call_operand.vmem [shape: f32[1,32], index: 18, kind: input, shape index: {}]   ;;  %s2705_s19 = inlined_call_operand.vmem [shape: f32[1,32], index: 19, kind: input, shape index: {}]   ;;  %s2706_s20 = inlined_call_operand.vmem [shape: f32[32,128], index: 20, kind: input, shape index: {}]   ;;  %s2707_s21 = inlined_call_operand.hbm [shape: f32[1,128], index: 21, kind: input, shape index: {}]   ;;  %s2708_s22 = inlined_call_operand.vmem [shape: f32[128,32], index: 22, kind: input, shape index: {}]   ;;  %s2709_s23 = inlined_call_operand.hbm [shape: f32[1,32], index: 23, kind: input, shape index: {}]   ;;  %s2710_s24 = inlined_call_operand.vmem [shape: f32[2,8,32], index: 24, kind: output, shape index: {}]  }
   0x1   :  { %2725 = sst [smem:[#allocation8_spill]] %s2686_s0 }
   0x2   :  { %2726 = sst [smem:[#allocation9_spill]] %s2687_s1 }
   0x3   :  { %2727 = sst [smem:[#allocation10_spill]] %s2688_s2 }
   0x4   :  { %2728 = sst [smem:[#allocation11_spill]] %s2689_s3 }
   0x5   :  { %2729 = sst [smem:[#allocation12_spill]] %s2690_s4 }
   0x6   :  { %2730 = sst [smem:[#allocation13_spill]] %s2691_s5 }
   0x7   :  { %2731 = sst [smem:[#allocation14_spill]] %s2692_s6 }
   0x8   :  { %2732 = sst [smem:[#allocation15_spill]] %s2693_s7 }
   0x9   :  { %2733 = sst [smem:[#allocation16_spill]] %s2694_s8 }
   0xa   :  { %29 = vsyncpa [#allocation3], 0 }
   0xb   :  { %30 = vsyncpa [#allocation5], 0  ;;  %s2330_s5 = smov 0  }
   0xc LB: > { %s654_s28 = sshll.u32 %s2707_s21, 4  ;;  %s1958_s6 = sadd.s32 4294967295, %s2187_s5   ;;  %s2187_s5 = sphi %s2330_s5, %s36_s5   ;;  %s655_s28 = int_to_ptr.hbm [resolvable:$true] %s654_s28 }
   0xd   : > { %p1960_p0 = scmp.ge.s32.totalorder %s2187_s5, 1  ;;  %p591_p1 = scmp.lt.s32.totalorder %s2187_s5, 3 }
   0xe   : > { %p2024_p2 = scmp.eq.s32.totalorder %s1958_s6, 0  ;;  %s2189_s29 = smov [#allocation2]  }
   0xf   : > { %p2341_p3 = pnand %p1960_p0, %p591_p1  ;;  %s656_s0 = sshll.u32 %s2189_s29, 4  ;;  %s657_s0 = int_to_ptr.vmem [resolvable:$true] %s656_s0 }
  0x10   : > { %s669_s3 = sshll.u32 %s2709_s23, 4  ;;  %s2190_s25 = smov [#allocation4]   ;;  %s670_s3 = int_to_ptr.hbm [resolvable:$true] %s669_s3 }
  0x11   : > { %p2017_p4 = pneg %p2341_p3  ;;  %s671_s8 = sshll.u32 %s2190_s25, 4  ;;  %s672_s8 = int_to_ptr.vmem [resolvable:$true] %s671_s8 }
  0x12   : > { %711 = sbr.rel (%p2341_p3) target bundleno = 3905 (0xf41), region = 116 }
  0x13   : > { %p2018_p5 = pnand %p2024_p2, %p2017_p4 }
  0x15   : > { %2020 = dma.hbm_to_vmem [thread:$0]  (!%p2018_p5), %s655_s28, 16, %s657_s0, [#allocation3]  }
  0x16   : > { %2023 = dma.hbm_to_vmem [thread:$0]  (!%p2018_p5), %s670_s3, 16, %s672_s8, [#allocation5]  }
  0x17   : > { %2178 = dma.done.wait (%p2024_p2), [#allocation3], 16  }
  0x18   : > { %2180 = vsyncadd (%p2024_p2), [#allocation3], 4294967280 }
  0x19   : > { %2182 = dma.done.wait (%p2024_p2), [#allocation5], 16  }
  0x1a   : > { %2184 = vsyncadd (%p2024_p2), [#allocation5], 4294967280  ;;  %p792_p6 = scmp.lt.s32.totalorder %s1958_s6, 1  ;;  %s2735_s27 = sld [smem:[#allocation8_spill]]  ;;  %vm817_vm0 = vcmask 261120   ;;  %v2191_v2 = vmov 32.0  }
  0x1b   : > { %2065 = vrcp.f32 %v2191_v2  ;;  %v2192_v14 = vmov 31.0   ;;  %s2736_s0 = sld [smem:[#allocation14_spill]]  ;;  %s2719_s8 = smov 120   ;;  %vm903_vm5 = vcmask 64512  }
  0x1c   : > { %s2754_s6 = smov (!%p792_p6, %s1958_s6), 1  ;;  %2067 = vrcp.f32 %v2192_v14  ;;  %s2738_s7 = sld [smem:[#allocation13_spill]] }
  0x1d   : > { %s2360_s4 = sshll.u32 %s2754_s6, 3  ;;  %s2739_s25 = sld [smem:[#allocation15_spill]] }
  0x1e   : > { %s2718_s1 = smov 96   ;;  %s2715_s26 = smov 88  }
  0x1f   : > { %s2740_s29 = sld [smem:[#allocation10_spill]]  ;;  %s2714_s30 = smov 80  }
  0x20   : > { %s795_s28 = scalar_lea.vmem %s2735_s27, %s2360_s4  ;;  %s2196_s27 = smov 64  }
  0x21   : > { %v2366_v0 = vld [vmem:[%s795_s28] sm:$0xff]  ;;  %v2066_v3 = vpop.eup %2065  ;;  %v868_v15 = vld [vmem:[%s2736_s0 + $0x18] sm:$0xff]  ;;  %v867_v16 = vld [vmem:[%s2736_s0 + $0x10] sm:$0xff]  ;;  %s2737_s28 = sld [smem:[#allocation12_spill]]  ;;  %s2198_s3 = smov 56  }
  0x22   : > { %v818_v1 = vsel %vm817_vm0, %v2366_v0, 0.0  ;;  %v822_v4 = vmul.f32 32.0, %v2066_v3  ;;  %vm826_vm1 = vweird.f32 %v2066_v3  ;;  %v2068_v17 = vpop.eup %2067  ;;  %888 = vmatpush.msra.mxu0 %v868_v15  ;;  %v866_v18 = vld [vmem:[%s2736_s0 + $0x8] sm:$0xff]  ;;  %v865_v20 = vld [vmem:[%s2736_s0] sm:$0xff]  ;;  %s2742_s0 = sld [smem:[#allocation9_spill]] }
  0x23   : > { %819 = vadd.xlane.f32.xlu0 %v818_v1  ;;  %v835_v19 = vmul.f32 31.0, %v2068_v17  ;;  %vm839_vm2 = vweird.f32 %v2068_v17  ;;  %v2053_v40 = vld [vmem:[%s2738_s7] ss:$0 sm:$0xff] }
  0x24   : > { %v823_v5 = vsub.f32 1.0, %v822_v4  ;;  %889 = vmatpush.msra.mxu0 %v867_v16  ;;  %v2054_v44 = vld [vmem:[%s2739_s25] ss:$0 sm:$0xff]  ;;  %s2713_s25 = smov 72  }
  0x25   : > { %v836_v21 = vsub.f32 1.0, %v835_v19  ;;  %s803_s7 = scalar_lea.vmem %s2740_s29, %s2360_s4  ;;  %s2202_s29 = smov 48  }
  0x26   : > { %v824_v6 = vmul.f32 %v2066_v3, %v823_v5  ;;  %890 = vmatpush.msra.mxu0 %v866_v18  ;;  %v2418_v51 = vld [vmem:[%s803_s7] sm:$0xff]  ;;  %s2741_s7 = sld [smem:[#allocation16_spill]] }
  0x27   : > { %v837_v22 = vmul.f32 %v2068_v17, %v836_v21  ;;  %v2052_v38 = vld [vmem:[%s2737_s28] ss:$0 sm:$0xff]  ;;  %vm929_vm6 = vcmp.gt.f32.partialorder %v2418_v51, 0.0  ;;  %s2721_s28 = smov 104  }
  0x28   : > { %v825_v7 = vadd.f32 %v2066_v3, %v824_v6  ;;  %891 = vmatpush.msra.mxu0 %v865_v20 }
  0x29   : > { %v838_v23 = vadd.f32 %v2068_v17, %v837_v22 }
  0x2a   : > { %v2370_v8 = vsel %vm826_vm1, %v2066_v3, %v825_v7 }
  0x2b   : > { %v2387_v24 = vsel %vm839_vm2, %v2068_v17, %v838_v23 }
  0x2c   : > { %v896_v15 = vld [vmem:[%s2741_s7] sm:$0xff] }
  0x96   : > { %v820_v9 = vpop.xlane.xlu0 %819 }
  0x97   : > { %v828_v10 = vmul.f32 %v2370_v8, %v820_v9 }
  0x99   : > { %v829_v11 = vsub.f32 %v2366_v0, %v828_v10 }
  0x9b   : > { %v830_v12 = vmul.f32 %v829_v11, %v829_v11  ;;  %v859_v39 = vmul.f32 %v2052_v38, %v829_v11 }
  0x9d   : > { %v831_v13 = vsel %vm817_vm0, %v830_v12, 0.0 }
  0x9e   : > { %832 = vadd.xlane.f32.xlu0 %v831_v13 }
 0x111   : > { %v833_v25 = vpop.xlane.xlu0 %832 }
 0x112   : > { %v841_v26 = vmul.f32 %v2387_v24, %v833_v25 }
 0x114   : > { %2069 = vrsqrt.f32 %v841_v26  ;;  %vm849_vm3 = vcmp.eq.f32.partialorder %v841_v26, inf  ;;  %v852_v34 = vand.u32 2147483648, %v841_v26  ;;  %vm851_vm4 = vcmp.eq.f32.partialorder %v841_v26, 0.0 }
 0x11a   : > { %v2070_v27 = vpop.eup %2069 }
 0x11b   : > { %v843_v28 = vmul.f32 %v2070_v27, %v841_v26 }
 0x11d   : > { %v844_v29 = vmul.f32 %v2070_v27, %v843_v28 }
 0x11f   : > { %v845_v30 = vmul.f32 0.5, %v844_v29 }
 0x121   : > { %v846_v31 = vsub.f32 1.5, %v845_v30 }
 0x123   : > { %v847_v32 = vmul.f32 %v2070_v27, %v846_v31 }
 0x125   : > { %v848_v33 = vmul.f32 %v847_v32, %v841_v26 }
 0x127   : > { %v850_v35 = vsel %vm849_vm3, %v841_v26, %v848_v33  ;;  %v897_v26 = vld [vmem:[%s2741_s7 + $0x8] sm:$0xff] }
 0x128   : > { %v853_v36 = vsel %vm851_vm4, %v852_v34, %v850_v35 }
 0x129   : > { %v854_v37 = vadd.f32 1e-06, %v853_v36 }
 0x12b   : > { %2071 = vrcp.f32 %v854_v37 }
 0x131   : > { %v2072_v41 = vpop.eup %2071 }
 0x132   : > { %v860_v42 = vmul.f32 %v2072_v41, %v859_v39 }
 0x134   : > { %v864_v43 = vadd.f32 %v2053_v40, %v860_v42 }
 0x136   : > { %1971 = vmatmul.msk.f32.vlgmr.msra.gmra.mxu0 %vm817_vm0, %v864_v43 }
 0x1b3   : > { %v893_v45 = vpop.f32.mrf.mxu0 }
 0x1b4   : > { %v2400_v46 = vadd.f32 %v2054_v44, %v893_v45 }
 0x1b6   : > { %968 = vrot.lane.b32.xlu2 %v2400_v46, %s2719_s8  ;;  %901 = vrot.lane.b32.xlu1 %v2400_v46, %s2718_s1  ;;  %s2744_s8 = sld [smem:[#allocation11_spill]]  ;;  %s810_s1 = scalar_lea.vmem %s2710_s24, %s2360_s4 }
 0x1be   : > { %970 = vrot.lane.b32.xlu1 %v2400_v46, %s2715_s26 }
 0x1c6   : > { %942 = vrot.lane.b32.xlu1 %v2400_v46, %s2196_s27  ;;  %s2716_s27 = smov 112  }
 0x210   : > { %v969_v49 = vpop.permute.xlu2 %968 }
 0x228   : > { %v902_v47 = vpop.permute.xlu1 %901 }
 0x229   : > { %1972 = vmatpush.xpose.msk.msra.mxu1 %vm903_vm5, %v902_v47 }
 0x22c   : > { %1973 = vmatmul.msk.f32.vlgmr.msra.gmra.mxu1 %vm903_vm5, %v2400_v46 }
 0x230   : > { %v971_v48 = vpop.permute.xlu1 %970 }
 0x231   : > { %1975 = vmatpush.xpose.msk.msra.mxu3 %vm903_vm5, %v971_v48  ;;  %v898_v48 = vld [vmem:[%s2741_s7 + $0x10] sm:$0xff] }
 0x234   : > { %1976 = vmatmul.msk.f32.vlgmr.msra.gmra.mxu3 %vm903_vm5, %v969_v49 }
 0x238   : > { %v943_v50 = vpop.permute.xlu1 %942 }
 0x239   : > { %963 = vmatpush.msrb.mxu1 %v943_v50 }
 0x23b   : > { %1053 = vmatpush.msra.mxu1 %v897_v26 }
 0x2a9   : > { %v925_v52 = vpop.f32.mrf.mxu1 }
 0x2aa   : > { %v928_v53 = vmul.f32 0.35355338, %v925_v52 }
 0x2ac   : > { %v930_v54 = vsel %vm929_vm6, %v928_v53, -1e+09 }
 0x2ad   : > { %v931_v55 = vsel %vm903_vm5, %v930_v54, -inf }
 0x2ae   : > { %932 = vmax.xlane.f32.xlu2 %v931_v55 }
 0x2b7   : > { %v993_v60 = vpop.f32.mrf.mxu3 }
 0x2b8   : > { %v996_v63 = vmul.f32 0.35355338, %v993_v60 }
 0x2ba   : > { %v997_v1 = vsel %vm929_vm6, %v996_v63, -1e+09 }
 0x2bb   : > { %v998_v2 = vsel %vm903_vm5, %v997_v1, -inf }
 0x2c6   : > { %1083 = vrot.lane.b32.xlu2 %v2400_v46, %s2714_s30 }
 0x321   : > { %v933_v56 = vpop.xlane.xlu2 %932 }
 0x322   : > { %v934_v57 = vsub.f32 %v930_v54, %v933_v56 }
 0x324   : > { %v935_v58 = vmul.f32 1.442695, %v934_v57 }
 0x326   : > { %2073 = vpow2.f32 %v935_v58 }
 0x329   : > { %v1084_v59 = vpop.permute.xlu2 %1083 }
 0x32a   : > { %1980 = vmatpush.xpose.msk.msrb.mxu0 %vm903_vm5, %v1084_v59 }
 0x32c   : > { %v2074_v61 = vpop.eup %2073 }
 0x32d   : > { %v937_v62 = vsel %vm903_vm5, %v2074_v61, 0.0 }
 0x32e   : > { %938 = vadd.xlane.f32.xlu0 %v937_v62 }
 0x336   : > { %999 = vmax.xlane.f32.xlu0 %v998_v2 }
 0x34a   : > { %1009 = vrot.lane.b32.xlu0 %v2400_v46, %s2198_s3  ;;  %s2203_s3 = smov 40  }
 0x352   : > { %1174 = vrot.lane.b32.xlu0 %v2400_v46, %s2713_s25  ;;  %s2750_s25 = smov 88  }
 0x35a   : > { %1081 = vrot.lane.b32.xlu0 %v2400_v46, %s2716_s27  ;;  %s2747_s27 = smov 120  }
 0x3a1   : > { %v939_v3 = vpop.xlane.xlu0 %938 }
 0x3a2   : > { %2075 = vrcp.f32 %v939_v3 }
 0x3a8   : > { %v2076_v4 = vpop.eup %2075 }
 0x3a9   : > { %v1000_v5 = vpop.xlane.xlu0 %999  ;;  %v941_v6 = vmul.f32 %v2076_v4, %v2074_v61  ;;  %v2055_v61 = vld [vmem:[%s2695_s9] ss:$0 sm:$0xff] }
 0x3aa   : > { %v1001_v7 = vsub.f32 %v997_v1, %v1000_v5 }
 0x3ab   : > { %1974 = vmatmul.msk.f32.vlgmr.msrb.gmra.mxu1 %vm903_vm5, %v941_v6 }
 0x3ac   : > { %v1002_v9 = vmul.f32 1.442695, %v1001_v7  ;;  %1166 = vmatpush.msrb.mxu1 %v898_v48  ;;  %v1338_v7 = vld [vmem:[%s2700_s14 + $0x18] sm:$0xff] }
 0x3ae   : > { %2077 = vpow2.f32 %v1002_v9  ;;  %v1307_v9 = vld [vmem:[%s2698_s12 + $0x18] sm:$0xff] }
 0x3b4   : > { %v2078_v10 = vpop.eup %2077 }
 0x3b5   : > { %v1004_v11 = vsel %vm903_vm5, %v2078_v10, 0.0 }
 0x3b6   : > { %1005 = vadd.xlane.f32.xlu1 %v1004_v11  ;;  %v1306_v11 = vld [vmem:[%s2698_s12 + $0x10] sm:$0xff] }
 0x3bc   : > { %v1010_v12 = vpop.permute.xlu0 %1009 }
 0x3bd   : > { %1030 = vmatpush.msrb.mxu3 %v1010_v12  ;;  %v1305_v12 = vld [vmem:[%s2698_s12 + $0x8] sm:$0xff] }
 0x3bf   : > { %1076 = vmatpush.msra.mxu3 %v896_v15  ;;  %v1304_v15 = vld [vmem:[%s2698_s12] sm:$0xff] }
 0x3c4   : > { %v1175_v13 = vpop.permute.xlu0 %1174 }
 0x3cc   : > { %v1082_v14 = vpop.permute.xlu0 %1081 }
 0x3cd   : > { %1981 = vmatmul.msk.f32.vlgmr.msrb.gmra.mxu0 %vm903_vm5, %v1082_v14 }
 0x3cf   : > { %1172 = vrot.lane.b32.xlu1 %v2400_v46, %s2721_s28  ;;  %s2749_s28 = smov 112  }
 0x428   : > { %v965_v19 = vpop.f32.mrf.mxu1 }
 0x429   : > { %v1006_v16 = vpop.xlane.xlu1 %1005 }
 0x42a   : > { %2079 = vrcp.f32 %v1006_v16 }
 0x430   : > { %v2080_v17 = vpop.eup %2079 }
 0x431   : > { %v1008_v18 = vmul.f32 %v2080_v17, %v2078_v10  ;;  %v1336_v10 = vld [vmem:[%s2700_s14 + $0x8] sm:$0xff] }
 0x433   : > { %1977 = vmatmul.msk.f32.vlgmr.msrb.gmra.mxu3 %vm903_vm5, %v1008_v18 }
 0x434   : > { %1984 = vmatpush.xpose.msk.msrb.mxu3 %vm903_vm5, %v1175_v13  ;;  %v1335_v13 = vld [vmem:[%s2700_s14] sm:$0xff] }
 0x43b   : > { %1979 = vmatmul.msk.f32.vlgmr.msra.gmra.mxu3 %vm903_vm5, %v965_v19 }
 0x43c   : > { %1358 = vmatpush.msra.mxu3 %v1338_v7 }
 0x441   : > { %v1173_v20 = vpop.permute.xlu1 %1172 }
 0x443   : > { %1985 = vmatmul.msk.f32.vlgmr.msrb.gmra.mxu3 %vm903_vm5, %v1173_v20 }
 0x44a   : > { %v1106_v21 = vpop.f32.mrf.mxu0 }
 0x44b   : > { %v1109_v22 = vmul.f32 0.35355338, %v1106_v21 }
 0x44d   : > { %v1110_v23 = vsel %vm929_vm6, %v1109_v22, -1e+09 }
 0x44e   : > { %v1111_v25 = vsel %vm903_vm5, %v1110_v23, -inf }
 0x44f   : > { %1112 = vmax.xlane.f32.xlu0 %v1111_v25 }
 0x4b6   : > { %v1032_v27 = vpop.f32.mrf.mxu3 }
 0x4b7   : > { %1978 = vmatmul.msk.f32.vlgmr.msra.gmra.mxu1 %vm903_vm5, %v1032_v27 }
 0x4b8   : > { %1327 = vmatpush.msra.mxu1 %v1307_v9 }
 0x4ba   : > { %1328 = vmatpush.msra.mxu1 %v1306_v11 }
 0x4bc   : > { %1329 = vmatpush.msra.mxu1 %v1305_v12 }
 0x4be   : > { %v1078_v28 = vpop.f32.mrf.mxu3  ;;  %1330 = vmatpush.msra.mxu1 %v1304_v15 }
 0x4c2   : > { %v1113_v29 = vpop.xlane.xlu0 %1112 }
 0x4c3   : > { %v1114_v30 = vsub.f32 %v1110_v23, %v1113_v29 }
 0x4c5   : > { %v1115_v31 = vmul.f32 1.442695, %v1114_v30  ;;  %v2056_v30 = vld [vmem:[%s2696_s10] ss:$0 sm:$0xff] }
 0x4c6   : > { %v1197_v32 = vpop.f32.mrf.mxu3 }
 0x4c7   : > { %2081 = vpow2.f32 %v1115_v31  ;;  %v1200_v33 = vmul.f32 0.35355338, %v1197_v32  ;;  %v2057_v32 = vld [vmem:[%s2697_s11] ss:$0 sm:$0xff] }
 0x4c9   : > { %v1201_v34 = vsel %vm929_vm6, %v1200_v33, -1e+09 }
 0x4ca   : > { %v1202_v35 = vsel %vm903_vm5, %v1201_v34, -inf }
 0x4cb   : > { %1203 = vmax.xlane.f32.xlu2 %v1202_v35 }
 0x4cd   : > { %v2082_v36 = vpop.eup %2081 }
 0x4ce   : > { %v1117_v37 = vsel %vm903_vm5, %v2082_v36, 0.0 }
 0x4cf   : > { %1118 = vadd.xlane.f32.xlu1 %v1117_v37 }
 0x4e3   : > { %1122 = vrot.lane.b32.xlu2 %v2400_v46, %s2202_s29  ;;  %s2743_s29 = smov 104  }
 0x534   : > { %v1055_v55 = vpop.f32.mrf.mxu1 }
 0x535   : > { %v1079_v57 = vadd.f32 %v1078_v28, %v1055_v55 }
 0x53e   : > { %v1204_v38 = vpop.xlane.xlu2 %1203 }
 0x53f   : > { %v1205_v39 = vsub.f32 %v1201_v34, %v1204_v38 }
 0x541   : > { %v1206_v40 = vmul.f32 1.442695, %v1205_v39  ;;  %v2059_v39 = vld [vmem:[%s2699_s13] ss:$0 sm:$0xff] }
 0x542   : > { %v1119_v41 = vpop.xlane.xlu1 %1118 }
 0x543   : > { %2083 = vpow2.f32 %v1206_v40 }
 0x544   : > { %2085 = vrcp.f32 %v1119_v41 }
 0x546   : > { %v1123_v42 = vpop.permute.xlu2 %1122 }
 0x547   : > { %1143 = vmatpush.msra.mxu0 %v1123_v42 }
 0x549   : > { %v2084_v43 = vpop.eup %2083 }
 0x54a   : > { %v2086_v44 = vpop.eup %2085  ;;  %v1208_v45 = vsel %vm903_vm5, %v2084_v43, 0.0 }
 0x54b   : > { %v1121_v47 = vmul.f32 %v2086_v44, %v2082_v36  ;;  %1209 = vadd.xlane.f32.xlu0 %v1208_v45  ;;  %v2058_v36 = vld [vmem:[%s2701_s15] ss:$0 sm:$0xff] }
 0x54d   : > { %1982 = vmatmul.msk.f32.vlgmr.msra.gmra.mxu0 %vm903_vm5, %v1121_v47 }
 0x55f   : > { %1213 = vrot.lane.b32.xlu0 %v2400_v46, %s2203_s3  ;;  %v899_v46 = vld [vmem:[%s2741_s7 + $0x18] sm:$0xff]  ;;  %s799_s7 = scalar_lea.vmem %s2742_s0, %s2360_s4  ;;  %s806_s0 = scalar_lea.vmem %s2744_s8, %s2754_s6 }
 0x560   : > { %1257 = vmatpush.msra.mxu2 %v899_v46  ;;  %v812_v14 = vld [vmem:[%s799_s7] sm:$0xff]  ;;  %s2748_s6 = smov 96   ;;  %s2752_s3 = smov 72  }
 0x561   : > { %v814_v42 = vld [vmem:[%s806_s0] sm:$0x1] }
 0x562   : > { %vm1397_vm9 = vcmp.gt.f32.partialorder %v814_v42, 0.0 }
 0x5be   : > { %v1210_v49 = vpop.xlane.xlu0 %1209 }
 0x5bf   : > { %2087 = vrcp.f32 %v1210_v49 }
 0x5c5   : > { %v2088_v51 = vpop.eup %2087 }
 0x5c6   : > { %v1212_v52 = vmul.f32 %v2088_v51, %v2084_v43  ;;  %v2204_v43 = vmov 0  }
 0x5c7   : > { %v1398_v44 = vsel %vm1397_vm9, 1, %v2204_v43 }
 0x5c8   : > { %v1399_v45 = vperm.slane %v1398_v44, 0  ;;  %v1367_v44 = vld [vmem:[%s2702_s16 + $0x8] sm:$0xff] }
 0x5ca   : > { %v1145_v50 = vpop.f32.mrf.mxu0  ;;  %vm2537_vm10 = vcmp.eq.s32.totalorder %v1399_v45, 1  ;;  %v1368_v45 = vld [vmem:[%s2702_s16 + $0x10] sm:$0xff] }
 0x5cb   : > { %1983 = vmatmul.msk.f32.vlgmr.msrb.gmra.mxu1 %vm903_vm5, %v1145_v50 }
 0x5d1   : > { %v1214_v53 = vpop.permute.xlu0 %1213 }
 0x5d2   : > { %1234 = vmatpush.msrb.mxu0 %v1214_v53 }
 0x5d3   : > { %1986 = vmatmul.msk.f32.vlgmr.msrb.gmra.mxu0 %vm903_vm5, %v1212_v52 }
 0x648   : > { %v1168_v56 = vpop.f32.mrf.mxu1 }
 0x649   : > { %v1171_v58 = vadd.f32 %v1168_v56, %v1079_v57 }
 0x650   : > { %v1236_v54 = vpop.f32.mrf.mxu0 }
 0x651   : > { %1987 = vmatmul.msk.f32.vlgmr.msra.gmra.mxu2 %vm903_vm5, %v1236_v54 }
 0x6d4   : > { %v1259_v59 = vpop.f32.mrf.mxu2 }
 0x6d5   : > { %v1262_v60 = vadd.f32 %v1259_v59, %v1171_v58 }
 0x6d7   : > { %v1263_v62 = vadd.f32 %v1262_v60, %v2366_v0  ;;  %v1337_v0 = vld [vmem:[%s2700_s14 + $0x10] sm:$0xff]  ;;  %v1366_v60 = vld [vmem:[%s2702_s16] sm:$0xff] }
 0x6d8   : > { %1359 = vmatpush.msra.mxu3 %v1337_v0 }
 0x6d9   : > { %v2476_v63 = vadd.f32 %v2055_v61, %v1263_v62 }
 0x6da   : > { %1360 = vmatpush.msra.mxu3 %v1336_v10 }
 0x6db   : > { %v1271_v1 = vsel %vm817_vm0, %v2476_v63, 0.0 }
 0x6dc   : > { %1272 = vadd.xlane.f32.xlu1 %v1271_v1  ;;  %1361 = vmatpush.msra.mxu3 %v1335_v13 }
 0x6dd   : > { %1989 = vmatmul.msk.f32.vlgmr.msra.gmra.mxu3 %vm817_vm0, %v812_v14 }
 0x74f   : > { %v1273_v2 = vpop.xlane.xlu1 %1272 }
 0x750   : > { %v1274_v3 = vmul.f32 %v1273_v2, %v2370_v8 }
 0x752   : > { %v1275_v4 = vsub.f32 %v2476_v63, %v1274_v3 }
 0x754   : > { %v1276_v5 = vmul.f32 %v1275_v4, %v1275_v4  ;;  %v1298_v31 = vmul.f32 %v2056_v30, %v1275_v4 }
 0x756   : > { %v1277_v6 = vsel %vm817_vm0, %v1276_v5, 0.0 }
 0x757   : > { %1278 = vadd.xlane.f32.xlu0 %v1277_v6 }
 0x760   : > { %v1363_v37 = vpop.f32.mrf.mxu3 }
 0x761   : > { %v2523_v38 = vadd.f32 %v2058_v36, %v1363_v37 }
 0x763   : > { %1990 = vmatpush.xpose.msk.msra.mxu0 %vm903_vm5, %v2523_v38 }
 0x767   : > { %1524 = vmatpush.msrb.mxu0 %v1367_v44  ;;  %v2063_v44 = vld [vmem:[#allocation2] ss:$0 sm:$0xff] }
 0x76b   : > { %1645 = vrot.lane.b32.xlu0 %v2523_v38, %s2743_s29 }
 0x7ca   : > { %v1279_v16 = vpop.xlane.xlu0 %1278 }
 0x7cb   : > { %v1280_v17 = vmul.f32 %v1279_v16, %v2387_v24 }
 0x7cd   : > { %2089 = vrsqrt.f32 %v1280_v17  ;;  %vm1288_vm7 = vcmp.eq.f32.partialorder %v1280_v17, inf  ;;  %v1291_v26 = vand.u32 2147483648, %v1280_v17  ;;  %vm1290_vm8 = vcmp.eq.f32.partialorder %v1280_v17, 0.0 }
 0x7d3   : > { %v2090_v18 = vpop.eup %2089 }
 0x7d4   : > { %v1282_v19 = vmul.f32 %v2090_v18, %v1280_v17 }
 0x7d6   : > { %v1283_v20 = vmul.f32 %v2090_v18, %v1282_v19 }
 0x7d8   : > { %v1284_v21 = vmul.f32 0.5, %v1283_v20 }
 0x7da   : > { %v1285_v22 = vsub.f32 1.5, %v1284_v21 }
 0x7dc   : > { %v1286_v23 = vmul.f32 %v2090_v18, %v1285_v22 }
 0x7dd   : > { %v1646_v61 = vpop.permute.xlu0 %1645 }
 0x7de   : > { %v1287_v25 = vmul.f32 %v1286_v23, %v1280_v17 }
 0x7e0   : > { %v1289_v27 = vsel %vm1288_vm7, %v1280_v17, %v1287_v25 }
 0x7e1   : > { %v1292_v28 = vsel %vm1290_vm8, %v1291_v26, %v1289_v27 }
 0x7e2   : > { %v1293_v29 = vadd.f32 1e-06, %v1292_v28 }
 0x7e4   : > { %2091 = vrcp.f32 %v1293_v29 }
 0x7ea   : > { %v2092_v33 = vpop.eup %2091 }
 0x7eb   : > { %v1299_v34 = vmul.f32 %v2092_v33, %v1298_v31 }
 0x7ed   : > { %v1303_v35 = vadd.f32 %v2057_v32, %v1299_v34 }
 0x7ef   : > { %1988 = vmatmul.msk.f32.vlgmr.msra.gmra.mxu1 %vm817_vm0, %v1303_v35 }
 0x86c   : > { %v1332_v40 = vpop.f32.mrf.mxu1 }
 0x86d   : > { %v1333_v41 = vadd.f32 %v2059_v39, %v1332_v40 }
 0x86f   : > { %1991 = vmatmul.msk.f32.vlgmr.msra.gmra.mxu0 %vm903_vm5, %v1333_v41 }
 0x870   : > { %1637 = vmatpush.msra.mxu0 %v1368_v45 }
 0x8ec   : > { %v1393_v47 = vpop.f32.mrf.mxu0 }
 0x8ed   : > { %v1396_v49 = vmul.f32 0.35355338, %v1393_v47 }
 0x8ef   : > { %v1401_v50 = vsel %vm2537_vm10, %v1396_v49, -1e+09 }
 0x8f0   : > { %v1402_v51 = vsel %vm903_vm5, %v1401_v50, -inf }
 0x8f1   : > { %1403 = vmax.xlane.f32.xlu2 %v1402_v51 }
 0x909   : > { %1439 = vrot.lane.b32.xlu2 %v1333_v41, %s2747_s27 }
 0x964   : > { %v1404_v52 = vpop.xlane.xlu2 %1403 }
 0x965   : > { %v1405_v53 = vsub.f32 %v1401_v50, %v1404_v52  ;;  %v1369_v52 = vld [vmem:[%s2702_s16 + $0x18] sm:$0xff] }
 0x967   : > { %v1406_v46 = vmul.f32 1.442695, %v1405_v53 }
 0x969   : > { %2093 = vpow2.f32 %v1406_v46 }
 0x96c   : > { %v1440_v1 = vpop.permute.xlu2 %1439 }
 0x96f   : > { %v2094_v54 = vpop.eup %2093 }
 0x970   : > { %v1408_v55 = vsel %vm903_vm5, %v2094_v54, 0.0 }
 0x971   : > { %1409 = vadd.xlane.f32.xlu1 %v1408_v55 }
 0x98a   : > { %1413 = vrot.lane.b32.xlu1 %v2523_v38, %s2748_s6 }
 0x992   : > { %1441 = vrot.lane.b32.xlu1 %v2523_v38, %s2747_s27 }
 0x99a   : > { %1643 = vrot.lane.b32.xlu1 %v1333_v41, %s2743_s29  ;;  %s2751_s29 = smov 80  }
 0x9a2   : > { %1554 = vrot.lane.b32.xlu1 %v2523_v38, %s2749_s28 }
 0x9aa   : > { %1552 = vrot.lane.b32.xlu1 %v1333_v41, %s2749_s28 }
 0x9e4   : > { %v1410_v56 = vpop.xlane.xlu1 %1409 }
 0x9e5   : > { %2095 = vrcp.f32 %v1410_v56 }
 0x9eb   : > { %v2096_v57 = vpop.eup %2095 }
 0x9ec   : > { %v1412_v59 = vmul.f32 %v2096_v57, %v2094_v54 }
 0x9fc   : > { %v1414_v58 = vpop.permute.xlu1 %1413 }
 0x9fd   : > { %1434 = vmatpush.msrb.mxu2 %v1414_v58 }
 0x9fe   : > { %1992 = vmatmul.msk.f32.vlgmr.msrb.gmra.mxu2 %vm903_vm5, %v1412_v59  ;;  %v2060_v59 = vld [vmem:[%s2703_s17] ss:$0 sm:$0xff] }
 0x9ff   : > { %1547 = vmatpush.msra.mxu2 %v1366_v60 }
 0xa01   : > { %2002 = vmatpush.xpose.msk.msrb.mxu2 %vm903_vm5, %v1646_v61 }
 0xa04   : > { %v1442_v62 = vpop.permute.xlu1 %1441 }
 0xa05   : > { %1993 = vmatpush.xpose.msk.msrb.mxu1 %vm903_vm5, %v1442_v62 }
 0xa08   : > { %1994 = vmatmul.msk.f32.vlgmr.msrb.gmra.mxu1 %vm903_vm5, %v1440_v1 }
 0xa0c   : > { %v1644_v2 = vpop.permute.xlu1 %1643 }
 0xa14   : > { %v1555_v3 = vpop.permute.xlu1 %1554 }
 0xa15   : > { %1998 = vmatpush.xpose.msk.msra.mxu1 %vm903_vm5, %v1555_v3 }
 0xa1c   : > { %v1553_v4 = vpop.permute.xlu1 %1552 }
 0xa1d   : > { %1999 = vmatmul.msk.f32.vlgmr.msra.gmra.mxu1 %vm903_vm5, %v1553_v4 }
 0xa81   : > { %v1436_v5 = vpop.f32.mrf.mxu2 }
 0xa82   : > { %1997 = vmatmul.msk.f32.vlgmr.msra.gmra.mxu2 %vm903_vm5, %v1436_v5 }
 0xa85   : > { %v1464_v6 = vpop.f32.mrf.mxu1 }
 0xa86   : > { %v1467_v7 = vmul.f32 0.35355338, %v1464_v6  ;;  %v1778_v6 = vld [vmem:[%s2706_s20 + $0x18] sm:$0xff] }
 0xa88   : > { %v1468_v0 = vsel %vm2537_vm10, %v1467_v7, -1e+09  ;;  %v1776_v7 = vld [vmem:[%s2706_s20 + $0x8] sm:$0xff] }
 0xa89   : > { %v1469_v9 = vsel %vm903_vm5, %v1468_v0, -inf }
 0xa8a   : > { %1470 = vmax.xlane.f32.xlu0 %v1469_v9  ;;  %2003 = vmatmul.msk.f32.vlgmr.msrb.gmra.mxu2 %vm903_vm5, %v1644_v2 }
 0xa9a   : > { %v1577_v10 = vpop.f32.mrf.mxu1 }
 0xa9b   : > { %v1580_v11 = vmul.f32 0.35355338, %v1577_v10  ;;  %v1822_v10 = vld [vmem:[%s2708_s22 + $0x78] sm:$0xff] }
 0xa9c   : > { %1823 = vmatpush.msra.mxu2 %v1822_v10 }
 0xa9d   : > { %v1581_v12 = vsel %vm2537_vm10, %v1580_v11, -1e+09  ;;  %v1821_v11 = vld [vmem:[%s2708_s22 + $0x70] sm:$0xff] }
 0xa9e   : > { %v1582_v13 = vsel %vm903_vm5, %v1581_v12, -inf  ;;  %1824 = vmatpush.msra.mxu2 %v1821_v11 }
 0xa9f   : > { %1583 = vmax.xlane.f32.xlu2 %v1582_v13 }
 0xafd   : > { %v1471_v14 = vpop.xlane.xlu0 %1470 }
 0xafe   : > { %v1472_v15 = vsub.f32 %v1468_v0, %v1471_v14 }
 0xb00   : > { %v1473_v16 = vmul.f32 1.442695, %v1472_v15  ;;  %v1818_v15 = vld [vmem:[%s2708_s22 + $0x58] sm:$0xff] }
 0xb02   : > { %2097 = vpow2.f32 %v1473_v16 }
 0xb05   : > { %v1549_v17 = vpop.f32.mrf.mxu2 }
 0xb08   : > { %v2098_v18 = vpop.eup %2097 }
 0xb09   : > { %v1475_v19 = vsel %vm903_vm5, %v2098_v18, 0.0 }
 0xb0a   : > { %1476 = vadd.xlane.f32.xlu0 %v1475_v19  ;;  %v1816_v19 = vld [vmem:[%s2708_s22 + $0x48] sm:$0xff] }
 0xb0d   : > { %v1668_v20 = vpop.f32.mrf.mxu2 }
 0xb0e   : > { %v1671_v21 = vmul.f32 0.35355338, %v1668_v20 }
 0xb10   : > { %v1672_v22 = vsel %vm2537_vm10, %v1671_v21, -1e+09  ;;  %v1815_v21 = vld [vmem:[%s2708_s22 + $0x40] sm:$0xff] }
 0xb11   : > { %v1673_v23 = vsel %vm903_vm5, %v1672_v22, -inf }
 0xb12   : > { %v1584_v25 = vpop.xlane.xlu2 %1583  ;;  %1674 = vmax.xlane.f32.xlu1 %v1673_v23  ;;  %v1814_v23 = vld [vmem:[%s2708_s22 + $0x38] sm:$0xff] }
 0xb13   : > { %v1585_v26 = vsub.f32 %v1581_v12, %v1584_v25  ;;  %v1820_v12 = vld [vmem:[%s2708_s22 + $0x68] sm:$0xff] }
 0xb14   : > { %1825 = vmatpush.msra.mxu2 %v1820_v12 }
 0xb15   : > { %v1586_v27 = vmul.f32 1.442695, %v1585_v26 }
 0xb17   : > { %2099 = vpow2.f32 %v1586_v27  ;;  %v1813_v27 = vld [vmem:[%s2708_s22 + $0x30] sm:$0xff] }
 0xb1d   : > { %v2100_v28 = vpop.eup %2099 }
 0xb1e   : > { %v1588_v29 = vsel %vm903_vm5, %v2100_v28, 0.0 }
 0xb1f   : > { %1589 = vadd.xlane.f32.xlu2 %v1588_v29 }
 0xb2b   : > { %1480 = vrot.lane.b32.xlu1 %v2523_v38, %s2750_s25 }
 0xb37   : > { %1593 = vrot.lane.b32.xlu2 %v2523_v38, %s2751_s29 }
 0xb7d   : > { %v1477_v34 = vpop.xlane.xlu0 %1476 }
 0xb85   : > { %v1675_v30 = vpop.xlane.xlu1 %1674 }
 0xb86   : > { %v1676_v31 = vsub.f32 %v1672_v22, %v1675_v30  ;;  %v1812_v30 = vld [vmem:[%s2708_s22 + $0x28] sm:$0xff] }
 0xb88   : > { %v1677_v32 = vmul.f32 1.442695, %v1676_v31 }
 0xb8a   : > { %2101 = vpow2.f32 %v1677_v32  ;;  %v1811_v32 = vld [vmem:[%s2708_s22 + $0x20] sm:$0xff] }
 0xb8b   : > { %2103 = vrcp.f32 %v1477_v34  ;;  %v1810_v34 = vld [vmem:[%s2708_s22 + $0x18] sm:$0xff] }
 0xb90   : > { %v2102_v33 = vpop.eup %2101 }
 0xb91   : > { %v1679_v35 = vsel %vm903_vm5, %v2102_v33, 0.0  ;;  %v2104_v37 = vpop.eup %2103 }
 0xb92   : > { %1680 = vadd.xlane.f32.xlu0 %v1679_v35  ;;  %v1590_v36 = vpop.xlane.xlu2 %1589  ;;  %v1479_v39 = vmul.f32 %v2104_v37, %v2098_v18 }
 0xb93   : > { %2105 = vrcp.f32 %v1590_v36  ;;  %v2062_v36 = vld [vmem:[%s2705_s19] ss:$0 sm:$0xff] }
 0xb99   : > { %v2106_v42 = vpop.eup %2105 }
 0xb9a   : > { %v1594_v41 = vpop.permute.xlu2 %1593  ;;  %v1592_v43 = vmul.f32 %v2106_v42, %v2100_v28  ;;  %v1808_v42 = vld [vmem:[%s2708_s22 + $0x8] sm:$0xff] }
 0xb9d   : > { %v1481_v40 = vpop.permute.xlu1 %1480 }
 0xb9e   : > { %1501 = vmatpush.msrb.mxu3 %v1481_v40 }
 0xb9f   : > { %1995 = vmatmul.msk.f32.vlgmr.msrb.gmra.mxu3 %vm903_vm5, %v1479_v39 }
 0xba0   : > { %1614 = vmatpush.msra.mxu3 %v1594_v41  ;;  %v1809_v41 = vld [vmem:[%s2708_s22 + $0x10] sm:$0xff] }
 0xba2   : > { %1728 = vmatpush.msrb.mxu3 %v1369_v52 }
 0xba6   : > { %1684 = vrot.lane.b32.xlu0 %v2523_v38, %s2752_s3 }
 0xba7   : > { %2000 = vmatmul.msk.f32.vlgmr.msra.gmra.mxu3 %vm903_vm5, %v1592_v43  ;;  %v1807_v43 = vld [vmem:[%s2708_s22] sm:$0xff] }
 0xc05   : > { %v1681_v47 = vpop.xlane.xlu0 %1680 }
 0xc06   : > { %2107 = vrcp.f32 %v1681_v47 }
 0xc0c   : > { %v2108_v48 = vpop.eup %2107 }
 0xc0d   : > { %v1683_v49 = vmul.f32 %v2108_v48, %v2102_v33  ;;  %v2061_v33 = vld [vmem:[%s2704_s18] ss:$0 sm:$0xff] }
 0xc18   : > { %v1685_v50 = vpop.permute.xlu0 %1684 }
 0xc19   : > { %1705 = vmatpush.msrb.mxu1 %v1685_v50 }
 0xc1a   : > { %2004 = vmatmul.msk.f32.vlgmr.msrb.gmra.mxu1 %vm903_vm5, %v1683_v49  ;;  %v2064_v49 = vld [vmem:[#allocation4] ss:$0 sm:$0xff] }
 0xc22   : > { %v1503_v38 = vpop.f32.mrf.mxu3 }
 0xc23   : > { %1996 = vmatmul.msk.f32.vlgmr.msrb.gmra.mxu0 %vm903_vm5, %v1503_v38 }
 0xc24   : > { %1798 = vmatpush.msrb.mxu0 %v1778_v6 }
 0xc2a   : > { %v1616_v51 = vpop.f32.mrf.mxu3 }
 0xc2b   : > { %2001 = vmatmul.msk.f32.vlgmr.msra.gmra.mxu0 %vm903_vm5, %v1616_v51 }
 0xc97   : > { %v1707_v53 = vpop.f32.mrf.mxu1 }
 0xc98   : > { %2005 = vmatmul.msk.f32.vlgmr.msrb.gmra.mxu3 %vm903_vm5, %v1707_v53 }
 0xca0   : > { %v1526_v46 = vpop.f32.mrf.mxu0 }
 0xca1   : > { %v1550_v55 = vadd.f32 %v1549_v17, %v1526_v46  ;;  %v1817_v17 = vld [vmem:[%s2708_s22 + $0x50] sm:$0xff] }
 0xca8   : > { %v1639_v54 = vpop.f32.mrf.mxu0 }
 0xca9   : > { %v1642_v56 = vadd.f32 %v1639_v54, %v1550_v55 }
 0xd1b   : > { %v1730_v57 = vpop.f32.mrf.mxu3 }
 0xd1c   : > { %v1733_v58 = vadd.f32 %v1730_v57, %v1642_v56 }
 0xd1e   : > { %v1734_v60 = vadd.f32 %v1733_v58, %v2476_v63  ;;  %v1777_v63 = vld [vmem:[%s2706_s20 + $0x10] sm:$0xff] }
 0xd1f   : > { %1799 = vmatpush.msrb.mxu0 %v1777_v63 }
 0xd20   : > { %v2602_v61 = vadd.f32 %v2060_v59, %v1734_v60 }
 0xd21   : > { %1800 = vmatpush.msrb.mxu0 %v1776_v7 }
 0xd22   : > { %v1742_v62 = vsel %vm817_vm0, %v2602_v61, 0.0 }
 0xd23   : > { %1743 = vadd.xlane.f32.xlu1 %v1742_v62 }
 0xd96   : > { %v1744_v1 = vpop.xlane.xlu1 %1743 }
 0xd97   : > { %v1745_v2 = vmul.f32 %v1744_v1, %v2370_v8  ;;  %v1775_v8 = vld [vmem:[%s2706_s20] sm:$0xff] }
 0xd98   : > { %1801 = vmatpush.msrb.mxu0 %v1775_v8 }
 0xd99   : > { %v1746_v3 = vsub.f32 %v2602_v61, %v1745_v2 }
 0xd9b   : > { %v1747_v4 = vmul.f32 %v1746_v3, %v1746_v3  ;;  %v1769_v35 = vmul.f32 %v2061_v33, %v1746_v3 }
 0xd9d   : > { %v1748_v5 = vsel %vm817_vm0, %v1747_v4, 0.0 }
 0xd9e   : > { %1749 = vadd.xlane.f32.xlu2 %v1748_v5 }
 0xe11   : > { %v1750_v0 = vpop.xlane.xlu2 %1749 }
 0xe12   : > { %v1751_v9 = vmul.f32 %v1750_v0, %v2387_v24  ;;  %v1819_v24 = vld [vmem:[%s2708_s22 + $0x60] sm:$0xff] }
 0xe13   : > { %1826 = vmatpush.msra.mxu2 %v1819_v24 }
 0xe14   : > { %2109 = vrsqrt.f32 %v1751_v9  ;;  %vm1759_vm11 = vcmp.eq.f32.partialorder %v1751_v9, inf  ;;  %v1762_v26 = vand.u32 2147483648, %v1751_v9  ;;  %vm1761_vm12 = vcmp.eq.f32.partialorder %v1751_v9, 0.0 }
 0xe15   : > { %1827 = vmatpush.msra.mxu2 %v1818_v15 }
 0xe17   : > { %1828 = vmatpush.msra.mxu2 %v1817_v17 }
 0xe19   : > { %1829 = vmatpush.msra.mxu2 %v1816_v19 }
 0xe1a   : > { %v2110_v13 = vpop.eup %2109 }
 0xe1b   : > { %v1753_v14 = vmul.f32 %v2110_v13, %v1751_v9  ;;  %1830 = vmatpush.msra.mxu2 %v1815_v21 }
 0xe1d   : > { %v1754_v16 = vmul.f32 %v2110_v13, %v1753_v14  ;;  %1831 = vmatpush.msra.mxu2 %v1814_v23 }
 0xe1f   : > { %v1755_v18 = vmul.f32 0.5, %v1754_v16  ;;  %1832 = vmatpush.msra.mxu2 %v1813_v27 }
 0xe21   : > { %v1756_v20 = vsub.f32 1.5, %v1755_v18  ;;  %1833 = vmatpush.msra.mxu2 %v1812_v30 }
 0xe23   : > { %v1757_v22 = vmul.f32 %v2110_v13, %v1756_v20  ;;  %1834 = vmatpush.msra.mxu2 %v1811_v32 }
 0xe25   : > { %v1758_v25 = vmul.f32 %v1757_v22, %v1751_v9  ;;  %1835 = vmatpush.msra.mxu2 %v1810_v34 }
 0xe27   : > { %v1760_v28 = vsel %vm1759_vm11, %v1751_v9, %v1758_v25  ;;  %1836 = vmatpush.msra.mxu2 %v1809_v41 }
 0xe28   : > { %v1763_v29 = vsel %vm1761_vm12, %v1762_v26, %v1760_v28 }
 0xe29   : > { %v1764_v31 = vadd.f32 1e-06, %v1763_v29  ;;  %1837 = vmatpush.msra.mxu2 %v1808_v42 }
 0xe2b   : > { %2111 = vrcp.f32 %v1764_v31  ;;  %1838 = vmatpush.msra.mxu2 %v1807_v43 }
 0xe31   : > { %v2112_v37 = vpop.eup %2111 }
 0xe32   : > { %v1770_v39 = vmul.f32 %v2112_v37, %v1769_v35 }
 0xe34   : > { %v1774_v40 = vadd.f32 %v2062_v36, %v1770_v39 }
 0xe36   : > { %2006 = vmatmul.msk.f32.vlgmr.msrb.gmra.mxu0 %vm817_vm0, %v1774_v40 }
 0xeb3   : > { %v1803_v45 = vpop.f32.mrf.mxu0 }
 0xeb4   : > { %v1804_v47 = vadd.f32 %v2063_v44, %v1803_v45 }
 0xeb6   : > { %v1806_v48 = vmax.f32 %v1804_v47, 0.0 }
 0xeb8   : > { %1839 = vmatmul.f32.vlgmr.msra.gmra.mxu2 %v1806_v48 }
 0xf3b   : > { %v1840_v50 = vpop.f32.mrf.mxu2 }
 0xf3c   : > { %v1843_v38 = vadd.f32 %v1840_v50, %v2602_v61 }
 0xf3e   : > { %v1848_v51 = vadd.f32 %v2064_v49, %v1843_v38 }
 0xf40   : > { %1849 = vst.msk [vmem:[%s810_s1] sm:$0xff] %vm817_vm0, %v1848_v51 }
 0xf41 PF: > { %s36_s5 = sadd.s32 1, %s2187_s5  }
 0xf42   : > { %p33_p7 = scmp.ge.s32.totalorder %s36_s5, 4  }
 0xf44   :  { %35 = sbr.rel (!%p33_p7) target bundleno = 12 (0xc), region = 164 }
 0xf49   :  { %1869 = vsyncpa [#allocation3], 1 }
 0xf4a   :  { %1871 = vsyncpa [#allocation3 + $0x1], 1 }
 0xf4b   :  { %1872 = vsyncpa [#allocation5], 1 }

// kernel: rel2reg_layout_forward.11
= control target key start
LH: loop header
LB: loop body
LE: loop exit
PB: predicated region body
PF: predicated region fallthrough
CT: control target
= control target key end

     0   :  { %s2526_s0 = inlined_call_operand.vmem [shape: f32[2,8,32], index: 0, kind: input, shape index: {}]   ;;  %s2527_s1 = inlined_call_operand.vmem [shape: f32[2,8,32], index: 1, kind: input, shape index: {}]   ;;  %s2528_s2 = inlined_call_operand.vmem [shape: f32[2,8,8], index: 2, kind: input, shape index: {}]   ;;  %s2529_s3 = inlined_call_operand.vmem [shape: f32[2,1,8], index: 3, kind: input, shape index: {}]   ;;  %s2530_s4 = inlined_call_operand.vmem [shape: f32[1,32], index: 4, kind: input, shape index: {}]   ;;  %s2531_s5 = inlined_call_operand.vmem [shape: f32[1,32], index: 5, kind: input, shape index: {}]   ;;  %s2532_s6 = inlined_call_operand.vmem [shape: f32[32,96], index: 6, kind: input, shape index: {}]   ;;  %s2533_s7 = inlined_call_operand.vmem [shape: f32[1,96], index: 7, kind: input, shape index: {}]   ;;  %s2534_s8 = inlined_call_operand.vmem [shape: f32[32,32], index: 8, kind: input, shape index: {}]   ;;  %s2535_s9 = inlined_call_operand.vmem [shape: f32[1,32], index: 9, kind: input, shape index: {}]   ;;  %s2536_s10 = inlined_call_operand.vmem [shape: f32[1,32], index: 10, kind: input, shape index: {}]   ;;  %s2537_s11 = inlined_call_operand.vmem [shape: f32[1,32], index: 11, kind: input, shape index: {}]   ;;  %s2538_s12 = inlined_call_operand.vmem [shape: f32[32,32], index: 12, kind: input, shape index: {}]   ;;  %s2539_s13 = inlined_call_operand.vmem [shape: f32[1,32], index: 13, kind: input, shape index: {}]   ;;  %s2540_s14 = inlined_call_operand.vmem [shape: f32[32,64], index: 14, kind: input, shape index: {}]   ;;  %s2541_s15 = inlined_call_operand.vmem [shape: f32[1,64], index: 15, kind: input, shape index: {}]   ;;  %s2542_s16 = inlined_call_operand.vmem [shape: f32[32,32], index: 16, kind: input, shape index: {}]   ;;  %s2543_s17 = inlined_call_operand.vmem [shape: f32[1,32], index: 17, kind: input, shape index: {}]   ;;  %s2544_s18 = inlined_call_operand.vmem [shape: f32[1,32], index: 18, kind: input, shape index: {}]   ;;  %s2545_s19 = inlined_call_operand.vmem [shape: f32[1,32], index: 19, kind: input, shape index: {}]   ;;  %s2546_s20 = inlined_call_operand.vmem [shape: f32[32,128], index: 20, kind: input, shape index: {}]   ;;  %s2547_s21 = inlined_call_operand.vmem [shape: f32[1,128], index: 21, kind: input, shape index: {}]   ;;  %s2548_s22 = inlined_call_operand.vmem [shape: f32[128,32], index: 22, kind: input, shape index: {}]   ;;  %s2549_s23 = inlined_call_operand.vmem [shape: f32[1,32], index: 23, kind: input, shape index: {}]   ;;  %s2550_s24 = inlined_call_operand.vmem [shape: f32[2,8,32], index: 24, kind: output, shape index: {}]  }
   0x1   :  { %2564 = sst [smem:[#allocation2_spill]] %s2526_s0 }
   0x2   :  { %2565 = sst [smem:[#allocation3_spill]] %s2527_s1 }
   0x3   :  { %2566 = sst [smem:[#allocation4_spill]] %s2528_s2 }
   0x4   :  { %2567 = sst [smem:[#allocation5_spill]] %s2529_s3 }
   0x5   :  { %2568 = sst [smem:[#allocation6_spill]] %s2530_s4 }
   0x6   :  { %2569 = sst [smem:[#allocation7_spill]] %s2531_s5  ;;  %s2183_s5 = smov 0  }
   0x7   :  { %2570 = sst [smem:[#allocation8_spill]] %s2532_s6 }
   0x8   :  { %2571 = sst [smem:[#allocation9_spill]] %s2533_s7 }
   0x9   :  { %2572 = sst [smem:[#allocation10_spill]] %s2534_s8 }
   0xa   :  { %2573 = sst [smem:[#allocation11_spill]] %s2535_s9 }
   0xb LB: > { %s1906_s26 = sadd.s32 4294967295, %s2042_s5   ;;  %p1910_p0 = scmp.ge.s32.totalorder %s2042_s5, 1  ;;  %s2042_s5 = sphi %s2183_s5, %s34_s5  }
   0xc   : > { %p687_p1 = scmp.lt.s32.totalorder %s2042_s5, 3 }
   0xe   : > { %p688_p2 = pnand %p1910_p0, %p687_p1 }
   0xf   : > { %p762_p3 = scmp.lt.s32.totalorder (!%p688_p2), %s1906_s26, 1  ;;  %s2574_s2 = sld [smem:[#allocation2_spill]] (!%p688_p2) }
  0x10   : > { %691 = sbr.rel (%p688_p2) target bundleno = 3896 (0xf38), region = 116  ;;  %s2575_s30 = sld [smem:[#allocation8_spill]] (!%p688_p2) }
  0x11   : > { %s2577_s3 = sld [smem:[#allocation7_spill]] (!%p688_p2)  ;;  %s2559_s1 = smov (!%p688_p2), 120  }
  0x12   : > { %s2578_s4 = sld [smem:[#allocation9_spill]] (!%p688_p2)  ;;  %s2558_s28 = smov (!%p688_p2), 96  }
  0x13   : > { %s2555_s6 = smov (!%p688_p2), 88   ;;  %s2579_s7 = sld [smem:[#allocation4_spill]] (!%p688_p2) }
  0x14   : > { %s2554_s25 = smov (!%p688_p2), 80   ;;  %s2051_s8 = smov (!%p688_p2), 56  }
  0x15   : > { %s2594_s26 = smov (!%p762_p3, %s1906_s26), 1  ;;  %vm787_vm0 = vcmask 261120   ;;  %v2044_v2 = vmov 32.0   ;;  %v2045_v14 = vmov 31.0   ;;  %vm873_vm5 = vcmask 64512   ;;  %s2581_s9 = sld [smem:[#allocation11_spill]] }
  0x16   : > { %s2194_s27 = sshll.u32 %s2594_s26, 3  ;;  %1988 = vrcp.f32 %v2044_v2  ;;  %v838_v15 = vld [vmem:[%s2575_s30 + $0x18] sm:$0xff]  ;;  %v837_v16 = vld [vmem:[%s2575_s30 + $0x10] sm:$0xff]  ;;  %v836_v18 = vld [vmem:[%s2575_s30 + $0x8] sm:$0xff] }
  0x17   : > { %s765_s29 = scalar_lea.vmem %s2574_s2, %s2194_s27  ;;  %1990 = vrcp.f32 %v2045_v14  ;;  %858 = vmatpush.msra.mxu0 %v838_v15  ;;  %v835_v20 = vld [vmem:[%s2575_s30] sm:$0xff]  ;;  %s2049_s2 = smov 64  }
  0x18   : > { %v2200_v0 = vld [vmem:[%s765_s29] sm:$0xff]  ;;  %s2576_s29 = sld [smem:[#allocation6_spill]] }
  0x19   : > { %v788_v1 = vsel %vm787_vm0, %v2200_v0, 0.0  ;;  %859 = vmatpush.msra.mxu0 %v837_v16  ;;  %v1976_v40 = vld [vmem:[%s2577_s3] ss:$0 sm:$0xff]  ;;  %s773_s3 = scalar_lea.vmem %s2579_s7, %s2194_s27  ;;  %s2055_s7 = smov 48  }
  0x1a   : > { %789 = vadd.xlane.f32.xlu0 %v788_v1  ;;  %v1977_v44 = vld [vmem:[%s2578_s4] ss:$0 sm:$0xff]  ;;  %s2553_s4 = smov 72  }
  0x1b   : > { %860 = vmatpush.msra.mxu0 %v836_v18  ;;  %v2252_v51 = vld [vmem:[%s773_s3] sm:$0xff]  ;;  %s2580_s3 = sld [smem:[#allocation10_spill]] }
  0x1c   : > { %v1989_v3 = vpop.eup %1988  ;;  %vm899_vm6 = vcmp.gt.f32.partialorder %v2252_v51, 0.0 }
  0x1d   : > { %v792_v4 = vmul.f32 32.0, %v1989_v3  ;;  %vm796_vm1 = vweird.f32 %v1989_v3  ;;  %v1991_v17 = vpop.eup %1990  ;;  %861 = vmatpush.msra.mxu0 %v835_v20 }
  0x1e   : > { %v805_v19 = vmul.f32 31.0, %v1991_v17  ;;  %vm809_vm2 = vweird.f32 %v1991_v17  ;;  %v1975_v38 = vld [vmem:[%s2576_s29] ss:$0 sm:$0xff]  ;;  %s2561_s29 = smov 104  }
  0x1f   : > { %v793_v5 = vsub.f32 1.0, %v792_v4 }
  0x20   : > { %v806_v21 = vsub.f32 1.0, %v805_v19 }
  0x21   : > { %v794_v6 = vmul.f32 %v1989_v3, %v793_v5  ;;  %v866_v15 = vld [vmem:[%s2580_s3] sm:$0xff] }
  0x22   : > { %v807_v22 = vmul.f32 %v1991_v17, %v806_v21 }
  0x23   : > { %v795_v7 = vadd.f32 %v1989_v3, %v794_v6 }
  0x24   : > { %v808_v23 = vadd.f32 %v1991_v17, %v807_v22 }
  0x25   : > { %v2204_v8 = vsel %vm796_vm1, %v1989_v3, %v795_v7 }
  0x26   : > { %v2221_v24 = vsel %vm809_vm2, %v1991_v17, %v808_v23 }
  0x8d   : > { %v790_v9 = vpop.xlane.xlu0 %789 }
  0x8e   : > { %v798_v10 = vmul.f32 %v2204_v8, %v790_v9 }
  0x90   : > { %v799_v11 = vsub.f32 %v2200_v0, %v798_v10 }
  0x92   : > { %v800_v12 = vmul.f32 %v799_v11, %v799_v11  ;;  %v829_v39 = vmul.f32 %v1975_v38, %v799_v11 }
  0x94   : > { %v801_v13 = vsel %vm787_vm0, %v800_v12, 0.0 }
  0x95   : > { %802 = vadd.xlane.f32.xlu0 %v801_v13 }
 0x108   : > { %v803_v25 = vpop.xlane.xlu0 %802 }
 0x109   : > { %v811_v26 = vmul.f32 %v2221_v24, %v803_v25 }
 0x10b   : > { %1992 = vrsqrt.f32 %v811_v26  ;;  %vm819_vm3 = vcmp.eq.f32.partialorder %v811_v26, inf  ;;  %v822_v34 = vand.u32 2147483648, %v811_v26  ;;  %vm821_vm4 = vcmp.eq.f32.partialorder %v811_v26, 0.0 }
 0x111   : > { %v1993_v27 = vpop.eup %1992 }
 0x112   : > { %v813_v28 = vmul.f32 %v1993_v27, %v811_v26 }
 0x114   : > { %v814_v29 = vmul.f32 %v1993_v27, %v813_v28 }
 0x116   : > { %v815_v30 = vmul.f32 0.5, %v814_v29 }
 0x118   : > { %v816_v31 = vsub.f32 1.5, %v815_v30 }
 0x11a   : > { %v817_v32 = vmul.f32 %v1993_v27, %v816_v31 }
 0x11c   : > { %v818_v33 = vmul.f32 %v817_v32, %v811_v26 }
 0x11e   : > { %v820_v35 = vsel %vm819_vm3, %v811_v26, %v818_v33  ;;  %v867_v26 = vld [vmem:[%s2580_s3 + $0x8] sm:$0xff] }
 0x11f   : > { %v823_v36 = vsel %vm821_vm4, %v822_v34, %v820_v35 }
 0x120   : > { %v824_v37 = vadd.f32 1e-06, %v823_v36 }
 0x122   : > { %1994 = vrcp.f32 %v824_v37 }
 0x128   : > { %v1995_v41 = vpop.eup %1994 }
 0x129   : > { %v830_v42 = vmul.f32 %v1995_v41, %v829_v39 }
 0x12b   : > { %v834_v43 = vadd.f32 %v1976_v40, %v830_v42 }
 0x12d   : > { %1915 = vmatmul.msk.f32.vlgmr.msra.gmra.mxu0 %vm787_vm0, %v834_v43 }
 0x1aa   : > { %v863_v45 = vpop.f32.mrf.mxu0 }
 0x1ab   : > { %v2234_v46 = vadd.f32 %v1977_v44, %v863_v45 }
 0x1ad   : > { %938 = vrot.lane.b32.xlu2 %v2234_v46, %s2559_s1  ;;  %871 = vrot.lane.b32.xlu1 %v2234_v46, %s2558_s28  ;;  %s2584_s1 = sld [smem:[#allocation5_spill]] }
 0x1b5   : > { %940 = vrot.lane.b32.xlu1 %v2234_v46, %s2555_s6 }
 0x1bd   : > { %912 = vrot.lane.b32.xlu1 %v2234_v46, %s2049_s2  ;;  %s2556_s2 = smov 112  }
 0x207   : > { %v939_v49 = vpop.permute.xlu2 %938 }
 0x21f   : > { %v872_v47 = vpop.permute.xlu1 %871 }
 0x220   : > { %1916 = vmatpush.xpose.msk.msra.mxu1 %vm873_vm5, %v872_v47 }
 0x223   : > { %1917 = vmatmul.msk.f32.vlgmr.msra.gmra.mxu1 %vm873_vm5, %v2234_v46 }
 0x227   : > { %v941_v48 = vpop.permute.xlu1 %940 }
 0x228   : > { %1919 = vmatpush.xpose.msk.msra.mxu3 %vm873_vm5, %v941_v48  ;;  %v868_v48 = vld [vmem:[%s2580_s3 + $0x10] sm:$0xff] }
 0x22b   : > { %1920 = vmatmul.msk.f32.vlgmr.msra.gmra.mxu3 %vm873_vm5, %v939_v49 }
 0x22f   : > { %v913_v50 = vpop.permute.xlu1 %912 }
 0x230   : > { %933 = vmatpush.msrb.mxu1 %v913_v50 }
 0x232   : > { %1023 = vmatpush.msra.mxu1 %v867_v26 }
 0x2a0   : > { %v895_v52 = vpop.f32.mrf.mxu1 }
 0x2a1   : > { %v898_v53 = vmul.f32 0.35355338, %v895_v52 }
 0x2a3   : > { %v900_v54 = vsel %vm899_vm6, %v898_v53, -1e+09 }
 0x2a4   : > { %v901_v55 = vsel %vm873_vm5, %v900_v54, -inf }
 0x2a5   : > { %902 = vmax.xlane.f32.xlu2 %v901_v55 }
 0x2ae   : > { %v963_v60 = vpop.f32.mrf.mxu3 }
 0x2af   : > { %v966_v63 = vmul.f32 0.35355338, %v963_v60 }
 0x2b1   : > { %v967_v1 = vsel %vm899_vm6, %v966_v63, -1e+09 }
 0x2b2   : > { %v968_v2 = vsel %vm873_vm5, %v967_v1, -inf }
 0x2bd   : > { %1053 = vrot.lane.b32.xlu2 %v2234_v46, %s2554_s25 }
 0x318   : > { %v903_v56 = vpop.xlane.xlu2 %902 }
 0x319   : > { %v904_v57 = vsub.f32 %v900_v54, %v903_v56 }
 0x31b   : > { %v905_v58 = vmul.f32 1.442695, %v904_v57 }
 0x31d   : > { %1996 = vpow2.f32 %v905_v58 }
 0x320   : > { %v1054_v59 = vpop.permute.xlu2 %1053 }
 0x321   : > { %1924 = vmatpush.xpose.msk.msrb.mxu0 %vm873_vm5, %v1054_v59 }
 0x323   : > { %v1997_v61 = vpop.eup %1996 }
 0x324   : > { %v907_v62 = vsel %vm873_vm5, %v1997_v61, 0.0 }
 0x325   : > { %908 = vadd.xlane.f32.xlu0 %v907_v62 }
 0x32d   : > { %969 = vmax.xlane.f32.xlu0 %v968_v2 }
 0x341   : > { %979 = vrot.lane.b32.xlu0 %v2234_v46, %s2051_s8  ;;  %s2056_s8 = smov 40  }
 0x349   : > { %1144 = vrot.lane.b32.xlu0 %v2234_v46, %s2553_s4  ;;  %s2590_s4 = smov 88  }
 0x351   : > { %1051 = vrot.lane.b32.xlu0 %v2234_v46, %s2556_s2  ;;  %s2587_s2 = smov 120  }
 0x398   : > { %v909_v3 = vpop.xlane.xlu0 %908 }
 0x399   : > { %1998 = vrcp.f32 %v909_v3 }
 0x39f   : > { %v1999_v4 = vpop.eup %1998 }
 0x3a0   : > { %v970_v5 = vpop.xlane.xlu0 %969  ;;  %v911_v6 = vmul.f32 %v1999_v4, %v1997_v61  ;;  %v1978_v61 = vld [vmem:[%s2581_s9] ss:$0 sm:$0xff] }
 0x3a1   : > { %v971_v7 = vsub.f32 %v967_v1, %v970_v5 }
 0x3a2   : > { %1918 = vmatmul.msk.f32.vlgmr.msrb.gmra.mxu1 %vm873_vm5, %v911_v6 }
 0x3a3   : > { %v972_v9 = vmul.f32 1.442695, %v971_v7  ;;  %1136 = vmatpush.msrb.mxu1 %v868_v48  ;;  %v1308_v7 = vld [vmem:[%s2540_s14 + $0x18] sm:$0xff] }
 0x3a5   : > { %2000 = vpow2.f32 %v972_v9  ;;  %v1277_v9 = vld [vmem:[%s2538_s12 + $0x18] sm:$0xff] }
 0x3ab   : > { %v2001_v10 = vpop.eup %2000 }
 0x3ac   : > { %v974_v11 = vsel %vm873_vm5, %v2001_v10, 0.0 }
 0x3ad   : > { %975 = vadd.xlane.f32.xlu1 %v974_v11  ;;  %v1276_v11 = vld [vmem:[%s2538_s12 + $0x10] sm:$0xff] }
 0x3b3   : > { %v980_v12 = vpop.permute.xlu0 %979 }
 0x3b4   : > { %1000 = vmatpush.msrb.mxu3 %v980_v12  ;;  %v1275_v12 = vld [vmem:[%s2538_s12 + $0x8] sm:$0xff] }
 0x3b6   : > { %1046 = vmatpush.msra.mxu3 %v866_v15  ;;  %v1274_v15 = vld [vmem:[%s2538_s12] sm:$0xff] }
 0x3bb   : > { %v1145_v13 = vpop.permute.xlu0 %1144 }
 0x3c3   : > { %v1052_v14 = vpop.permute.xlu0 %1051 }
 0x3c4   : > { %1925 = vmatmul.msk.f32.vlgmr.msrb.gmra.mxu0 %vm873_vm5, %v1052_v14 }
 0x3c6   : > { %1142 = vrot.lane.b32.xlu1 %v2234_v46, %s2561_s29  ;;  %s2589_s29 = smov 112  }
 0x41f   : > { %v935_v19 = vpop.f32.mrf.mxu1 }
 0x420   : > { %v976_v16 = vpop.xlane.xlu1 %975 }
 0x421   : > { %2002 = vrcp.f32 %v976_v16 }
 0x427   : > { %v2003_v17 = vpop.eup %2002 }
 0x428   : > { %v978_v18 = vmul.f32 %v2003_v17, %v2001_v10  ;;  %v1306_v10 = vld [vmem:[%s2540_s14 + $0x8] sm:$0xff] }
 0x42a   : > { %1921 = vmatmul.msk.f32.vlgmr.msrb.gmra.mxu3 %vm873_vm5, %v978_v18 }
 0x42b   : > { %1928 = vmatpush.xpose.msk.msrb.mxu3 %vm873_vm5, %v1145_v13  ;;  %v1305_v13 = vld [vmem:[%s2540_s14] sm:$0xff] }
 0x432   : > { %1923 = vmatmul.msk.f32.vlgmr.msra.gmra.mxu3 %vm873_vm5, %v935_v19 }
 0x433   : > { %1328 = vmatpush.msra.mxu3 %v1308_v7 }
 0x438   : > { %v1143_v20 = vpop.permute.xlu1 %1142 }
 0x43a   : > { %1929 = vmatmul.msk.f32.vlgmr.msrb.gmra.mxu3 %vm873_vm5, %v1143_v20 }
 0x441   : > { %v1076_v21 = vpop.f32.mrf.mxu0 }
 0x442   : > { %v1079_v22 = vmul.f32 0.35355338, %v1076_v21 }
 0x444   : > { %v1080_v23 = vsel %vm899_vm6, %v1079_v22, -1e+09 }
 0x445   : > { %v1081_v25 = vsel %vm873_vm5, %v1080_v23, -inf }
 0x446   : > { %1082 = vmax.xlane.f32.xlu0 %v1081_v25 }
 0x4ad   : > { %v1002_v27 = vpop.f32.mrf.mxu3 }
 0x4ae   : > { %1922 = vmatmul.msk.f32.vlgmr.msra.gmra.mxu1 %vm873_vm5, %v1002_v27 }
 0x4af   : > { %1297 = vmatpush.msra.mxu1 %v1277_v9 }
 0x4b1   : > { %1298 = vmatpush.msra.mxu1 %v1276_v11 }
 0x4b3   : > { %1299 = vmatpush.msra.mxu1 %v1275_v12 }
 0x4b5   : > { %v1048_v28 = vpop.f32.mrf.mxu3  ;;  %1300 = vmatpush.msra.mxu1 %v1274_v15 }
 0x4b9   : > { %v1083_v29 = vpop.xlane.xlu0 %1082 }
 0x4ba   : > { %v1084_v30 = vsub.f32 %v1080_v23, %v1083_v29 }
 0x4bc   : > { %v1085_v31 = vmul.f32 1.442695, %v1084_v30  ;;  %v1979_v30 = vld [vmem:[%s2536_s10] ss:$0 sm:$0xff] }
 0x4bd   : > { %v1167_v32 = vpop.f32.mrf.mxu3 }
 0x4be   : > { %2004 = vpow2.f32 %v1085_v31  ;;  %v1170_v33 = vmul.f32 0.35355338, %v1167_v32  ;;  %v1980_v32 = vld [vmem:[%s2537_s11] ss:$0 sm:$0xff] }
 0x4c0   : > { %v1171_v34 = vsel %vm899_vm6, %v1170_v33, -1e+09 }
 0x4c1   : > { %v1172_v35 = vsel %vm873_vm5, %v1171_v34, -inf }
 0x4c2   : > { %1173 = vmax.xlane.f32.xlu2 %v1172_v35 }
 0x4c4   : > { %v2005_v36 = vpop.eup %2004 }
 0x4c5   : > { %v1087_v37 = vsel %vm873_vm5, %v2005_v36, 0.0 }
 0x4c6   : > { %1088 = vadd.xlane.f32.xlu1 %v1087_v37 }
 0x4da   : > { %1092 = vrot.lane.b32.xlu2 %v2234_v46, %s2055_s7  ;;  %s2583_s7 = smov 104  }
 0x52b   : > { %v1025_v55 = vpop.f32.mrf.mxu1 }
 0x52c   : > { %v1049_v57 = vadd.f32 %v1048_v28, %v1025_v55 }
 0x535   : > { %v1174_v38 = vpop.xlane.xlu2 %1173 }
 0x536   : > { %v1175_v39 = vsub.f32 %v1171_v34, %v1174_v38 }
 0x538   : > { %v1176_v40 = vmul.f32 1.442695, %v1175_v39  ;;  %v1982_v39 = vld [vmem:[%s2539_s13] ss:$0 sm:$0xff] }
 0x539   : > { %v1089_v41 = vpop.xlane.xlu1 %1088 }
 0x53a   : > { %2006 = vpow2.f32 %v1176_v40 }
 0x53b   : > { %2008 = vrcp.f32 %v1089_v41 }
 0x53d   : > { %v1093_v42 = vpop.permute.xlu2 %1092 }
 0x53e   : > { %1113 = vmatpush.msra.mxu0 %v1093_v42 }
 0x540   : > { %v2007_v43 = vpop.eup %2006 }
 0x541   : > { %v2009_v44 = vpop.eup %2008  ;;  %v1178_v45 = vsel %vm873_vm5, %v2007_v43, 0.0 }
 0x542   : > { %v1091_v47 = vmul.f32 %v2009_v44, %v2005_v36  ;;  %1179 = vadd.xlane.f32.xlu0 %v1178_v45  ;;  %v1981_v36 = vld [vmem:[%s2541_s15] ss:$0 sm:$0xff] }
 0x544   : > { %1926 = vmatmul.msk.f32.vlgmr.msra.gmra.mxu0 %vm873_vm5, %v1091_v47 }
 0x556   : > { %1183 = vrot.lane.b32.xlu0 %v2234_v46, %s2056_s8  ;;  %v869_v46 = vld [vmem:[%s2580_s3 + $0x18] sm:$0xff]  ;;  %s2582_s3 = sld [smem:[#allocation3_spill]]  ;;  %s2592_s8 = smov 72  }
 0x557   : > { %1227 = vmatpush.msra.mxu2 %v869_v46 }
 0x55c   : > { %s769_s9 = scalar_lea.vmem %s2582_s3, %s2194_s27 }
 0x55d   : > { %v782_v14 = vld [vmem:[%s769_s9] sm:$0xff]  ;;  %s776_s9 = scalar_lea.vmem %s2584_s1, %s2594_s26  ;;  %s2588_s26 = smov 96  }
 0x55e   : > { %v784_v42 = vld [vmem:[%s776_s9] sm:$0x1] }
 0x55f   : > { %vm1367_vm9 = vcmp.gt.f32.partialorder %v784_v42, 0.0 }
 0x5b5   : > { %v1180_v49 = vpop.xlane.xlu0 %1179 }
 0x5b6   : > { %2010 = vrcp.f32 %v1180_v49 }
 0x5bc   : > { %v2011_v51 = vpop.eup %2010 }
 0x5bd   : > { %v1182_v52 = vmul.f32 %v2011_v51, %v2007_v43  ;;  %v2057_v43 = vmov 0  }
 0x5be   : > { %v1368_v44 = vsel %vm1367_vm9, 1, %v2057_v43 }
 0x5bf   : > { %v1369_v45 = vperm.slane %v1368_v44, 0  ;;  %v1337_v44 = vld [vmem:[%s2542_s16 + $0x8] sm:$0xff] }
 0x5c1   : > { %v1115_v50 = vpop.f32.mrf.mxu0  ;;  %vm2371_vm10 = vcmp.eq.s32.totalorder %v1369_v45, 1  ;;  %v1338_v45 = vld [vmem:[%s2542_s16 + $0x10] sm:$0xff] }
 0x5c2   : > { %1927 = vmatmul.msk.f32.vlgmr.msrb.gmra.mxu1 %vm873_vm5, %v1115_v50 }
 0x5c8   : > { %v1184_v53 = vpop.permute.xlu0 %1183 }
 0x5c9   : > { %1204 = vmatpush.msrb.mxu0 %v1184_v53 }
 0x5ca   : > { %1930 = vmatmul.msk.f32.vlgmr.msrb.gmra.mxu0 %vm873_vm5, %v1182_v52 }
 0x63f   : > { %v1138_v56 = vpop.f32.mrf.mxu1 }
 0x640   : > { %v1141_v58 = vadd.f32 %v1138_v56, %v1049_v57 }
 0x647   : > { %v1206_v54 = vpop.f32.mrf.mxu0 }
 0x648   : > { %1931 = vmatmul.msk.f32.vlgmr.msra.gmra.mxu2 %vm873_vm5, %v1206_v54 }
 0x6cb   : > { %v1229_v59 = vpop.f32.mrf.mxu2 }
 0x6cc   : > { %v1232_v60 = vadd.f32 %v1229_v59, %v1141_v58 }
 0x6ce   : > { %v1233_v62 = vadd.f32 %v1232_v60, %v2200_v0  ;;  %v1307_v0 = vld [vmem:[%s2540_s14 + $0x10] sm:$0xff]  ;;  %v1336_v60 = vld [vmem:[%s2542_s16] sm:$0xff] }
 0x6cf   : > { %1329 = vmatpush.msra.mxu3 %v1307_v0 }
 0x6d0   : > { %v2310_v63 = vadd.f32 %v1978_v61, %v1233_v62 }
 0x6d1   : > { %1330 = vmatpush.msra.mxu3 %v1306_v10 }
 0x6d2   : > { %v1241_v1 = vsel %vm787_vm0, %v2310_v63, 0.0 }
 0x6d3   : > { %1242 = vadd.xlane.f32.xlu1 %v1241_v1  ;;  %1331 = vmatpush.msra.mxu3 %v1305_v13 }
 0x6d4   : > { %1933 = vmatmul.msk.f32.vlgmr.msra.gmra.mxu3 %vm787_vm0, %v782_v14 }
 0x746   : > { %v1243_v2 = vpop.xlane.xlu1 %1242 }
 0x747   : > { %v1244_v3 = vmul.f32 %v1243_v2, %v2204_v8 }
 0x749   : > { %v1245_v4 = vsub.f32 %v2310_v63, %v1244_v3 }
 0x74b   : > { %v1246_v5 = vmul.f32 %v1245_v4, %v1245_v4  ;;  %v1268_v31 = vmul.f32 %v1979_v30, %v1245_v4 }
 0x74d   : > { %v1247_v6 = vsel %vm787_vm0, %v1246_v5, 0.0 }
 0x74e   : > { %1248 = vadd.xlane.f32.xlu0 %v1247_v6 }
 0x757   : > { %v1333_v37 = vpop.f32.mrf.mxu3 }
 0x758   : > { %v2357_v38 = vadd.f32 %v1981_v36, %v1333_v37 }
 0x75a   : > { %1934 = vmatpush.xpose.msk.msra.mxu0 %vm873_vm5, %v2357_v38 }
 0x75e   : > { %1494 = vmatpush.msrb.mxu0 %v1337_v44  ;;  %v1986_v44 = vld [vmem:[%s2547_s21] ss:$0 sm:$0xff] }
 0x762   : > { %1615 = vrot.lane.b32.xlu0 %v2357_v38, %s2583_s7 }
 0x7c1   : > { %v1249_v16 = vpop.xlane.xlu0 %1248 }
 0x7c2   : > { %v1250_v17 = vmul.f32 %v1249_v16, %v2221_v24 }
 0x7c4   : > { %2012 = vrsqrt.f32 %v1250_v17  ;;  %vm1258_vm7 = vcmp.eq.f32.partialorder %v1250_v17, inf  ;;  %v1261_v26 = vand.u32 2147483648, %v1250_v17  ;;  %vm1260_vm8 = vcmp.eq.f32.partialorder %v1250_v17, 0.0 }
 0x7ca   : > { %v2013_v18 = vpop.eup %2012 }
 0x7cb   : > { %v1252_v19 = vmul.f32 %v2013_v18, %v1250_v17 }
 0x7cd   : > { %v1253_v20 = vmul.f32 %v2013_v18, %v1252_v19 }
 0x7cf   : > { %v1254_v21 = vmul.f32 0.5, %v1253_v20 }
 0x7d1   : > { %v1255_v22 = vsub.f32 1.5, %v1254_v21 }
 0x7d3   : > { %v1256_v23 = vmul.f32 %v2013_v18, %v1255_v22 }
 0x7d4   : > { %v1616_v61 = vpop.permute.xlu0 %1615 }
 0x7d5   : > { %v1257_v25 = vmul.f32 %v1256_v23, %v1250_v17 }
 0x7d7   : > { %v1259_v27 = vsel %vm1258_vm7, %v1250_v17, %v1257_v25 }
 0x7d8   : > { %v1262_v28 = vsel %vm1260_vm8, %v1261_v26, %v1259_v27 }
 0x7d9   : > { %v1263_v29 = vadd.f32 1e-06, %v1262_v28 }
 0x7db   : > { %2014 = vrcp.f32 %v1263_v29 }
 0x7e1   : > { %v2015_v33 = vpop.eup %2014 }
 0x7e2   : > { %v1269_v34 = vmul.f32 %v2015_v33, %v1268_v31 }
 0x7e4   : > { %v1273_v35 = vadd.f32 %v1980_v32, %v1269_v34 }
 0x7e6   : > { %1932 = vmatmul.msk.f32.vlgmr.msra.gmra.mxu1 %vm787_vm0, %v1273_v35 }
 0x863   : > { %v1302_v40 = vpop.f32.mrf.mxu1 }
 0x864   : > { %v1303_v41 = vadd.f32 %v1982_v39, %v1302_v40 }
 0x866   : > { %1935 = vmatmul.msk.f32.vlgmr.msra.gmra.mxu0 %vm873_vm5, %v1303_v41 }
 0x867   : > { %1607 = vmatpush.msra.mxu0 %v1338_v45 }
 0x8e3   : > { %v1363_v47 = vpop.f32.mrf.mxu0 }
 0x8e4   : > { %v1366_v49 = vmul.f32 0.35355338, %v1363_v47 }
 0x8e6   : > { %v1371_v50 = vsel %vm2371_vm10, %v1366_v49, -1e+09 }
 0x8e7   : > { %v1372_v51 = vsel %vm873_vm5, %v1371_v50, -inf }
 0x8e8   : > { %1373 = vmax.xlane.f32.xlu2 %v1372_v51 }
 0x900   : > { %1409 = vrot.lane.b32.xlu2 %v1303_v41, %s2587_s2 }
 0x95b   : > { %v1374_v52 = vpop.xlane.xlu2 %1373 }
 0x95c   : > { %v1375_v53 = vsub.f32 %v1371_v50, %v1374_v52  ;;  %v1339_v52 = vld [vmem:[%s2542_s16 + $0x18] sm:$0xff] }
 0x95e   : > { %v1376_v46 = vmul.f32 1.442695, %v1375_v53 }
 0x960   : > { %2016 = vpow2.f32 %v1376_v46 }
 0x963   : > { %v1410_v1 = vpop.permute.xlu2 %1409 }
 0x966   : > { %v2017_v54 = vpop.eup %2016 }
 0x967   : > { %v1378_v55 = vsel %vm873_vm5, %v2017_v54, 0.0 }
 0x968   : > { %1379 = vadd.xlane.f32.xlu1 %v1378_v55 }
 0x981   : > { %1383 = vrot.lane.b32.xlu1 %v2357_v38, %s2588_s26  ;;  %s780_s26 = scalar_lea.vmem %s2550_s24, %s2194_s27 }
 0x989   : > { %1411 = vrot.lane.b32.xlu1 %v2357_v38, %s2587_s2 }
 0x991   : > { %1613 = vrot.lane.b32.xlu1 %v1303_v41, %s2583_s7  ;;  %s2591_s7 = smov 80  }
 0x999   : > { %1524 = vrot.lane.b32.xlu1 %v2357_v38, %s2589_s29 }
 0x9a1   : > { %1522 = vrot.lane.b32.xlu1 %v1303_v41, %s2589_s29 }
 0x9db   : > { %v1380_v56 = vpop.xlane.xlu1 %1379 }
 0x9dc   : > { %2018 = vrcp.f32 %v1380_v56 }
 0x9e2   : > { %v2019_v57 = vpop.eup %2018 }
 0x9e3   : > { %v1382_v59 = vmul.f32 %v2019_v57, %v2017_v54 }
 0x9f3   : > { %v1384_v58 = vpop.permute.xlu1 %1383 }
 0x9f4   : > { %1404 = vmatpush.msrb.mxu2 %v1384_v58 }
 0x9f5   : > { %1936 = vmatmul.msk.f32.vlgmr.msrb.gmra.mxu2 %vm873_vm5, %v1382_v59  ;;  %v1983_v59 = vld [vmem:[%s2543_s17] ss:$0 sm:$0xff] }
 0x9f6   : > { %1517 = vmatpush.msra.mxu2 %v1336_v60 }
 0x9f8   : > { %1946 = vmatpush.xpose.msk.msrb.mxu2 %vm873_vm5, %v1616_v61 }
 0x9fb   : > { %v1412_v62 = vpop.permute.xlu1 %1411 }
 0x9fc   : > { %1937 = vmatpush.xpose.msk.msrb.mxu1 %vm873_vm5, %v1412_v62 }
 0x9ff   : > { %1938 = vmatmul.msk.f32.vlgmr.msrb.gmra.mxu1 %vm873_vm5, %v1410_v1 }
 0xa03   : > { %v1614_v2 = vpop.permute.xlu1 %1613 }
 0xa0b   : > { %v1525_v3 = vpop.permute.xlu1 %1524 }
 0xa0c   : > { %1942 = vmatpush.xpose.msk.msra.mxu1 %vm873_vm5, %v1525_v3 }
 0xa13   : > { %v1523_v4 = vpop.permute.xlu1 %1522 }
 0xa14   : > { %1943 = vmatmul.msk.f32.vlgmr.msra.gmra.mxu1 %vm873_vm5, %v1523_v4 }
 0xa78   : > { %v1406_v5 = vpop.f32.mrf.mxu2 }
 0xa79   : > { %1941 = vmatmul.msk.f32.vlgmr.msra.gmra.mxu2 %vm873_vm5, %v1406_v5 }
 0xa7c   : > { %v1434_v6 = vpop.f32.mrf.mxu1 }
 0xa7d   : > { %v1437_v7 = vmul.f32 0.35355338, %v1434_v6  ;;  %v1748_v6 = vld [vmem:[%s2546_s20 + $0x18] sm:$0xff] }
 0xa7f   : > { %v1438_v0 = vsel %vm2371_vm10, %v1437_v7, -1e+09  ;;  %v1746_v7 = vld [vmem:[%s2546_s20 + $0x8] sm:$0xff] }
 0xa80   : > { %v1439_v9 = vsel %vm873_vm5, %v1438_v0, -inf }
 0xa81   : > { %1440 = vmax.xlane.f32.xlu0 %v1439_v9  ;;  %1947 = vmatmul.msk.f32.vlgmr.msrb.gmra.mxu2 %vm873_vm5, %v1614_v2 }
 0xa91   : > { %v1547_v10 = vpop.f32.mrf.mxu1 }
 0xa92   : > { %v1550_v11 = vmul.f32 0.35355338, %v1547_v10  ;;  %v1792_v10 = vld [vmem:[%s2548_s22 + $0x78] sm:$0xff] }
 0xa93   : > { %1793 = vmatpush.msra.mxu2 %v1792_v10 }
 0xa94   : > { %v1551_v12 = vsel %vm2371_vm10, %v1550_v11, -1e+09  ;;  %v1791_v11 = vld [vmem:[%s2548_s22 + $0x70] sm:$0xff] }
 0xa95   : > { %v1552_v13 = vsel %vm873_vm5, %v1551_v12, -inf  ;;  %1794 = vmatpush.msra.mxu2 %v1791_v11 }
 0xa96   : > { %1553 = vmax.xlane.f32.xlu2 %v1552_v13 }
 0xaf4   : > { %v1441_v14 = vpop.xlane.xlu0 %1440 }
 0xaf5   : > { %v1442_v15 = vsub.f32 %v1438_v0, %v1441_v14 }
 0xaf7   : > { %v1443_v16 = vmul.f32 1.442695, %v1442_v15  ;;  %v1788_v15 = vld [vmem:[%s2548_s22 + $0x58] sm:$0xff] }
 0xaf9   : > { %2020 = vpow2.f32 %v1443_v16 }
 0xafc   : > { %v1519_v17 = vpop.f32.mrf.mxu2 }
 0xaff   : > { %v2021_v18 = vpop.eup %2020 }
 0xb00   : > { %v1445_v19 = vsel %vm873_vm5, %v2021_v18, 0.0 }
 0xb01   : > { %1446 = vadd.xlane.f32.xlu0 %v1445_v19  ;;  %v1786_v19 = vld [vmem:[%s2548_s22 + $0x48] sm:$0xff] }
 0xb04   : > { %v1638_v20 = vpop.f32.mrf.mxu2 }
 0xb05   : > { %v1641_v21 = vmul.f32 0.35355338, %v1638_v20 }
 0xb07   : > { %v1642_v22 = vsel %vm2371_vm10, %v1641_v21, -1e+09  ;;  %v1785_v21 = vld [vmem:[%s2548_s22 + $0x40] sm:$0xff] }
 0xb08   : > { %v1643_v23 = vsel %vm873_vm5, %v1642_v22, -inf }
 0xb09   : > { %v1554_v25 = vpop.xlane.xlu2 %1553  ;;  %1644 = vmax.xlane.f32.xlu1 %v1643_v23  ;;  %v1784_v23 = vld [vmem:[%s2548_s22 + $0x38] sm:$0xff] }
 0xb0a   : > { %v1555_v26 = vsub.f32 %v1551_v12, %v1554_v25  ;;  %v1790_v12 = vld [vmem:[%s2548_s22 + $0x68] sm:$0xff] }
 0xb0b   : > { %1795 = vmatpush.msra.mxu2 %v1790_v12 }
 0xb0c   : > { %v1556_v27 = vmul.f32 1.442695, %v1555_v26 }
 0xb0e   : > { %2022 = vpow2.f32 %v1556_v27  ;;  %v1783_v27 = vld [vmem:[%s2548_s22 + $0x30] sm:$0xff] }
 0xb14   : > { %v2023_v28 = vpop.eup %2022 }
 0xb15   : > { %v1558_v29 = vsel %vm873_vm5, %v2023_v28, 0.0 }
 0xb16   : > { %1559 = vadd.xlane.f32.xlu2 %v1558_v29 }
 0xb22   : > { %1450 = vrot.lane.b32.xlu1 %v2357_v38, %s2590_s4 }
 0xb2e   : > { %1563 = vrot.lane.b32.xlu2 %v2357_v38, %s2591_s7 }
 0xb74   : > { %v1447_v34 = vpop.xlane.xlu0 %1446 }
 0xb7c   : > { %v1645_v30 = vpop.xlane.xlu1 %1644 }
 0xb7d   : > { %v1646_v31 = vsub.f32 %v1642_v22, %v1645_v30  ;;  %v1782_v30 = vld [vmem:[%s2548_s22 + $0x28] sm:$0xff] }
 0xb7f   : > { %v1647_v32 = vmul.f32 1.442695, %v1646_v31 }
 0xb81   : > { %2024 = vpow2.f32 %v1647_v32  ;;  %v1781_v32 = vld [vmem:[%s2548_s22 + $0x20] sm:$0xff] }
 0xb82   : > { %2026 = vrcp.f32 %v1447_v34  ;;  %v1780_v34 = vld [vmem:[%s2548_s22 + $0x18] sm:$0xff] }
 0xb87   : > { %v2025_v33 = vpop.eup %2024 }
 0xb88   : > { %v1649_v35 = vsel %vm873_vm5, %v2025_v33, 0.0  ;;  %v2027_v37 = vpop.eup %2026 }
 0xb89   : > { %1650 = vadd.xlane.f32.xlu0 %v1649_v35  ;;  %v1560_v36 = vpop.xlane.xlu2 %1559  ;;  %v1449_v39 = vmul.f32 %v2027_v37, %v2021_v18 }
 0xb8a   : > { %2028 = vrcp.f32 %v1560_v36  ;;  %v1985_v36 = vld [vmem:[%s2545_s19] ss:$0 sm:$0xff] }
 0xb90   : > { %v2029_v42 = vpop.eup %2028 }
 0xb91   : > { %v1564_v41 = vpop.permute.xlu2 %1563  ;;  %v1562_v43 = vmul.f32 %v2029_v42, %v2023_v28  ;;  %v1778_v42 = vld [vmem:[%s2548_s22 + $0x8] sm:$0xff] }
 0xb94   : > { %v1451_v40 = vpop.permute.xlu1 %1450 }
 0xb95   : > { %1471 = vmatpush.msrb.mxu3 %v1451_v40 }
 0xb96   : > { %1939 = vmatmul.msk.f32.vlgmr.msrb.gmra.mxu3 %vm873_vm5, %v1449_v39 }
 0xb97   : > { %1584 = vmatpush.msra.mxu3 %v1564_v41  ;;  %v1779_v41 = vld [vmem:[%s2548_s22 + $0x10] sm:$0xff] }
 0xb99   : > { %1698 = vmatpush.msrb.mxu3 %v1339_v52 }
 0xb9d   : > { %1654 = vrot.lane.b32.xlu0 %v2357_v38, %s2592_s8 }
 0xb9e   : > { %1944 = vmatmul.msk.f32.vlgmr.msra.gmra.mxu3 %vm873_vm5, %v1562_v43  ;;  %v1777_v43 = vld [vmem:[%s2548_s22] sm:$0xff] }
 0xbfc   : > { %v1651_v47 = vpop.xlane.xlu0 %1650 }
 0xbfd   : > { %2030 = vrcp.f32 %v1651_v47 }
 0xc03   : > { %v2031_v48 = vpop.eup %2030 }
 0xc04   : > { %v1653_v49 = vmul.f32 %v2031_v48, %v2025_v33  ;;  %v1984_v33 = vld [vmem:[%s2544_s18] ss:$0 sm:$0xff] }
 0xc0f   : > { %v1655_v50 = vpop.permute.xlu0 %1654 }
 0xc10   : > { %1675 = vmatpush.msrb.mxu1 %v1655_v50 }
 0xc11   : > { %1948 = vmatmul.msk.f32.vlgmr.msrb.gmra.mxu1 %vm873_vm5, %v1653_v49  ;;  %v1987_v49 = vld [vmem:[%s2549_s23] ss:$0 sm:$0xff] }
 0xc19   : > { %v1473_v38 = vpop.f32.mrf.mxu3 }
 0xc1a   : > { %1940 = vmatmul.msk.f32.vlgmr.msrb.gmra.mxu0 %vm873_vm5, %v1473_v38 }
 0xc1b   : > { %1768 = vmatpush.msrb.mxu0 %v1748_v6 }
 0xc21   : > { %v1586_v51 = vpop.f32.mrf.mxu3 }
 0xc22   : > { %1945 = vmatmul.msk.f32.vlgmr.msra.gmra.mxu0 %vm873_vm5, %v1586_v51 }
 0xc8e   : > { %v1677_v53 = vpop.f32.mrf.mxu1 }
 0xc8f   : > { %1949 = vmatmul.msk.f32.vlgmr.msrb.gmra.mxu3 %vm873_vm5, %v1677_v53 }
 0xc97   : > { %v1496_v46 = vpop.f32.mrf.mxu0 }
 0xc98   : > { %v1520_v55 = vadd.f32 %v1519_v17, %v1496_v46  ;;  %v1787_v17 = vld [vmem:[%s2548_s22 + $0x50] sm:$0xff] }
 0xc9f   : > { %v1609_v54 = vpop.f32.mrf.mxu0 }
 0xca0   : > { %v1612_v56 = vadd.f32 %v1609_v54, %v1520_v55 }
 0xd12   : > { %v1700_v57 = vpop.f32.mrf.mxu3 }
 0xd13   : > { %v1703_v58 = vadd.f32 %v1700_v57, %v1612_v56 }
 0xd15   : > { %v1704_v60 = vadd.f32 %v1703_v58, %v2310_v63  ;;  %v1747_v63 = vld [vmem:[%s2546_s20 + $0x10] sm:$0xff] }
 0xd16   : > { %1769 = vmatpush.msrb.mxu0 %v1747_v63 }
 0xd17   : > { %v2436_v61 = vadd.f32 %v1983_v59, %v1704_v60 }
 0xd18   : > { %1770 = vmatpush.msrb.mxu0 %v1746_v7 }
 0xd19   : > { %v1712_v62 = vsel %vm787_vm0, %v2436_v61, 0.0 }
 0xd1a   : > { %1713 = vadd.xlane.f32.xlu1 %v1712_v62 }
 0xd8d   : > { %v1714_v1 = vpop.xlane.xlu1 %1713 }
 0xd8e   : > { %v1715_v2 = vmul.f32 %v1714_v1, %v2204_v8  ;;  %v1745_v8 = vld [vmem:[%s2546_s20] sm:$0xff] }
 0xd8f   : > { %1771 = vmatpush.msrb.mxu0 %v1745_v8 }
 0xd90   : > { %v1716_v3 = vsub.f32 %v2436_v61, %v1715_v2 }
 0xd92   : > { %v1717_v4 = vmul.f32 %v1716_v3, %v1716_v3  ;;  %v1739_v35 = vmul.f32 %v1984_v33, %v1716_v3 }
 0xd94   : > { %v1718_v5 = vsel %vm787_vm0, %v1717_v4, 0.0 }
 0xd95   : > { %1719 = vadd.xlane.f32.xlu2 %v1718_v5 }
 0xe08   : > { %v1720_v0 = vpop.xlane.xlu2 %1719 }
 0xe09   : > { %v1721_v9 = vmul.f32 %v1720_v0, %v2221_v24  ;;  %v1789_v24 = vld [vmem:[%s2548_s22 + $0x60] sm:$0xff] }
 0xe0a   : > { %1796 = vmatpush.msra.mxu2 %v1789_v24 }
 0xe0b   : > { %2032 = vrsqrt.f32 %v1721_v9  ;;  %vm1729_vm11 = vcmp.eq.f32.partialorder %v1721_v9, inf  ;;  %v1732_v26 = vand.u32 2147483648, %v1721_v9  ;;  %vm1731_vm12 = vcmp.eq.f32.partialorder %v1721_v9, 0.0 }
 0xe0c   : > { %1797 = vmatpush.msra.mxu2 %v1788_v15 }
 0xe0e   : > { %1798 = vmatpush.msra.mxu2 %v1787_v17 }
 0xe10   : > { %1799 = vmatpush.msra.mxu2 %v1786_v19 }
 0xe11   : > { %v2033_v13 = vpop.eup %2032 }
 0xe12   : > { %v1723_v14 = vmul.f32 %v2033_v13, %v1721_v9  ;;  %1800 = vmatpush.msra.mxu2 %v1785_v21 }
 0xe14   : > { %v1724_v16 = vmul.f32 %v2033_v13, %v1723_v14  ;;  %1801 = vmatpush.msra.mxu2 %v1784_v23 }
 0xe16   : > { %v1725_v18 = vmul.f32 0.5, %v1724_v16  ;;  %1802 = vmatpush.msra.mxu2 %v1783_v27 }
 0xe18   : > { %v1726_v20 = vsub.f32 1.5, %v1725_v18  ;;  %1803 = vmatpush.msra.mxu2 %v1782_v30 }
 0xe1a   : > { %v1727_v22 = vmul.f32 %v2033_v13, %v1726_v20  ;;  %1804 = vmatpush.msra.mxu2 %v1781_v32 }
 0xe1c   : > { %v1728_v25 = vmul.f32 %v1727_v22, %v1721_v9  ;;  %1805 = vmatpush.msra.mxu2 %v1780_v34 }
 0xe1e   : > { %v1730_v28 = vsel %vm1729_vm11, %v1721_v9, %v1728_v25  ;;  %1806 = vmatpush.msra.mxu2 %v1779_v41 }
 0xe1f   : > { %v1733_v29 = vsel %vm1731_vm12, %v1732_v26, %v1730_v28 }
 0xe20   : > { %v1734_v31 = vadd.f32 1e-06, %v1733_v29  ;;  %1807 = vmatpush.msra.mxu2 %v1778_v42 }
 0xe22   : > { %2034 = vrcp.f32 %v1734_v31  ;;  %1808 = vmatpush.msra.mxu2 %v1777_v43 }
 0xe28   : > { %v2035_v37 = vpop.eup %2034 }
 0xe29   : > { %v1740_v39 = vmul.f32 %v2035_v37, %v1739_v35 }
 0xe2b   : > { %v1744_v40 = vadd.f32 %v1985_v36, %v1740_v39 }
 0xe2d   : > { %1950 = vmatmul.msk.f32.vlgmr.msrb.gmra.mxu0 %vm787_vm0, %v1744_v40 }
 0xeaa   : > { %v1773_v45 = vpop.f32.mrf.mxu0 }
 0xeab   : > { %v1774_v47 = vadd.f32 %v1986_v44, %v1773_v45 }
 0xead   : > { %v1776_v48 = vmax.f32 %v1774_v47, 0.0 }
 0xeaf   : > { %1809 = vmatmul.f32.vlgmr.msra.gmra.mxu2 %v1776_v48 }
 0xf32   : > { %v1810_v50 = vpop.f32.mrf.mxu2 }
 0xf33   : > { %v1813_v38 = vadd.f32 %v1810_v50, %v2436_v61 }
 0xf35   : > { %v1818_v51 = vadd.f32 %v1987_v49, %v1813_v38 }
 0xf37   : > { %1819 = vst.msk [vmem:[%s780_s26] sm:$0xff] %vm787_vm0, %v1818_v51 }
 0xf38 PF: > { %s34_s5 = sadd.s32 1, %s2042_s5  }
 0xf39   : > { %p31_p4 = scmp.ge.s32.totalorder %s34_s5, 4  }
 0xf3b   :  { %33 = sbr.rel (!%p31_p4) target bundleno = 11 (0xb), region = 155 }

</bundles_post_ra>
